<compile_context>
chip_gen: v6e
topology: v6e:2x2x1
jax: 0.10.0
libtpu: 0.0.40
codegen_flags: <defaults>
</compile_context>

<pallas_src>
import functools

import jax
import jax.numpy as jnp
from jax import lax
from jax.experimental import pallas as pl
from jax.experimental.pallas import tpu as pltpu


# ---------------------------------------------------------------------------
# small helpers
# ---------------------------------------------------------------------------
def _round_up(x, m):
    return ((x + m - 1) // m) * m


def _vmem_limit(est_bytes):
    # Generous headroom around the estimated footprint, clamped to [32 MiB, 96 MiB].
    # (v5e/v6e have 128 MiB physical VMEM, v7x 64 MiB; the footprint estimate plus the
    #  per-layer weight streaming guard below is what keeps the kernel inside v7x.)
    return int(min(96 * 1024 * 1024, max(2 * est_bytes, 32 * 1024 * 1024)))


# ---------------------------------------------------------------------------
# Exact-form GELU via exp-based erf (Abramowitz & Stegun 7.1.26, |err| <= ~1.5e-7).
# exp() and the approximate reciprocal run on the EUP (otherwise-idle bundle slot).
# ---------------------------------------------------------------------------
def _erf(x):
    a1, a2, a3, a4, a5 = (0.254829592, -0.284496736, 1.421413741,
                          -1.453152027, 1.061405429)
    p = 0.3275911
    sgn = jnp.where(x < 0.0, -1.0, 1.0)
    ax = jnp.abs(x)
    t = pl.reciprocal(1.0 + p * ax, approx=True)        # EUP, not a VALU divide
    poly = ((((a5 * t + a4) * t + a3) * t + a2) * t + a1) * t
    return sgn * (1.0 - poly * jnp.exp(-ax * ax))


def _gelu(x):
    # matches nn.GELU() (exact erf form) to ~1e-6 (plus the approx-reciprocal error)
    return 0.5 * x * (1.0 + _erf(x * 0.7071067811865476))


# ---------------------------------------------------------------------------
# Conv stage 1: Conv1d(1, C1, k=5, s=2, p=2) + ReLU.
# Cin == 1, so this is a plain (t_out, 8) x (8, C1) matmul over wrapper-prepared
# im2col windows (5 taps zero-padded to 8 lanes).
# ---------------------------------------------------------------------------
def _conv_stage1_kernel(x_ref, w_ref, b_ref, o_ref):
    # x_ref: (1, t_out, 8) f32 ; w_ref: (8, C1) bf16 ; b_ref: (1, C1) f32
    y = jnp.dot(x_ref[0].astype(jnp.bfloat16), w_ref[...],
                preferred_element_type=jnp.float32)
    o_ref[0] = jnp.maximum(y + b_ref[...], 0.0)


def conv1d_relu_stage1(x_bt, w, b):
    """x_bt: (B, T) single-channel signal; w: (C1, 1, 5); b: (C1,)."""
    B, T = x_bt.shape
    C1 = w.shape[0]
    t_out = (T - 1) // 2 + 1
    xp = jnp.pad(x_bt, ((0, 0), (2, 2)))                                  # pad=2
    win = 2 * jnp.arange(t_out)[:, None] + jnp.arange(5)[None, :]         # (t_out, 5)
    x1 = jnp.pad(xp[:, win], ((0, 0), (0, 0), (0, 3)))                    # (B, t_out, 8)
    w_mat = jnp.pad(w[:, 0, :].T, ((0, 3), (0, 0))).astype(jnp.bfloat16)  # (8, C1)

    est = 2 * (t_out * 8 * 4) + 2 * (t_out * C1 * 4) + 2 * (8 * C1 * 2) + 2 * C1 * 4
    return pl.pallas_call(
        _conv_stage1_kernel,
        out_shape=jax.ShapeDtypeStruct((B, t_out, C1), jnp.float32),
        grid=(B,),
        in_specs=[
            pl.BlockSpec((1, t_out, 8), lambda i: (i, 0, 0)),
            pl.BlockSpec((8, C1), lambda i: (0, 0)),
            pl.BlockSpec((1, C1), lambda i: (0, 0)),
        ],
        out_specs=pl.BlockSpec((1, t_out, C1), lambda i: (i, 0, 0)),
        compiler_params=pltpu.CompilerParams(
            dimension_semantics=("parallel",),
            vmem_limit_bytes=_vmem_limit(est)),
    )(x1, w_mat, b.reshape(1, C1))


# ---------------------------------------------------------------------------
# Conv stages 2/3: Conv1d(Cin, Cout, k=5, s=2, p=2) + ReLU via the time-pair view.
# (B, T_pad, Cin) -> (B, T_pad/2, 2*Cin) is a free row-major reshape; the 5-tap
# stride-2 conv becomes 3 MXU matmuls over the SAME aligned slab whose partial
# outputs are realigned with pltpu.roll (pair-row offsets +1 and +2).
# ---------------------------------------------------------------------------
def _conv_pair_kernel(x_ref, w_ref, b_ref, o_ref, *, t_out):
    # x_ref: (1, t_p2, 2*Cin) f32 ; w_ref: (3, 2*Cin, Cout) bf16 ; b_ref: (1, Cout) f32
    x = x_ref[0].astype(jnp.bfloat16)
    t_p2 = x.shape[0]
    y0 = jnp.dot(x, w_ref[0], preferred_element_type=jnp.float32)   # taps k=0,1
    y1 = jnp.dot(x, w_ref[1], preferred_element_type=jnp.float32)   # taps k=2,3
    y2 = jnp.dot(x, w_ref[2], preferred_element_type=jnp.float32)   # tap  k=4 (zero-padded)
    # out[t] = y0[t] + y1[t+1] + y2[t+2]; realign the small outputs on the XLU.
    y = (y0
         + pltpu.roll(y1, shift=t_p2 - 1, axis=0)
         + pltpu.roll(y2, shift=t_p2 - 2, axis=0))
    o_ref[0] = jnp.maximum(y[:t_out] + b_ref[...], 0.0)


def conv1d_relu_pair(x_btc, w, b):
    """x_btc: (B, T, Cin) time-major; w: (Cout, Cin, 5) PyTorch layout; b: (Cout,)."""
    B, T, Cin = x_btc.shape
    Cout = w.shape[0]
    t_out = (T - 1) // 2 + 1
    t_pad = _round_up(T + 4, 16)              # front pad 2, back pad >= 2, t_p2 % 8 == 0
    xp = jnp.pad(x_btc, ((0, 0), (2, t_pad - T - 2), (0, 0)))
    xp2 = xp.reshape(B, t_pad // 2, 2 * Cin)  # free reshape: pair rows on the lane axis
    t_p2 = t_pad // 2

    wt = jnp.transpose(w, (2, 1, 0))          # (5, Cin, Cout)
    w_pairs = jnp.stack([
        jnp.concatenate([wt[0], wt[1]], axis=0),
        jnp.concatenate([wt[2], wt[3]], axis=0),
        jnp.concatenate([wt[4], jnp.zeros_like(wt[4])], axis=0),
    ]).astype(jnp.bfloat16)                   # (3, 2*Cin, Cout)

    est = (2 * (t_p2 * 2 * Cin * 4) + 2 * (t_out * Cout * 4)
           + 2 * (3 * 2 * Cin * Cout * 2) + 2 * Cout * 4)
    return pl.pallas_call(
        functools.partial(_conv_pair_kernel, t_out=t_out),
        out_shape=jax.ShapeDtypeStruct((B, t_out, Cout), jnp.float32),
        grid=(B,),
        in_specs=[
            pl.BlockSpec((1, t_p2, 2 * Cin), lambda i: (i, 0, 0)),
            pl.BlockSpec((3, 2 * Cin, Cout), lambda i: (0, 0, 0)),   # weights DMA'd once
            pl.BlockSpec((1, Cout), lambda i: (0, 0)),
        ],
        out_specs=pl.BlockSpec((1, t_out, Cout), lambda i: (i, 0, 0)),
        compiler_params=pltpu.CompilerParams(
            dimension_semantics=("parallel",),
            vmem_limit_bytes=_vmem_limit(est)),
    )(xp2, w_pairs, b.reshape(1, Cout))


# ---------------------------------------------------------------------------
# Fused conformer stack + output projection.
# grid = (row_tiles, num_layers); rows axis "parallel", layer axis "arbitrary"
# (sequential residual accumulator in VMEM scratch). Output projection fused into
# the last layer iteration.
# ---------------------------------------------------------------------------
def _conformer_stack_kernel(x_ref, g_ref, be_ref, w1_ref, b1_ref, w2_ref, b2_ref,
                            wo_ref, bo_ref, o_ref, h_acc, *, stream_weights):
    layer = pl.program_id(1)

    @pl.when(layer == 0)
    def _():
        h_acc[...] = x_ref[...]

    if stream_weights:
        w1, w2 = w1_ref[0], w2_ref[0]             # current layer's block (streamed)
    else:
        w1, w2 = w1_ref[layer], w2_ref[layer]     # VMEM-resident stack, dynamic index

    x = h_acc[...]
    # LayerNorm (eps=1e-5, biased variance) - stats in one pass over x.
    inv_h = 1.0 / x.shape[-1]
    mean = jnp.sum(x, axis=-1, keepdims=True) * inv_h
    mean_sq = jnp.sum(x * x, axis=-1, keepdims=True) * inv_h
    var = mean_sq - mean * mean
    xn = (x - mean) * lax.rsqrt(var + 1e-5)
    xn = xn * g_ref[layer] + be_ref[layer]
    # Linear -> GELU -> Linear (bf16 MXU operands, f32 accumulation).
    h = jnp.dot(xn.astype(jnp.bfloat16), w1,
                preferred_element_type=jnp.float32) + b1_ref[layer]
    h = _gelu(h)
    h = jnp.dot(h.astype(jnp.bfloat16), w2,
                preferred_element_type=jnp.float32) + b2_ref[layer]
    # TODO(synk): nn.Dropout(0.1) is identity in eval mode; train-mode RNG dropout not implemented.
    h_acc[...] = x + h

    @pl.when(layer == pl.num_programs(1) - 1)
    def _():
        o_ref[...] = jnp.dot(h_acc[...].astype(jnp.bfloat16), wo_ref[...],
                             preferred_element_type=jnp.float32) + bo_ref[...]


def conformer_stack_project(rows, gamma, beta, w1, b1, w2, b2, w_out, b_out,
                            *, row_tile=None):
    n, h = rows.shape
    num_layers = gamma.shape[0]
    out_dim = w_out.shape[1]

    # Big row tile (<= 512, multiple of 8); pad rows up to a tile multiple.
    if row_tile is None:
        row_tile = min(512, _round_up(n, 8))
    row_tile = max(8, (row_tile // 8) * 8)
    n_pad = _round_up(n, row_tile)
    if n_pad != n:
        rows = jnp.pad(rows, ((0, n_pad - n), (0, 0)))

    # bf16 matmul weights: halves weight VMEM/DMA, feeds the MXU its native input type.
    w1 = w1.astype(jnp.bfloat16)
    w2 = w2.astype(jnp.bfloat16)
    w_out = w_out.astype(jnp.bfloat16)

    # Keep all layers' w1/w2 VMEM-resident (constant block index -> DMA'd once) while
    # small; otherwise stream them per layer so the kernel also fits v7x's 64 MiB VMEM.
    mat_bytes_resident = 2 * num_layers * h * h * 2
    stream_weights = mat_bytes_resident > (16 * 1024 * 1024)
    if stream_weights:
        mat_spec = pl.BlockSpec((1, h, h), lambda r, l: (l, 0, 0))
    else:
        mat_spec = pl.BlockSpec((num_layers, h, h), lambda r, l: (0, 0, 0))
    vec_spec = pl.BlockSpec((num_layers, 1, h), lambda r, l: (0, 0, 0))

    est = (2 * row_tile * h * 4                 # rows in (double-buffered)
           + 2 * row_tile * out_dim * 4         # out (double-buffered)
           + row_tile * h * 4                   # residual accumulator scratch
           + 2 * 4 * num_layers * h * 4         # gamma / beta / b1 / b2
           + 2 * (h * out_dim * 2 + out_dim * 4)
           + (2 * 2 * h * h * 2 if stream_weights else 2 * mat_bytes_resident))

    out = pl.pallas_call(
        functools.partial(_conformer_stack_kernel, stream_weights=stream_weights),
        out_shape=jax.ShapeDtypeStruct((n_pad, out_dim), jnp.float32),
        grid=(n_pad // row_tile, num_layers),
        in_specs=[
            pl.BlockSpec((row_tile, h), lambda r, l: (r, 0)),
            vec_spec, vec_spec,                 # gamma, beta
            mat_spec, vec_spec,                 # w1, b1
            mat_spec, vec_spec,                 # w2, b2
            pl.BlockSpec((h, out_dim), lambda r, l: (0, 0)),
            pl.BlockSpec((1, out_dim), lambda r, l: (0, 0)),
        ],
        out_specs=pl.BlockSpec((row_tile, out_dim), lambda r, l: (r, 0)),
        scratch_shapes=[pltpu.VMEM((row_tile, h), jnp.float32)],
        compiler_params=pltpu.CompilerParams(
            dimension_semantics=("parallel", "arbitrary"),
            vmem_limit_bytes=_vmem_limit(est)),
    )(rows, gamma, beta, w1, b1, w2, b2, w_out, b_out.reshape(1, out_dim))
    return out[:n]


# ---------------------------------------------------------------------------
# Full forward pass: (B, 1, T) NCW input, same semantics as the PyTorch module.
# ---------------------------------------------------------------------------
def conformer_encoder_forward(x, params, *, row_tile=None):
    (wc1, bc1), (wc2, bc2), (wc3, bc3) = params["convs"]
    h = conv1d_relu_stage1(x[:, 0, :], wc1, bc1)      # (B, T/2, C1)
    h = conv1d_relu_pair(h, wc2, bc2)                 # (B, T/4, C2)
    h = conv1d_relu_pair(h, wc3, bc3)                 # (B, T/8, hidden)
    B, Tp, H = h.shape
    rows = h.reshape(B * Tp, H)                       # == conv_out.transpose(1, 2) rows
    out = conformer_stack_project(
        rows, params["ln_gamma"], params["ln_beta"],
        params["w1"], params["b1"], params["w2"], params["b2"],
        params["w_out"], params["b_out"], row_tile=row_tile)
    return out.reshape(B, Tp, -1)


# ---------------------------------------------------------------------------
# Pure-JAX f32 reference (exact erf GELU) for verification
# ---------------------------------------------------------------------------
def reference_forward(x, params):
    h = x
    for (w, b) in params["convs"]:
        h = lax.conv_general_dilated(h, w, (2,), [(2, 2)],
                                     dimension_numbers=("NCH", "OIH", "NCH"))
        h = jnp.maximum(h + b[None, :, None], 0.0)
    h = jnp.transpose(h, (0, 2, 1))
    num_layers = params["ln_gamma"].shape[0]
    for l in range(num_layers):
        mean = jnp.mean(h, axis=-1, keepdims=True)
        var = jnp.mean(jnp.square(h - mean), axis=-1, keepdims=True)
        xn = (h - mean) / jnp.sqrt(var + 1e-5)
        xn = xn * params["ln_gamma"][l, 0] + params["ln_beta"][l, 0]
        t = xn @ params["w1"][l] + params["b1"][l, 0]
        t = 0.5 * t * (1.0 + lax.erf(t * 0.7071067811865476))   # exact GELU
        t = t @ params["w2"][l] + params["b2"][l, 0]
        h = h + t
    return h @ params["w_out"] + params["b_out"]


# ---------------------------------------------------------------------------
# Deterministic parameter init (synthetic; shapes follow the module __init__)
# ---------------------------------------------------------------------------
def init_params(key, hidden=512, out_dim=128, num_layers=2):
    c1, c2, c3 = hidden // 4, hidden // 2, hidden
    conv_specs = [(1, c1), (c1, c2), (c2, c3)]
    keys = jax.random.split(key, 3 + 8)
    convs = []
    for i, (cin, cout) in enumerate(conv_specs):
        kw, kb = jax.random.split(keys[i])
        w = jax.random.normal(kw, (cout, cin, 5), jnp.float32) / jnp.sqrt(cin * 5.0)
        b = 0.02 * jax.random.normal(kb, (cout,), jnp.float32)
        convs.append((w, b))
    kk = keys[3:]
    return {
        "convs": convs,
        "ln_gamma": 1.0 + 0.1 * jax.random.normal(kk[0], (num_layers, 1, hidden), jnp.float32),
        "ln_beta": 0.1 * jax.random.normal(kk[1], (num_layers, 1, hidden), jnp.float32),
        "w1": jax.random.normal(kk[2], (num_layers, hidden, hidden), jnp.float32) / jnp.sqrt(hidden),
        "b1": 0.02 * jax.random.normal(kk[3], (num_layers, 1, hidden), jnp.float32),
        "w2": jax.random.normal(kk[4], (num_layers, hidden, hidden), jnp.float32) / jnp.sqrt(hidden),
        "b2": 0.02 * jax.random.normal(kk[5], (num_layers, 1, hidden), jnp.float32),
        "w_out": jax.random.normal(kk[6], (hidden, out_dim), jnp.float32) / jnp.sqrt(hidden),
        "b_out": 0.02 * jax.random.normal(kk[7], (out_dim,), jnp.float32),
    }


if __name__ == "__main__":
    # Module defaults hidden_dim=512 / output_dim=128 keep every feature axis lane-dense
    # (multiples of 128); small B/T/num_layers keep the demo cheap.
    B, T = 2, 64                      # input: (B, 1, T) NCW, as implied by Conv1d(1, ...)
    hidden, out_dim, num_layers = 512, 128, 2

    key = jax.random.PRNGKey(0)
    kp, kx = jax.random.split(key)
    params = init_params(kp, hidden=hidden, out_dim=out_dim, num_layers=num_layers)
    x = jax.random.normal(kx, (B, 1, T), jnp.float32)

    fwd = jax.jit(conformer_encoder_forward)
    out = jax.block_until_ready(fwd(x, params))
    ref = jax.block_until_ready(jax.jit(reference_forward)(x, params))

    assert out.shape == (B, T // 8, out_dim), out.shape
    max_err = float(jnp.max(jnp.abs(out - ref)))
    # Tolerance documents the bf16-MXU-operand change: ~0.2-0.5% rounding per matmul
    # across 8 chained matmuls vs. the f32 reference; structural bugs give O(1) errors.
    if not bool(jnp.allclose(out, ref, rtol=5e-2, atol=5e-2)):
        raise AssertionError(f"mismatch vs reference, max abs err = {max_err}")
    print("KERNEL_OK")
</pallas_src>

<mosaic_0001>
module attributes {stable_mosaic.version = 11 : i64} {
  func.func @_conv_pair_kernel(%arg0: i32, %arg1: memref<1x24x256xf32, #tpu.memory_space<vmem>>, %arg2: memref<3x256x256xbf16, #tpu.memory_space<vmem>>, %arg3: memref<1x256xf32, #tpu.memory_space<vmem>>, %arg4: memref<1x16x256xf32, #tpu.memory_space<vmem>>) attributes {dimension_semantics = [#tpu.dimension_semantics<parallel>], iteration_bounds = array<i64: 2>, scalar_prefetch = 0 : i64, scratch_operands = 0 : i64, tpu.core_type = #tpu.core_type<tc>, window_params = [{transform_indices = @transform_0, window_bounds = array<i64: 1, 24, 256>}, {pipeline_mode = #tpu.pipeline_mode<synchronous>, transform_indices = @transform_1, window_bounds = array<i64: 3, 256, 256>}, {pipeline_mode = #tpu.pipeline_mode<synchronous>, transform_indices = @transform_2, window_bounds = array<i64: 1, 256>}, {transform_indices = @transform_3, window_bounds = array<i64: 1, 16, 256>}]} {
    %c0 = arith.constant 0 : index
    %c0_0 = arith.constant 0 : index
    %c0_1 = arith.constant 0 : index
    %0 = vector.load %arg1[%c0, %c0_0, %c0_1] : memref<1x24x256xf32, #tpu.memory_space<vmem>>, vector<1x24x256xf32>
    %1 = vector.shape_cast %0 : vector<1x24x256xf32> to vector<24x256xf32>
    %2 = arith.truncf %1 : vector<24x256xf32> to vector<24x256xbf16>
    %c0_2 = arith.constant 0 : index
    %c0_3 = arith.constant 0 : index
    %c0_4 = arith.constant 0 : index
    %3 = vector.load %arg2[%c0_2, %c0_3, %c0_4] : memref<3x256x256xbf16, #tpu.memory_space<vmem>>, vector<1x256x256xbf16>
    %4 = vector.shape_cast %3 : vector<1x256x256xbf16> to vector<256x256xbf16>
    %cst = arith.constant dense<0.000000e+00> : vector<24x256xf32>
    %5 = tpu.matmul %2, %4, %cst {dimension_numbers = #tpu.dot_dimension_numbers<[1], [0], [0], [1], [0, 0, 1, 1], [], []>} : vector<24x256xbf16>, vector<256x256xbf16>, vector<24x256xf32> -> vector<24x256xf32>
    %c1 = arith.constant 1 : index
    %c0_5 = arith.constant 0 : index
    %c0_6 = arith.constant 0 : index
    %6 = vector.load %arg2[%c1, %c0_5, %c0_6] : memref<3x256x256xbf16, #tpu.memory_space<vmem>>, vector<1x256x256xbf16>
    %7 = vector.shape_cast %6 : vector<1x256x256xbf16> to vector<256x256xbf16>
    %cst_7 = arith.constant dense<0.000000e+00> : vector<24x256xf32>
    %8 = tpu.matmul %2, %7, %cst_7 {dimension_numbers = #tpu.dot_dimension_numbers<[1], [0], [0], [1], [0, 0, 1, 1], [], []>} : vector<24x256xbf16>, vector<256x256xbf16>, vector<24x256xf32> -> vector<24x256xf32>
    %c2 = arith.constant 2 : index
    %c0_8 = arith.constant 0 : index
    %c0_9 = arith.constant 0 : index
    %9 = vector.load %arg2[%c2, %c0_8, %c0_9] : memref<3x256x256xbf16, #tpu.memory_space<vmem>>, vector<1x256x256xbf16>
    %10 = vector.shape_cast %9 : vector<1x256x256xbf16> to vector<256x256xbf16>
    %cst_10 = arith.constant dense<0.000000e+00> : vector<24x256xf32>
    %11 = tpu.matmul %2, %10, %cst_10 {dimension_numbers = #tpu.dot_dimension_numbers<[1], [0], [0], [1], [0, 0, 1, 1], [], []>} : vector<24x256xbf16>, vector<256x256xbf16>, vector<24x256xf32> -> vector<24x256xf32>
    %c23_i32 = arith.constant 23 : i32
    %12 = tpu.dynamic_rotate %8 by %c23_i32 dim 0 : vector<24x256xf32>, i32 -> vector<24x256xf32>
    %13 = arith.addf %5, %12 : vector<24x256xf32>
    %c22_i32 = arith.constant 22 : i32
    %14 = tpu.dynamic_rotate %11 by %c22_i32 dim 0 : vector<24x256xf32>, i32 -> vector<24x256xf32>
    %15 = arith.addf %13, %14 : vector<24x256xf32>
    %16 = vector.extract_strided_slice %15 {offsets = [0, 0], sizes = [16, 256], strides = [1, 1]} : vector<24x256xf32> to vector<16x256xf32>
    %c0_11 = arith.constant 0 : index
    %c0_12 = arith.constant 0 : index
    %17 = vector.load %arg3[%c0_11, %c0_12] : memref<1x256xf32, #tpu.memory_space<vmem>>, vector<1x256xf32>
    %18 = vector.broadcast %17 : vector<1x256xf32> to vector<16x256xf32>
    %19 = arith.addf %16, %18 : vector<16x256xf32>
    %cst_13 = arith.constant 0.000000e+00 : f32
    %20 = vector.broadcast %cst_13 : f32 to vector<16x256xf32>
    %21 = arith.maximumf %19, %20 : vector<16x256xf32>
    %c0_14 = arith.constant 0 : index
    %c0_15 = arith.constant 0 : index
    %c0_16 = arith.constant 0 : index
    %22 = vector.load %arg4[%c0_14, %c0_15, %c0_16] : memref<1x16x256xf32, #tpu.memory_space<vmem>>, vector<1x16x256xf32>
    %23 = vector.shape_cast %22 : vector<1x16x256xf32> to vector<16x256xf32>
    %24 = vector.shape_cast %21 : vector<16x256xf32> to vector<1x16x256xf32>
    tpu.vector_store %arg4[%c0_14, %c0_15, %c0_16], %24 {strides = array<i32>} : memref<1x16x256xf32, #tpu.memory_space<vmem>>, vector<1x16x256xf32>,
    return
  }
  func.func @transform_0(%arg0: i32) -> (i32, i32, i32) {
    %c0_i32 = arith.constant 0 : i32
    %c0_i32_0 = arith.constant 0 : i32
    %c0_i32_1 = arith.constant 0 : i32
    return %arg0, %c0_i32, %c0_i32_0 : i32, i32, i32
  }
  func.func @transform_1(%arg0: i32) -> (i32, i32, i32) {
    %c0_i32 = arith.constant 0 : i32
    %c0_i32_0 = arith.constant 0 : i32
    %c0_i32_1 = arith.constant 0 : i32
    %c0_i32_2 = arith.constant 0 : i32
    return %c0_i32, %c0_i32_0, %c0_i32_1 : i32, i32, i32
  }
  func.func @transform_2(%arg0: i32) -> (i32, i32) {
    %c0_i32 = arith.constant 0 : i32
    %c0_i32_0 = arith.constant 0 : i32
    %c0_i32_1 = arith.constant 0 : i32
    return %c0_i32, %c0_i32_0 : i32, i32
  }
  func.func @transform_3(%arg0: i32) -> (i32, i32, i32) {
    %c0_i32 = arith.constant 0 : i32
    %c0_i32_0 = arith.constant 0 : i32
    %c0_i32_1 = arith.constant 0 : i32
    return %arg0, %c0_i32, %c0_i32_0 : i32, i32, i32
  }
}

module attributes {stable_mosaic.version = 11 : i64} {
  func.func @_conv_pair_kernel(%arg0: i32, %arg1: memref<1x16x512xf32, #tpu.memory_space<vmem>>, %arg2: memref<3x512x512xbf16, #tpu.memory_space<vmem>>, %arg3: memref<1x512xf32, #tpu.memory_space<vmem>>, %arg4: memref<1x8x512xf32, #tpu.memory_space<vmem>>) attributes {dimension_semantics = [#tpu.dimension_semantics<parallel>], iteration_bounds = array<i64: 2>, scalar_prefetch = 0 : i64, scratch_operands = 0 : i64, tpu.core_type = #tpu.core_type<tc>, window_params = [{transform_indices = @transform_0, window_bounds = array<i64: 1, 16, 512>}, {pipeline_mode = #tpu.pipeline_mode<synchronous>, transform_indices = @transform_1, window_bounds = array<i64: 3, 512, 512>}, {pipeline_mode = #tpu.pipeline_mode<synchronous>, transform_indices = @transform_2, window_bounds = array<i64: 1, 512>}, {transform_indices = @transform_3, window_bounds = array<i64: 1, 8, 512>}]} {
    %c0 = arith.constant 0 : index
    %c0_0 = arith.constant 0 : index
    %c0_1 = arith.constant 0 : index
    %0 = vector.load %arg1[%c0, %c0_0, %c0_1] : memref<1x16x512xf32, #tpu.memory_space<vmem>>, vector<1x16x512xf32>
    %1 = vector.shape_cast %0 : vector<1x16x512xf32> to vector<16x512xf32>
    %2 = arith.truncf %1 : vector<16x512xf32> to vector<16x512xbf16>
    %c0_2 = arith.constant 0 : index
    %c0_3 = arith.constant 0 : index
    %c0_4 = arith.constant 0 : index
    %3 = vector.load %arg2[%c0_2, %c0_3, %c0_4] : memref<3x512x512xbf16, #tpu.memory_space<vmem>>, vector<1x512x512xbf16>
    %4 = vector.shape_cast %3 : vector<1x512x512xbf16> to vector<512x512xbf16>
    %cst = arith.constant dense<0.000000e+00> : vector<16x512xf32>
    %5 = tpu.matmul %2, %4, %cst {dimension_numbers = #tpu.dot_dimension_numbers<[1], [0], [0], [1], [0, 0, 1, 1], [], []>} : vector<16x512xbf16>, vector<512x512xbf16>, vector<16x512xf32> -> vector<16x512xf32>
    %c1 = arith.constant 1 : index
    %c0_5 = arith.constant 0 : index
    %c0_6 = arith.constant 0 : index
    %6 = vector.load %arg2[%c1, %c0_5, %c0_6] : memref<3x512x512xbf16, #tpu.memory_space<vmem>>, vector<1x512x512xbf16>
    %7 = vector.shape_cast %6 : vector<1x512x512xbf16> to vector<512x512xbf16>
    %cst_7 = arith.constant dense<0.000000e+00> : vector<16x512xf32>
    %8 = tpu.matmul %2, %7, %cst_7 {dimension_numbers = #tpu.dot_dimension_numbers<[1], [0], [0], [1], [0, 0, 1, 1], [], []>} : vector<16x512xbf16>, vector<512x512xbf16>, vector<16x512xf32> -> vector<16x512xf32>
    %c2 = arith.constant 2 : index
    %c0_8 = arith.constant 0 : index
    %c0_9 = arith.constant 0 : index
    %9 = vector.load %arg2[%c2, %c0_8, %c0_9] : memref<3x512x512xbf16, #tpu.memory_space<vmem>>, vector<1x512x512xbf16>
    %10 = vector.shape_cast %9 : vector<1x512x512xbf16> to vector<512x512xbf16>
    %cst_10 = arith.constant dense<0.000000e+00> : vector<16x512xf32>
    %11 = tpu.matmul %2, %10, %cst_10 {dimension_numbers = #tpu.dot_dimension_numbers<[1], [0], [0], [1], [0, 0, 1, 1], [], []>} : vector<16x512xbf16>, vector<512x512xbf16>, vector<16x512xf32> -> vector<16x512xf32>
    %c15_i32 = arith.constant 15 : i32
    %12 = tpu.dynamic_rotate %8 by %c15_i32 dim 0 : vector<16x512xf32>, i32 -> vector<16x512xf32>
    %13 = arith.addf %5, %12 : vector<16x512xf32>
    %c14_i32 = arith.constant 14 : i32
    %14 = tpu.dynamic_rotate %11 by %c14_i32 dim 0 : vector<16x512xf32>, i32 -> vector<16x512xf32>
    %15 = arith.addf %13, %14 : vector<16x512xf32>
    %16 = vector.extract_strided_slice %15 {offsets = [0, 0], sizes = [8, 512], strides = [1, 1]} : vector<16x512xf32> to vector<8x512xf32>
    %c0_11 = arith.constant 0 : index
    %c0_12 = arith.constant 0 : index
    %17 = vector.load %arg3[%c0_11, %c0_12] : memref<1x512xf32, #tpu.memory_space<vmem>>, vector<1x512xf32>
    %18 = vector.broadcast %17 : vector<1x512xf32> to vector<8x512xf32>
    %19 = arith.addf %16, %18 : vector<8x512xf32>
    %cst_13 = arith.constant 0.000000e+00 : f32
    %20 = vector.broadcast %cst_13 : f32 to vector<8x512xf32>
    %21 = arith.maximumf %19, %20 : vector<8x512xf32>
    %c0_14 = arith.constant 0 : index
    %c0_15 = arith.constant 0 : index
    %c0_16 = arith.constant 0 : index
    %22 = vector.load %arg4[%c0_14, %c0_15, %c0_16] : memref<1x8x512xf32, #tpu.memory_space<vmem>>, vector<1x8x512xf32>
    %23 = vector.shape_cast %22 : vector<1x8x512xf32> to vector<8x512xf32>
    %24 = vector.shape_cast %21 : vector<8x512xf32> to vector<1x8x512xf32>
    tpu.vector_store %arg4[%c0_14, %c0_15, %c0_16], %24 {strides = array<i32>} : memref<1x8x512xf32, #tpu.memory_space<vmem>>, vector<1x8x512xf32>,
    return
  }
  func.func @transform_0(%arg0: i32) -> (i32, i32, i32) {
    %c0_i32 = arith.constant 0 : i32
    %c0_i32_0 = arith.constant 0 : i32
    %c0_i32_1 = arith.constant 0 : i32
    return %arg0, %c0_i32, %c0_i32_0 : i32, i32, i32
  }
  func.func @transform_1(%arg0: i32) -> (i32, i32, i32) {
    %c0_i32 = arith.constant 0 : i32
    %c0_i32_0 = arith.constant 0 : i32
    %c0_i32_1 = arith.constant 0 : i32
    %c0_i32_2 = arith.constant 0 : i32
    return %c0_i32, %c0_i32_0, %c0_i32_1 : i32, i32, i32
  }
  func.func @transform_2(%arg0: i32) -> (i32, i32) {
    %c0_i32 = arith.constant 0 : i32
    %c0_i32_0 = arith.constant 0 : i32
    %c0_i32_1 = arith.constant 0 : i32
    return %c0_i32, %c0_i32_0 : i32, i32
  }
  func.func @transform_3(%arg0: i32) -> (i32, i32, i32) {
    %c0_i32 = arith.constant 0 : i32
    %c0_i32_0 = arith.constant 0 : i32
    %c0_i32_1 = arith.constant 0 : i32
    return %arg0, %c0_i32, %c0_i32_0 : i32, i32, i32
  }
}

module attributes {stable_mosaic.version = 11 : i64} {
  func.func @_conv_stage1_kernel(%arg0: i32, %arg1: memref<1x32x8xf32, #tpu.memory_space<vmem>>, %arg2: memref<8x128xbf16, #tpu.memory_space<vmem>>, %arg3: memref<1x128xf32, #tpu.memory_space<vmem>>, %arg4: memref<1x32x128xf32, #tpu.memory_space<vmem>>) attributes {dimension_semantics = [#tpu.dimension_semantics<parallel>], iteration_bounds = array<i64: 2>, scalar_prefetch = 0 : i64, scratch_operands = 0 : i64, tpu.core_type = #tpu.core_type<tc>, window_params = [{transform_indices = @transform_0, window_bounds = array<i64: 1, 32, 8>}, {pipeline_mode = #tpu.pipeline_mode<synchronous>, transform_indices = @transform_1, window_bounds = array<i64: 8, 128>}, {pipeline_mode = #tpu.pipeline_mode<synchronous>, transform_indices = @transform_2, window_bounds = array<i64: 1, 128>}, {transform_indices = @transform_3, window_bounds = array<i64: 1, 32, 128>}]} {
    %c0 = arith.constant 0 : index
    %c0_0 = arith.constant 0 : index
    %c0_1 = arith.constant 0 : index
    %0 = vector.load %arg1[%c0, %c0_0, %c0_1] : memref<1x32x8xf32, #tpu.memory_space<vmem>>, vector<1x32x8xf32>
    %1 = vector.shape_cast %0 : vector<1x32x8xf32> to vector<32x8xf32>
    %2 = arith.truncf %1 : vector<32x8xf32> to vector<32x8xbf16>
    %c0_2 = arith.constant 0 : index
    %c0_3 = arith.constant 0 : index
    %3 = vector.load %arg2[%c0_2, %c0_3] : memref<8x128xbf16, #tpu.memory_space<vmem>>, vector<8x128xbf16>
    %cst = arith.constant dense<0.000000e+00> : vector<32x128xf32>
    %4 = tpu.matmul %2, %3, %cst {dimension_numbers = #tpu.dot_dimension_numbers<[1], [0], [0], [1], [0, 0, 1, 1], [], []>} : vector<32x8xbf16>, vector<8x128xbf16>, vector<32x128xf32> -> vector<32x128xf32>
    %c0_4 = arith.constant 0 : index
    %c0_5 = arith.constant 0 : index
    %5 = vector.load %arg3[%c0_4, %c0_5] : memref<1x128xf32, #tpu.memory_space<vmem>>, vector<1x128xf32>
    %6 = vector.broadcast %5 : vector<1x128xf32> to vector<32x128xf32>
    %7 = arith.addf %4, %6 : vector<32x128xf32>
    %cst_6 = arith.constant 0.000000e+00 : f32
    %8 = vector.broadcast %cst_6 : f32 to vector<32x128xf32>
    %9 = arith.maximumf %7, %8 : vector<32x128xf32>
    %c0_7 = arith.constant 0 : index
    %c0_8 = arith.constant 0 : index
    %c0_9 = arith.constant 0 : index
    %10 = vector.load %arg4[%c0_7, %c0_8, %c0_9] : memref<1x32x128xf32, #tpu.memory_space<vmem>>, vector<1x32x128xf32>
    %11 = vector.shape_cast %10 : vector<1x32x128xf32> to vector<32x128xf32>
    %12 = vector.shape_cast %9 : vector<32x128xf32> to vector<1x32x128xf32>
    tpu.vector_store %arg4[%c0_7, %c0_8, %c0_9], %12 {strides = array<i32>} : memref<1x32x128xf32, #tpu.memory_space<vmem>>, vector<1x32x128xf32>,
    return
  }
  func.func @transform_0(%arg0: i32) -> (i32, i32, i32) {
    %c0_i32 = arith.constant 0 : i32
    %c0_i32_0 = arith.constant 0 : i32
    %c0_i32_1 = arith.constant 0 : i32
    return %arg0, %c0_i32, %c0_i32_0 : i32, i32, i32
  }
  func.func @transform_1(%arg0: i32) -> (i32, i32) {
    %c0_i32 = arith.constant 0 : i32
    %c0_i32_0 = arith.constant 0 : i32
    %c0_i32_1 = arith.constant 0 : i32
    return %c0_i32, %c0_i32_0 : i32, i32
  }
  func.func @transform_2(%arg0: i32) -> (i32, i32) {
    %c0_i32 = arith.constant 0 : i32
    %c0_i32_0 = arith.constant 0 : i32
    %c0_i32_1 = arith.constant 0 : i32
    return %c0_i32, %c0_i32_0 : i32, i32
  }
  func.func @transform_3(%arg0: i32) -> (i32, i32, i32) {
    %c0_i32 = arith.constant 0 : i32
    %c0_i32_0 = arith.constant 0 : i32
    %c0_i32_1 = arith.constant 0 : i32
    return %arg0, %c0_i32, %c0_i32_0 : i32, i32, i32
  }
}

module attributes {stable_mosaic.version = 11 : i64} {
  func.func @_conformer_stack_kernel(%arg0: i32, %arg1: i32, %arg2: memref<16x512xf32, #tpu.memory_space<vmem>>, %arg3: memref<2x1x512xf32, #tpu.memory_space<vmem>>, %arg4: memref<2x1x512xf32, #tpu.memory_space<vmem>>, %arg5: memref<2x512x512xbf16, #tpu.memory_space<vmem>>, %arg6: memref<2x1x512xf32, #tpu.memory_space<vmem>>, %arg7: memref<2x512x512xbf16, #tpu.memory_space<vmem>>, %arg8: memref<2x1x512xf32, #tpu.memory_space<vmem>>, %arg9: memref<512x128xbf16, #tpu.memory_space<vmem>>, %arg10: memref<1x128xf32, #tpu.memory_space<vmem>>, %arg11: memref<16x128xf32, #tpu.memory_space<vmem>>, %arg12: memref<16x512xf32, #tpu.memory_space<vmem>>) attributes {dimension_semantics = [#tpu.dimension_semantics<parallel>, #tpu.dimension_semantics<arbitrary>], iteration_bounds = array<i64: 1, 2>, scalar_prefetch = 0 : i64, scratch_operands = 1 : i64, tpu.core_type = #tpu.core_type<tc>, window_params = [{transform_indices = @transform_0, window_bounds = array<i64: 16, 512>}, {pipeline_mode = #tpu.pipeline_mode<synchronous>, transform_indices = @transform_1, window_bounds = array<i64: 2, 1, 512>}, {pipeline_mode = #tpu.pipeline_mode<synchronous>, transform_indices = @transform_2, window_bounds = array<i64: 2, 1, 512>}, {pipeline_mode = #tpu.pipeline_mode<synchronous>, transform_indices = @transform_3, window_bounds = array<i64: 2, 512, 512>}, {pipeline_mode = #tpu.pipeline_mode<synchronous>, transform_indices = @transform_4, window_bounds = array<i64: 2, 1, 512>}, {pipeline_mode = #tpu.pipeline_mode<synchronous>, transform_indices = @transform_5, window_bounds = array<i64: 2, 512, 512>}, {pipeline_mode = #tpu.pipeline_mode<synchronous>, transform_indices = @transform_6, window_bounds = array<i64: 2, 1, 512>}, {pipeline_mode = #tpu.pipeline_mode<synchronous>, transform_indices = @transform_7, window_bounds = array<i64: 512, 128>}, {pipeline_mode = #tpu.pipeline_mode<synchronous>, transform_indices = @transform_8, window_bounds = array<i64: 1, 128>}, {transform_indices = @transform_9, window_bounds = array<i64: 16, 128>}]} {
    %c0_i32 = arith.constant 0 : i32
    %0 = arith.cmpi eq, %arg1, %c0_i32 : i32
    %1 = arith.extui %0 : i1 to i32
    %c0_i32_0 = arith.constant 0 : i32
    %2 = arith.cmpi ne, %1, %c0_i32_0 : i32
    scf.if %2 {
      %c0_38 = arith.constant 0 : index
      %c0_39 = arith.constant 0 : index
      %97 = vector.load %arg2[%c0_38, %c0_39] : memref<16x512xf32, #tpu.memory_space<vmem>>, vector<16x512xf32>
      %c0_40 = arith.constant 0 : index
      %c0_41 = arith.constant 0 : index
      %98 = vector.load %arg12[%c0_40, %c0_41] : memref<16x512xf32, #tpu.memory_space<vmem>>, vector<16x512xf32>
      tpu.vector_store %arg12[%c0_40, %c0_41], %97 {strides = array<i32>} : memref<16x512xf32, #tpu.memory_space<vmem>>, vector<16x512xf32>,
    } else {
    }
    %3 = arith.index_cast %arg1 : i32 to index
    %c0 = arith.constant 0 : index
    %c0_1 = arith.constant 0 : index
    %4 = vector.load %arg5[%3, %c0, %c0_1] : memref<2x512x512xbf16, #tpu.memory_space<vmem>>, vector<1x512x512xbf16>
    %5 = vector.shape_cast %4 : vector<1x512x512xbf16> to vector<512x512xbf16>
    %6 = arith.index_cast %arg1 : i32 to index
    %c0_2 = arith.constant 0 : index
    %c0_3 = arith.constant 0 : index
    %7 = vector.load %arg7[%6, %c0_2, %c0_3] : memref<2x512x512xbf16, #tpu.memory_space<vmem>>, vector<1x512x512xbf16>
    %8 = vector.shape_cast %7 : vector<1x512x512xbf16> to vector<512x512xbf16>
    %c0_4 = arith.constant 0 : index
    %c0_5 = arith.constant 0 : index
    %9 = vector.load %arg12[%c0_4, %c0_5] : memref<16x512xf32, #tpu.memory_space<vmem>>, vector<16x512xf32>
    %cst = arith.constant dense<0.000000e+00> : vector<16xf32>
    %10 = vector.multi_reduction <add>, %9, %cst [1] : vector<16x512xf32> to vector<16xf32>
    %11 = vector.shape_cast %10 : vector<16xf32> to vector<16x1xf32>
    %cst_6 = arith.constant 0.001953125 : f32
    %12 = vector.broadcast %cst_6 : f32 to vector<16x1xf32>
    %13 = arith.mulf %11, %12 : vector<16x1xf32>
    %14 = arith.mulf %9, %9 : vector<16x512xf32>
    %cst_7 = arith.constant dense<0.000000e+00> : vector<16xf32>
    %15 = vector.multi_reduction <add>, %14, %cst_7 [1] : vector<16x512xf32> to vector<16xf32>
    %16 = vector.shape_cast %15 : vector<16xf32> to vector<16x1xf32>
    %cst_8 = arith.constant 0.001953125 : f32
    %17 = vector.broadcast %cst_8 : f32 to vector<16x1xf32>
    %18 = arith.mulf %16, %17 : vector<16x1xf32>
    %19 = arith.mulf %13, %13 : vector<16x1xf32>
    %20 = arith.subf %18, %19 : vector<16x1xf32>
    %21 = vector.broadcast %13 : vector<16x1xf32> to vector<16x512xf32>
    %22 = arith.subf %9, %21 : vector<16x512xf32>
    %cst_9 = arith.constant 9.99999974E-6 : f32
    %23 = vector.broadcast %cst_9 : f32 to vector<16x1xf32>
    %24 = arith.addf %20, %23 : vector<16x1xf32>
    %25 = math.rsqrt %24 : vector<16x1xf32>
    %26 = vector.broadcast %25 : vector<16x1xf32> to vector<16x512xf32>
    %27 = arith.mulf %22, %26 : vector<16x512xf32>
    %28 = arith.index_cast %arg1 : i32 to index
    %c0_10 = arith.constant 0 : index
    %c0_11 = arith.constant 0 : index
    %29 = vector.load %arg3[%28, %c0_10, %c0_11] : memref<2x1x512xf32, #tpu.memory_space<vmem>>, vector<1x1x512xf32>
    %30 = vector.shape_cast %29 : vector<1x1x512xf32> to vector<1x512xf32>
    %31 = vector.broadcast %30 : vector<1x512xf32> to vector<16x512xf32>
    %32 = arith.mulf %27, %31 : vector<16x512xf32>
    %33 = arith.index_cast %arg1 : i32 to index
    %c0_12 = arith.constant 0 : index
    %c0_13 = arith.constant 0 : index
    %34 = vector.load %arg4[%33, %c0_12, %c0_13] : memref<2x1x512xf32, #tpu.memory_space<vmem>>, vector<1x1x512xf32>
    %35 = vector.shape_cast %34 : vector<1x1x512xf32> to vector<1x512xf32>
    %36 = vector.broadcast %35 : vector<1x512xf32> to vector<16x512xf32>
    %37 = arith.addf %32, %36 : vector<16x512xf32>
    %38 = arith.truncf %37 : vector<16x512xf32> to vector<16x512xbf16>
    %cst_14 = arith.constant dense<0.000000e+00> : vector<16x512xf32>
    %39 = tpu.matmul %38, %5, %cst_14 {dimension_numbers = #tpu.dot_dimension_numbers<[1], [0], [0], [1], [0, 0, 1, 1], [], []>} : vector<16x512xbf16>, vector<512x512xbf16>, vector<16x512xf32> -> vector<16x512xf32>
    %40 = arith.index_cast %arg1 : i32 to index
    %c0_15 = arith.constant 0 : index
    %c0_16 = arith.constant 0 : index
    %41 = vector.load %arg6[%40, %c0_15, %c0_16] : memref<2x1x512xf32, #tpu.memory_space<vmem>>, vector<1x1x512xf32>
    %42 = vector.shape_cast %41 : vector<1x1x512xf32> to vector<1x512xf32>
    %43 = vector.broadcast %42 : vector<1x512xf32> to vector<16x512xf32>
    %44 = arith.addf %39, %43 : vector<16x512xf32>
    %cst_17 = arith.constant 5.000000e-01 : f32
    %45 = vector.broadcast %cst_17 : f32 to vector<16x512xf32>
    %46 = arith.mulf %45, %44 : vector<16x512xf32>
    %cst_18 = arith.constant 0.707106769 : f32
    %47 = vector.broadcast %cst_18 : f32 to vector<16x512xf32>
    %48 = arith.mulf %44, %47 : vector<16x512xf32>
    %cst_19 = arith.constant 0.000000e+00 : f32
    %49 = vector.broadcast %cst_19 : f32 to vector<16x512xf32>
    %50 = arith.cmpf olt, %48, %49 : vector<16x512xf32>
    %cst_20 = arith.constant -1.000000e+00 : f32
    %cst_21 = arith.constant 1.000000e+00 : f32
    %51 = vector.broadcast %cst_20 : f32 to vector<16x512xf32>
    %52 = vector.broadcast %cst_21 : f32 to vector<16x512xf32>
    %53 = arith.select %50, %51, %52 : vector<16x512xi1>, vector<16x512xf32>
    %54 = math.absf %48 : vector<16x512xf32>
    %cst_22 = arith.constant 0.327591091 : f32
    %55 = vector.broadcast %cst_22 : f32 to vector<16x512xf32>
    %56 = arith.mulf %55, %54 : vector<16x512xf32>
    %cst_23 = arith.constant 1.000000e+00 : f32
    %57 = vector.broadcast %cst_23 : f32 to vector<16x512xf32>
    %58 = arith.addf %57, %56 : vector<16x512xf32>
    %59 = tpu.reciprocal %58 {approx = true} : vector<16x512xf32> -> vector<16x512xf32>
    %cst_24 = arith.constant 1.06140542 : f32
    %60 = vector.broadcast %cst_24 : f32 to vector<16x512xf32>
    %61 = arith.mulf %60, %59 : vector<16x512xf32>
    %cst_25 = arith.constant -1.45315206 : f32
    %62 = vector.broadcast %cst_25 : f32 to vector<16x512xf32>
    %63 = arith.addf %61, %62 : vector<16x512xf32>
    %64 = arith.mulf %63, %59 : vector<16x512xf32>
    %cst_26 = arith.constant 1.42141378 : f32
    %65 = vector.broadcast %cst_26 : f32 to vector<16x512xf32>
    %66 = arith.addf %64, %65 : vector<16x512xf32>
    %67 = arith.mulf %66, %59 : vector<16x512xf32>
    %cst_27 = arith.constant -0.284496725 : f32
    %68 = vector.broadcast %cst_27 : f32 to vector<16x512xf32>
    %69 = arith.addf %67, %68 : vector<16x512xf32>
    %70 = arith.mulf %69, %59 : vector<16x512xf32>
    %cst_28 = arith.constant 0.254829586 : f32
    %71 = vector.broadcast %cst_28 : f32 to vector<16x512xf32>
    %72 = arith.addf %70, %71 : vector<16x512xf32>
    %73 = arith.mulf %72, %59 : vector<16x512xf32>
    %cst_29 = arith.constant 0.000000e+00 : f32
    %74 = vector.broadcast %cst_29 : f32 to vector<16x512xf32>
    %75 = arith.subf %74, %54 : vector<16x512xf32>
    %76 = arith.mulf %75, %54 : vector<16x512xf32>
    %77 = math.exp %76 : vector<16x512xf32>
    %78 = arith.mulf %73, %77 : vector<16x512xf32>
    %cst_30 = arith.constant 1.000000e+00 : f32
    %79 = vector.broadcast %cst_30 : f32 to vector<16x512xf32>
    %80 = arith.subf %79, %78 : vector<16x512xf32>
    %81 = arith.mulf %53, %80 : vector<16x512xf32>
    %cst_31 = arith.constant 1.000000e+00 : f32
    %82 = vector.broadcast %cst_31 : f32 to vector<16x512xf32>
    %83 = arith.addf %82, %81 : vector<16x512xf32>
    %84 = arith.mulf %46, %83 : vector<16x512xf32>
    %85 = arith.truncf %84 : vector<16x512xf32> to vector<16x512xbf16>
    %cst_32 = arith.constant dense<0.000000e+00> : vector<16x512xf32>
    %86 = tpu.matmul %85, %8, %cst_32 {dimension_numbers = #tpu.dot_dimension_numbers<[1], [0], [0], [1], [0, 0, 1, 1], [], []>} : vector<16x512xbf16>, vector<512x512xbf16>, vector<16x512xf32> -> vector<16x512xf32>
    %87 = arith.index_cast %arg1 : i32 to index
    %c0_33 = arith.constant 0 : index
    %c0_34 = arith.constant 0 : index
    %88 = vector.load %arg8[%87, %c0_33, %c0_34] : memref<2x1x512xf32, #tpu.memory_space<vmem>>, vector<1x1x512xf32>
    %89 = vector.shape_cast %88 : vector<1x1x512xf32> to vector<1x512xf32>
    %90 = vector.broadcast %89 : vector<1x512xf32> to vector<16x512xf32>
    %91 = arith.addf %86, %90 : vector<16x512xf32>
    %92 = arith.addf %9, %91 : vector<16x512xf32>
    %c0_35 = arith.constant 0 : index
    %c0_36 = arith.constant 0 : index
    %93 = vector.load %arg12[%c0_35, %c0_36] : memref<16x512xf32, #tpu.memory_space<vmem>>, vector<16x512xf32>
    tpu.vector_store %arg12[%c0_35, %c0_36], %92 {strides = array<i32>} : memref<16x512xf32, #tpu.memory_space<vmem>>, vector<16x512xf32>,
    %c1_i32 = arith.constant 1 : i32
    %94 = arith.cmpi eq, %arg1, %c1_i32 : i32
    %95 = arith.extui %94 : i1 to i32
    %c0_i32_37 = arith.constant 0 : i32
    %96 = arith.cmpi ne, %95, %c0_i32_37 : i32
    scf.if %96 {
      %c0_38 = arith.constant 0 : index
      %c0_39 = arith.constant 0 : index
      %97 = vector.load %arg12[%c0_38, %c0_39] : memref<16x512xf32, #tpu.memory_space<vmem>>, vector<16x512xf32>
      %98 = arith.truncf %97 : vector<16x512xf32> to vector<16x512xbf16>
      %c0_40 = arith.constant 0 : index
      %c0_41 = arith.constant 0 : index
      %99 = vector.load %arg9[%c0_40, %c0_41] : memref<512x128xbf16, #tpu.memory_space<vmem>>, vector<512x128xbf16>
      %cst_42 = arith.constant dense<0.000000e+00> : vector<16x128xf32>
      %100 = tpu.matmul %98, %99, %cst_42 {dimension_numbers = #tpu.dot_dimension_numbers<[1], [0], [0], [1], [0, 0, 1, 1], [], []>} : vector<16x512xbf16>, vector<512x128xbf16>, vector<16x128xf32> -> vector<16x128xf32>
      %c0_43 = arith.constant 0 : index
      %c0_44 = arith.constant 0 : index
      %101 = vector.load %arg10[%c0_43, %c0_44] : memref<1x128xf32, #tpu.memory_space<vmem>>, vector<1x128xf32>
      %102 = vector.broadcast %101 : vector<1x128xf32> to vector<16x128xf32>
      %103 = arith.addf %100, %102 : vector<16x128xf32>
      %c0_45 = arith.constant 0 : index
      %c0_46 = arith.constant 0 : index
      %104 = vector.load %arg11[%c0_45, %c0_46] : memref<16x128xf32, #tpu.memory_space<vmem>>, vector<16x128xf32>
      tpu.vector_store %arg11[%c0_45, %c0_46], %103 {strides = array<i32>} : memref<16x128xf32, #tpu.memory_space<vmem>>, vector<16x128xf32>,
    } else {
    }
    return
  }
  func.func @transform_0(%arg0: i32, %arg1: i32) -> (i32, i32) {
    %c0_i32 = arith.constant 0 : i32
    %c0_i32_0 = arith.constant 0 : i32
    return %arg0, %c0_i32 : i32, i32
  }
  func.func @transform_1(%arg0: i32, %arg1: i32) -> (i32, i32, i32) {
    %c0_i32 = arith.constant 0 : i32
    %c0_i32_0 = arith.constant 0 : i32
    %c0_i32_1 = arith.constant 0 : i32
    %c0_i32_2 = arith.constant 0 : i32
    return %c0_i32, %c0_i32_0, %c0_i32_1 : i32, i32, i32
  }
  func.func @transform_2(%arg0: i32, %arg1: i32) -> (i32, i32, i32) {
    %c0_i32 = arith.constant 0 : i32
    %c0_i32_0 = arith.constant 0 : i32
    %c0_i32_1 = arith.constant 0 : i32
    %c0_i32_2 = arith.constant 0 : i32
    return %c0_i32, %c0_i32_0, %c0_i32_1 : i32, i32, i32
  }
  func.func @transform_3(%arg0: i32, %arg1: i32) -> (i32, i32, i32) {
    %c0_i32 = arith.constant 0 : i32
    %c0_i32_0 = arith.constant 0 : i32
    %c0_i32_1 = arith.constant 0 : i32
    %c0_i32_2 = arith.constant 0 : i32
    return %c0_i32, %c0_i32_0, %c0_i32_1 : i32, i32, i32
  }
  func.func @transform_4(%arg0: i32, %arg1: i32) -> (i32, i32, i32) {
    %c0_i32 = arith.constant 0 : i32
    %c0_i32_0 = arith.constant 0 : i32
    %c0_i32_1 = arith.constant 0 : i32
    %c0_i32_2 = arith.constant 0 : i32
    return %c0_i32, %c0_i32_0, %c0_i32_1 : i32, i32, i32
  }
  func.func @transform_5(%arg0: i32, %arg1: i32) -> (i32, i32, i32) {
    %c0_i32 = arith.constant 0 : i32
    %c0_i32_0 = arith.constant 0 : i32
    %c0_i32_1 = arith.constant 0 : i32
    %c0_i32_2 = arith.constant 0 : i32
    return %c0_i32, %c0_i32_0, %c0_i32_1 : i32, i32, i32
  }
  func.func @transform_6(%arg0: i32, %arg1: i32) -> (i32, i32, i32) {
    %c0_i32 = arith.constant 0 : i32
    %c0_i32_0 = arith.constant 0 : i32
    %c0_i32_1 = arith.constant 0 : i32
    %c0_i32_2 = arith.constant 0 : i32
    return %c0_i32, %c0_i32_0, %c0_i32_1 : i32, i32, i32
  }
  func.func @transform_7(%arg0: i32, %arg1: i32) -> (i32, i32) {
    %c0_i32 = arith.constant 0 : i32
    %c0_i32_0 = arith.constant 0 : i32
    %c0_i32_1 = arith.constant 0 : i32
    return %c0_i32, %c0_i32_0 : i32, i32
  }
  func.func @transform_8(%arg0: i32, %arg1: i32) -> (i32, i32) {
    %c0_i32 = arith.constant 0 : i32
    %c0_i32_0 = arith.constant 0 : i32
    %c0_i32_1 = arith.constant 0 : i32
    return %c0_i32, %c0_i32_0 : i32, i32
  }
  func.func @transform_9(%arg0: i32, %arg1: i32) -> (i32, i32) {
    %c0_i32 = arith.constant 0 : i32
    %c0_i32_0 = arith.constant 0 : i32
    return %arg0, %c0_i32 : i32, i32
  }
}

</mosaic_0001>

<bundles_post_ra>
// kernel: conformer_encoder_forward.4
= control target key start
LH: loop header
LB: loop body
LE: loop exit
PB: predicated region body
PF: predicated region fallthrough
CT: control target
= control target key end

     0   :  { %s371_s12 = smov 0   ;;  %s394_s0 = inlined_call_operand.vmem [shape: f32[2,32,8], index: 0, kind: input, shape index: {}]   ;;  %s395_s1 = inlined_call_operand.vmem [shape: bf16[8,128], index: 1, kind: input, shape index: {}]   ;;  %s396_s2 = inlined_call_operand.vmem [shape: f32[1,128], index: 2, kind: input, shape index: {}]   ;;  %s397_s3 = inlined_call_operand.vmem [shape: f32[2,32,128], index: 3, kind: output, shape index: {}]  }
   0x1 LB: > { %s309_s13 = sadd.s32 4294967295, %s349_s12   ;;  %p313_p0 = scmp.ge.s32.totalorder %s349_s12, 1  ;;  %s349_s12 = sphi %s371_s12, %s13_s12  }
   0x2   : > { %p137_p1 = scmp.lt.s32.totalorder %s349_s12, 3 }
   0x4   : > { %p138_p2 = pnand %p313_p0, %p137_p1 }
   0x5   : > { %p161_p3 = scmp.lt.s32.totalorder (!%p138_p2), %s309_s13, 1 }
   0x6   : > { %141 = sbr.rel (%p138_p2) target bundleno = 222 (0xde), region = 32 }
   0xb   : > { %v178_v0 = vld [vmem:[%s395_s1] sm:$0xf]  ;;  %vm193_vm0 = vcmask 1043456   ;;  %s399_s13 = smov (!%p161_p3, %s309_s13), 1  ;;  %vm186_vm1 = vcmask 64512  }
   0xc   : > { %334 = vmatprep.subr.msk.bf16.mxu0 %vm193_vm0, %v178_v0  ;;  %v195_v1 = vsel %vm193_vm0, %v178_v0, 0  ;;  %s323_s16 = sshll.u32 %s399_s13, 5  ;;  %v318_v8 = vld [vmem:[%s396_s2] ss:$0 sm:$0xff] }
   0xd   : > { %329 = vmatpush3.bf16.msra.mxu0 %v195_v1  ;;  %s165_s19 = scalar_lea.vmem %s394_s0, %s323_s16  ;;  %s170_s24 = scalar_lea.vmem %s397_s3, %s323_s16 }
   0xe   : > { %v172_v2 = vld [vmem:[%s165_s19] sm:$0xff]  ;;  %v173_v3 = vld [vmem:[%s165_s19 + $0x8] sm:$0xff]  ;;  %v174_v4 = vld [vmem:[%s165_s19 + $0x10] sm:$0xff] }
   0xf   : > { %v176_v5 = vpack.c.bf16 %v173_v3, %v172_v2  ;;  %v175_v6 = vld [vmem:[%s165_s19 + $0x18] sm:$0xff] }
  0x10   : > { %v177_v7 = vpack.c.bf16 %v175_v6, %v174_v4 }
  0x11   : > { %330 = vmatprep.mubr.msk.bf16.mxu0 %vm186_vm1, %v176_v5 }
  0x12   : > { %331 = vmatmul.mubr.msk.bf16.vlgmr.msra.gmra.mxu0 %vm186_vm1, %v177_v7 }
  0xd2   : > { %v332_v9 = vpop.f32.mrf.mxu0 }
  0xd3   : > { %v240_v10 = vadd.f32 %v332_v9, %v318_v8 }
  0xd4   : > { %v231_v11 = vpop.f32.mrf.mxu0 }
  0xd5   : > { %v248_v12 = vmax.f32 %v240_v10, 0.0  ;;  %v232_v13 = vadd.f32 %v318_v8, %v231_v11 }
  0xd6   : > { %v333_v14 = vpop.f32.mrf.mxu0 }
  0xd7   : > { %252 = vst [vmem:[%s170_s24 + $0x10] sm:$0xff] %v248_v12  ;;  %v246_v15 = vmax.f32 %v232_v13, 0.0  ;;  %v243_v16 = vadd.f32 %v333_v14, %v318_v8 }
  0xd8   : > { %v234_v17 = vpop.f32.mrf.mxu0 }
  0xd9   : > { %250 = vst [vmem:[%s170_s24] sm:$0xff] %v246_v15  ;;  %v249_v18 = vmax.f32 %v243_v16, 0.0  ;;  %v235_v19 = vadd.f32 %v318_v8, %v234_v17 }
  0xdb   : > { %253 = vst [vmem:[%s170_s24 + $0x18] sm:$0xff] %v249_v18  ;;  %v247_v20 = vmax.f32 %v235_v19, 0.0 }
  0xdd   : > { %251 = vst [vmem:[%s170_s24 + $0x8] sm:$0xff] %v247_v20 }
  0xde PF: > { %s13_s12 = sadd.s32 1, %s349_s12  }
  0xdf   : > { %p10_p4 = scmp.ge.s32.totalorder %s13_s12, 4  }
  0xe1   :  { %12 = sbr.rel (!%p10_p4) target bundleno = 1 (0x1), region = 62 }

// kernel: conformer_encoder_forward.5
= control target key start
LH: loop header
LB: loop body
LE: loop exit
PB: predicated region body
PF: predicated region fallthrough
CT: control target
= control target key end

     0   :  { %s1401_s12 = smov 0   ;;  %s1748_s0 = inlined_call_operand.vmem [shape: f32[2,24,256], index: 0, kind: input, shape index: {}]   ;;  %s1749_s1 = inlined_call_operand.vmem [shape: bf16[3,256,256], index: 1, kind: input, shape index: {}]   ;;  %s1750_s2 = inlined_call_operand.vmem [shape: f32[1,256], index: 2, kind: input, shape index: {}]   ;;  %s1751_s3 = inlined_call_operand.vmem [shape: f32[2,16,256], index: 3, kind: output, shape index: {}]  }
   0x1 LB: > { %s1017_s13 = sadd.s32 4294967295, %s1379_s12   ;;  %p1021_p0 = scmp.ge.s32.totalorder %s1379_s12, 1  ;;  %s1379_s12 = sphi %s1401_s12, %s13_s12  }
   0x2   : > { %p137_p1 = scmp.lt.s32.totalorder %s1379_s12, 3 }
   0x4   : > { %p138_p2 = pnand %p1021_p0, %p137_p1 }
   0x5   : > { %p161_p3 = scmp.lt.s32.totalorder (!%p138_p2), %s1017_s13, 1 }
   0x6   : > { %141 = sbr.rel (%p138_p2) target bundleno = 348 (0x15c), region = 32 }
   0xb   : > { %v1229_v0 = vld [vmem:[%s1749_s1 + $0x174] ss:$8 sps:$4 sm:$0xff]   ;;  %v1233_v2 = vld [vmem:[%s1749_s1 + $0x170] ss:$8 sps:$4 sm:$0xff]   ;;  %v1235_v4 = vld [vmem:[%s1749_s1 + $0x164] ss:$8 sps:$4 sm:$0xff]  }
   0xc   : > { %v1231_v1 = vld [vmem:[%s1749_s1 + $0x274] ss:$8 sps:$4 sm:$0xff]   ;;  %406 = vmatprep.subr.bf16.mxu0 %v1229_v0  ;;  %v1234_v3 = vld [vmem:[%s1749_s1 + $0x270] ss:$8 sps:$4 sm:$0xff]   ;;  %v1237_v5 = vld [vmem:[%s1749_s1 + $0x264] ss:$8 sps:$4 sm:$0xff]  }
   0xd   : > { %650 = vmatprep.subr.bf16.mxu1 %v1231_v1  ;;  %407 = vmatpush1.bf16.msra.mxu0 %v1233_v2  ;;  %v1239_v6 = vld [vmem:[%s1749_s1 + $0x160] ss:$8 sps:$4 sm:$0xff]   ;;  %v1241_v8 = vld [vmem:[%s1749_s1 + $0x154] ss:$8 sps:$4 sm:$0xff]   ;;  %v1245_v10 = vld [vmem:[%s1749_s1 + $0x150] ss:$8 sps:$4 sm:$0xff]  }
   0xe   : > { %651 = vmatpush1.bf16.msra.mxu1 %v1234_v3  ;;  %408 = vmatprep.subr.bf16.mxu0 %v1235_v4  ;;  %v1240_v7 = vld [vmem:[%s1749_s1 + $0x260] ss:$8 sps:$4 sm:$0xff]   ;;  %v1243_v9 = vld [vmem:[%s1749_s1 + $0x254] ss:$8 sps:$4 sm:$0xff]   ;;  %v1246_v11 = vld [vmem:[%s1749_s1 + $0x250] ss:$8 sps:$4 sm:$0xff]  }
   0xf   : > { %652 = vmatprep.subr.bf16.mxu1 %v1237_v5  ;;  %v1247_v12 = vld [vmem:[%s1749_s1 + $0x144] ss:$8 sps:$4 sm:$0xff]   ;;  %v1251_v14 = vld [vmem:[%s1749_s1 + $0x140] ss:$8 sps:$4 sm:$0xff]   ;;  %v1253_v16 = vld [vmem:[%s1749_s1 + $0x134] ss:$8 sps:$4 sm:$0xff]  }
  0x10   : > { %v1249_v13 = vld [vmem:[%s1749_s1 + $0x244] ss:$8 sps:$4 sm:$0xff]   ;;  %v1252_v15 = vld [vmem:[%s1749_s1 + $0x240] ss:$8 sps:$4 sm:$0xff]   ;;  %v1255_v17 = vld [vmem:[%s1749_s1 + $0x234] ss:$8 sps:$4 sm:$0xff]  }
  0x11   : > { %409 = vmatpush1.bf16.msra.mxu0 %v1239_v6  ;;  %v1257_v18 = vld [vmem:[%s1749_s1 + $0x130] ss:$8 sps:$4 sm:$0xff]   ;;  %v1259_v20 = vld [vmem:[%s1749_s1 + $0x124] ss:$8 sps:$4 sm:$0xff]   ;;  %v1263_v22 = vld [vmem:[%s1749_s1 + $0x120] ss:$8 sps:$4 sm:$0xff]  }
  0x12   : > { %653 = vmatpush1.bf16.msra.mxu1 %v1240_v7  ;;  %410 = vmatprep.subr.bf16.mxu0 %v1241_v8  ;;  %v1258_v19 = vld [vmem:[%s1749_s1 + $0x230] ss:$8 sps:$4 sm:$0xff]   ;;  %v1261_v21 = vld [vmem:[%s1749_s1 + $0x224] ss:$8 sps:$4 sm:$0xff]   ;;  %v1264_v23 = vld [vmem:[%s1749_s1 + $0x220] ss:$8 sps:$4 sm:$0xff]  }
  0x13   : > { %654 = vmatprep.subr.bf16.mxu1 %v1243_v9  ;;  %v1265_v24 = vld [vmem:[%s1749_s1 + $0x114] ss:$8 sps:$4 sm:$0xff]   ;;  %v1269_v26 = vld [vmem:[%s1749_s1 + $0x110] ss:$8 sps:$4 sm:$0xff]   ;;  %v1271_v28 = vld [vmem:[%s1749_s1 + $0x104] ss:$8 sps:$4 sm:$0xff]  }
  0x14   : > { %v1267_v25 = vld [vmem:[%s1749_s1 + $0x214] ss:$8 sps:$4 sm:$0xff]   ;;  %v1270_v27 = vld [vmem:[%s1749_s1 + $0x210] ss:$8 sps:$4 sm:$0xff]   ;;  %v1273_v29 = vld [vmem:[%s1749_s1 + $0x204] ss:$8 sps:$4 sm:$0xff]  }
  0x15   : > { %411 = vmatpush1.bf16.msra.mxu0 %v1245_v10  ;;  %v1275_v30 = vld [vmem:[%s1749_s1 + $0x100] ss:$8 sps:$4 sm:$0xff]   ;;  %v1277_v32 = vld [vmem:[%s1749_s1 + $0x1f4] ss:$8 sps:$4 sm:$0xff]   ;;  %v1281_v34 = vld [vmem:[%s1749_s1 + $0x1f0] ss:$8 sps:$4 sm:$0xff]  }
  0x16   : > { %655 = vmatpush1.bf16.msra.mxu1 %v1246_v11  ;;  %412 = vmatprep.subr.bf16.mxu0 %v1247_v12  ;;  %v1276_v31 = vld [vmem:[%s1749_s1 + $0x200] ss:$8 sps:$4 sm:$0xff]   ;;  %v1279_v33 = vld [vmem:[%s1749_s1 + $0x2f4] ss:$8 sps:$4 sm:$0xff]   ;;  %v1282_v35 = vld [vmem:[%s1749_s1 + $0x2f0] ss:$8 sps:$4 sm:$0xff]  }
  0x17   : > { %656 = vmatprep.subr.bf16.mxu1 %v1249_v13  ;;  %s1753_s13 = smov (!%p161_p3, %s1017_s13), 1  ;;  %v1283_v36 = vld [vmem:[%s1749_s1 + $0x1e4] ss:$8 sps:$4 sm:$0xff]   ;;  %v1287_v38 = vld [vmem:[%s1749_s1 + $0x1e0] ss:$8 sps:$4 sm:$0xff]  }
  0x18   : > { %v1285_v37 = vld [vmem:[%s1749_s1 + $0x2e4] ss:$8 sps:$4 sm:$0xff]   ;;  %s1220_s17 = smul.u32 48, %s1753_s13  ;;  %v1288_v39 = vld [vmem:[%s1749_s1 + $0x2e0] ss:$8 sps:$4 sm:$0xff]   ;;  %s1187_s11 = sshll.u32 %s1753_s13, 5 }
  0x19   : > { %413 = vmatpush1.bf16.msra.mxu0 %v1251_v14  ;;  %v1289_v40 = vld [vmem:[%s1749_s1 + $0x1d4] ss:$8 sps:$4 sm:$0xff]   ;;  %v1293_v42 = vld [vmem:[%s1749_s1 + $0x1d0] ss:$8 sps:$4 sm:$0xff]   ;;  %v1295_v44 = vld [vmem:[%s1749_s1 + $0x1c4] ss:$8 sps:$4 sm:$0xff]   ;;  %s170_s16 = scalar_lea.vmem %s1751_s3, %s1187_s11 }
  0x1a   : > { %657 = vmatpush1.bf16.msra.mxu1 %v1252_v15  ;;  %414 = vmatprep.subr.bf16.mxu0 %v1253_v16  ;;  %v1291_v41 = vld [vmem:[%s1749_s1 + $0x2d4] ss:$8 sps:$4 sm:$0xff]   ;;  %v1294_v43 = vld [vmem:[%s1749_s1 + $0x2d0] ss:$8 sps:$4 sm:$0xff]   ;;  %s1551_s30 = scalar_lea.vmem %s1748_s0, %s1220_s17  ;;  %v1297_v45 = vld [vmem:[%s1749_s1 + $0x2c4] ss:$8 sps:$4 sm:$0xff]  }
  0x1b   : > { %658 = vmatprep.subr.bf16.mxu1 %v1255_v17  ;;  %v172_v46 = vld [vmem:[%s1551_s30 + $0x8] sm:$0xff]  ;;  %v174_v49 = vld [vmem:[%s1551_s30 + $0x18] sm:$0xff]  ;;  %v171_v3 = vld [vmem:[%s1551_s30] sm:$0xff] }
  0x1c   : > { %v1299_v47 = vld [vmem:[%s1749_s1 + $0x1c0] ss:$8 sps:$4 sm:$0xff]   ;;  %v1301_v50 = vld [vmem:[%s1749_s1 + $0x1b4] ss:$8 sps:$4 sm:$0xff]   ;;  %v1570_v51 = vpack.c.bf16 %v174_v49, %v172_v46  ;;  %v1305_v53 = vld [vmem:[%s1749_s1 + $0x1b0] ss:$8 sps:$4 sm:$0xff]  }
  0x1d   : > { %415 = vmatpush1.bf16.msra.mxu0 %v1257_v18  ;;  %v1300_v48 = vld [vmem:[%s1749_s1 + $0x2c0] ss:$8 sps:$4 sm:$0xff]   ;;  %v1303_v52 = vld [vmem:[%s1749_s1 + $0x2b4] ss:$8 sps:$4 sm:$0xff]   ;;  %v1306_v54 = vld [vmem:[%s1749_s1 + $0x2b0] ss:$8 sps:$4 sm:$0xff]  }
  0x1e   : > { %659 = vmatpush1.bf16.msra.mxu1 %v1258_v19  ;;  %416 = vmatprep.subr.bf16.mxu0 %v1259_v20  ;;  %v1307_v55 = vld [vmem:[%s1749_s1 + $0x1a4] ss:$8 sps:$4 sm:$0xff]   ;;  %v1311_v57 = vld [vmem:[%s1749_s1 + $0x1a0] ss:$8 sps:$4 sm:$0xff]   ;;  %v1313_v59 = vld [vmem:[%s1749_s1 + $0x194] ss:$8 sps:$4 sm:$0xff]  }
  0x1f   : > { %660 = vmatprep.subr.bf16.mxu1 %v1261_v21  ;;  %438 = vmatprep.mubr.bf16.mxu0 %v1570_v51  ;;  %v1309_v56 = vld [vmem:[%s1749_s1 + $0x2a4] ss:$8 sps:$4 sm:$0xff]   ;;  %v1312_v58 = vld [vmem:[%s1749_s1 + $0x2a0] ss:$8 sps:$4 sm:$0xff]   ;;  %v1315_v60 = vld [vmem:[%s1749_s1 + $0x294] ss:$8 sps:$4 sm:$0xff]  }
  0x20   : > { %682 = vmatprep.mubr.bf16.mxu1 %v1570_v51  ;;  %v1317_v61 = vld [vmem:[%s1749_s1 + $0x190] ss:$8 sps:$4 sm:$0xff]   ;;  %v1319_v63 = vld [vmem:[%s1749_s1 + $0x184] ss:$8 sps:$4 sm:$0xff]   ;;  %v1323_v1 = vld [vmem:[%s1749_s1 + $0x180] ss:$8 sps:$4 sm:$0xff]  }
  0x21   : > { %417 = vmatpush1.bf16.msra.mxu0 %v1263_v22  ;;  %v1318_v62 = vld [vmem:[%s1749_s1 + $0x290] ss:$8 sps:$4 sm:$0xff]   ;;  %v1321_v0 = vld [vmem:[%s1749_s1 + $0x284] ss:$8 sps:$4 sm:$0xff]   ;;  %v1324_v2 = vld [vmem:[%s1749_s1 + $0x280] ss:$8 sps:$4 sm:$0xff]  }
  0x22   : > { %661 = vmatpush1.bf16.msra.mxu1 %v1264_v23  ;;  %418 = vmatprep.subr.bf16.mxu0 %v1265_v24  ;;  %v173_v4 = vld [vmem:[%s1551_s30 + $0x10] sm:$0xff]  ;;  %v176_v6 = vld [vmem:[%s1551_s30 + $0x28] sm:$0xff]  ;;  %v175_v12 = vld [vmem:[%s1551_s30 + $0x20] sm:$0xff] }
  0x23   : > { %662 = vmatprep.subr.bf16.mxu1 %v1267_v25  ;;  %v1327_v5 = vld [vmem:[%s1749_s1 + $0x74] ss:$8 sps:$4 sm:$0xff]   ;;  %v1625_v7 = vpack.c.bf16 %v173_v4, %v171_v3  ;;  %v1325_v8 = vld [vmem:[%s1749_s1 + $0x70] ss:$8 sps:$4 sm:$0xff]   ;;  %v1330_v9 = vld [vmem:[%s1749_s1 + $0x64] ss:$8 sps:$4 sm:$0xff]   ;;  %v180_v10 = vpack.c.bf16 %v176_v6, %v176_v6  ;;  %v1642_v14 = vpack.c.bf16 %v175_v12, %v175_v12 }
  0x24   : > { %v1328_v11 = vld [vmem:[%s1749_s1 + $0x60] ss:$8 sps:$4 sm:$0xff]   ;;  %v1333_v13 = vld [vmem:[%s1749_s1 + $0x54] ss:$8 sps:$4 sm:$0xff]   ;;  %v1331_v15 = vld [vmem:[%s1749_s1 + $0x50] ss:$8 sps:$4 sm:$0xff]  }
  0x25   : > { %419 = vmatpush1.bf16.msra.mxu0 %v1269_v26  ;;  %v1336_v16 = vld [vmem:[%s1749_s1 + $0x44] ss:$8 sps:$4 sm:$0xff]   ;;  %v1334_v17 = vld [vmem:[%s1749_s1 + $0x40] ss:$8 sps:$4 sm:$0xff]   ;;  %v1339_v18 = vld [vmem:[%s1749_s1 + $0x34] ss:$8 sps:$4 sm:$0xff]  }
  0x26   : > { %663 = vmatpush1.bf16.msra.mxu1 %v1270_v27  ;;  %420 = vmatprep.subr.bf16.mxu0 %v1271_v28  ;;  %v1337_v19 = vld [vmem:[%s1749_s1 + $0x30] ss:$8 sps:$4 sm:$0xff]   ;;  %v1342_v20 = vld [vmem:[%s1749_s1 + $0x24] ss:$8 sps:$4 sm:$0xff]   ;;  %v1340_v21 = vld [vmem:[%s1749_s1 + $0x20] ss:$8 sps:$4 sm:$0xff]  }
  0x27   : > { %664 = vmatprep.subr.bf16.mxu1 %v1273_v29  ;;  %v1345_v22 = vld [vmem:[%s1749_s1 + $0x14] ss:$8 sps:$4 sm:$0xff]   ;;  %v1343_v23 = vld [vmem:[%s1749_s1 + $0x10] ss:$8 sps:$4 sm:$0xff]   ;;  %v1348_v24 = vld [vmem:[%s1749_s1 + $0x4] ss:$8 sps:$4 sm:$0xff]  }
  0x28   : > { %v1346_v25 = vld [vmem:[%s1749_s1] ss:$8 sps:$4 sm:$0xff]   ;;  %v1351_v26 = vld [vmem:[%s1749_s1 + $0xf4] ss:$8 sps:$4 sm:$0xff]   ;;  %v1349_v27 = vld [vmem:[%s1749_s1 + $0xf0] ss:$8 sps:$4 sm:$0xff]  }
  0x29   : > { %421 = vmatpush1.bf16.msra.mxu0 %v1275_v30  ;;  %v1354_v28 = vld [vmem:[%s1749_s1 + $0xe4] ss:$8 sps:$4 sm:$0xff]   ;;  %v1352_v29 = vld [vmem:[%s1749_s1 + $0xe0] ss:$8 sps:$4 sm:$0xff]   ;;  %v1357_v30 = vld [vmem:[%s1749_s1 + $0xd4] ss:$8 sps:$4 sm:$0xff]  }
  0x2a   : > { %665 = vmatpush1.bf16.msra.mxu1 %v1276_v31  ;;  %422 = vmatprep.subr.bf16.mxu0 %v1277_v32  ;;  %v1355_v31 = vld [vmem:[%s1749_s1 + $0xd0] ss:$8 sps:$4 sm:$0xff]   ;;  %v1360_v32 = vld [vmem:[%s1749_s1 + $0xc4] ss:$8 sps:$4 sm:$0xff]  }
  0x2b   : > { %666 = vmatprep.subr.bf16.mxu1 %v1279_v33  ;;  %v1358_v33 = vld [vmem:[%s1749_s1 + $0xc0] ss:$8 sps:$4 sm:$0xff]  }
  0x2d   : > { %423 = vmatpush2.bf16.msra.mxu0 %v1281_v34  ;;  %v1363_v34 = vld [vmem:[%s1749_s1 + $0xb4] ss:$8 sps:$4 sm:$0xff]  }
  0x2e   : > { %667 = vmatpush2.bf16.msra.mxu1 %v1282_v35  ;;  %424 = vmatprep.subr.bf16.mxu0 %v1283_v36  ;;  %v1361_v35 = vld [vmem:[%s1749_s1 + $0xb0] ss:$8 sps:$4 sm:$0xff]   ;;  %v1366_v36 = vld [vmem:[%s1749_s1 + $0xa4] ss:$8 sps:$4 sm:$0xff]  }
  0x2f   : > { %668 = vmatprep.subr.bf16.mxu1 %v1285_v37  ;;  %v1364_v37 = vld [vmem:[%s1749_s1 + $0xa0] ss:$8 sps:$4 sm:$0xff]  }
  0x31   : > { %425 = vmatpush2.bf16.msra.mxu0 %v1287_v38  ;;  %v1369_v38 = vld [vmem:[%s1749_s1 + $0x94] ss:$8 sps:$4 sm:$0xff]  }
  0x32   : > { %669 = vmatpush2.bf16.msra.mxu1 %v1288_v39  ;;  %426 = vmatprep.subr.bf16.mxu0 %v1289_v40  ;;  %v1367_v39 = vld [vmem:[%s1749_s1 + $0x90] ss:$8 sps:$4 sm:$0xff]   ;;  %v1372_v40 = vld [vmem:[%s1749_s1 + $0x84] ss:$8 sps:$4 sm:$0xff]  }
  0x33   : > { %670 = vmatprep.subr.bf16.mxu1 %v1291_v41  ;;  %v1370_v41 = vld [vmem:[%s1749_s1 + $0x80] ss:$8 sps:$4 sm:$0xff]  }
  0x35   : > { %427 = vmatpush2.bf16.msra.mxu0 %v1293_v42 }
  0x36   : > { %671 = vmatpush2.bf16.msra.mxu1 %v1294_v43  ;;  %428 = vmatprep.subr.bf16.mxu0 %v1295_v44 }
  0x37   : > { %672 = vmatprep.subr.bf16.mxu1 %v1297_v45 }
  0x39   : > { %429 = vmatpush2.bf16.msra.mxu0 %v1299_v47 }
  0x3a   : > { %673 = vmatpush2.bf16.msra.mxu1 %v1300_v48  ;;  %430 = vmatprep.subr.bf16.mxu0 %v1301_v50 }
  0x3b   : > { %674 = vmatprep.subr.bf16.mxu1 %v1303_v52 }
  0x3d   : > { %431 = vmatpush2.bf16.msra.mxu0 %v1305_v53 }
  0x3e   : > { %675 = vmatpush2.bf16.msra.mxu1 %v1306_v54  ;;  %432 = vmatprep.subr.bf16.mxu0 %v1307_v55 }
  0x3f   : > { %676 = vmatprep.subr.bf16.mxu1 %v1309_v56 }
  0x41   : > { %433 = vmatpush2.bf16.msra.mxu0 %v1311_v57 }
  0x42   : > { %677 = vmatpush2.bf16.msra.mxu1 %v1312_v58  ;;  %434 = vmatprep.subr.bf16.mxu0 %v1313_v59  ;;  %v707_v58 = vlaneseq }
  0x43   : > { %678 = vmatprep.subr.bf16.mxu1 %v1315_v60 }
  0x44   : > { %v708_v59 = vshrl.u32 %v707_v58, 7 }
  0x45   : > { %435 = vmatpush2.bf16.msra.mxu0 %v1317_v61 }
  0x46   : > { %679 = vmatpush2.bf16.msra.mxu1 %v1318_v62  ;;  %436 = vmatprep.subr.bf16.mxu0 %v1319_v63  ;;  %vm709_vm0 = vcmp.lt.s32.totalorder %v708_v59, 7  ;;  %v942_v61 = vsub.s32 0, %v708_v59  ;;  %vm929_vm1 = vcmp.lt.s32.totalorder %v708_v59, 6  ;;  %v946_v4 = vsub.s32 1, %v708_v59 }
  0x47   : > { %680 = vmatprep.subr.bf16.mxu1 %v1321_v0 }
  0x49   : > { %437 = vmatpush2.bf16.msra.mxu0 %v1323_v1 }
  0x4a   : > { %681 = vmatpush2.bf16.msra.mxu1 %v1324_v2  ;;  %874 = vmatprep.subr.bf16.mxu0 %v1327_v5  ;;  %v938_v2 = vld [vmem:[%s1750_s2] sm:$0x3] }
  0x4b   : > { %1188 = vmatprep.subr.bf16.mxu1 %v1327_v5  ;;  %v943_v12 = vrot.slane %v938_v2, %v942_v61 }
  0x4c   : > { %439 = vmatmul.mubr.bf16.vlgmr.msra.gmra.mxu0 %v1625_v7 }
  0x4d   : > { %683 = vmatmul.mubr.bf16.vlgmr.msra.gmra.mxu1 %v1625_v7  ;;  %875 = vmatpush1.bf16.msra.mxu0 %v1325_v8 }
  0x4e   : > { %1204 = vmatpush1.bf16.msra.mxu1 %v1325_v8  ;;  %876 = vmatprep.subr.bf16.mxu0 %v1330_v9 }
  0x4f   : > { %448 = vmatprep.mubr.bf16.mxu0 %v180_v10  ;;  %692 = vmatprep.mubr.bf16.mxu1 %v180_v10 }
  0x50   : > { %1189 = vmatprep.subr.bf16.mxu1 %v1330_v9 }
  0x51   : > { %877 = vmatpush1.bf16.msra.mxu0 %v1328_v11 }
  0x52   : > { %1205 = vmatpush1.bf16.msra.mxu1 %v1328_v11  ;;  %878 = vmatprep.subr.bf16.mxu0 %v1333_v13 }
  0x53   : > { %1190 = vmatprep.subr.bf16.mxu1 %v1333_v13 }
  0x54   : > { %449 = vmatmul.mubr.bf16.gmra.mxu0 %v1642_v14 }
  0x55   : > { %693 = vmatmul.mubr.bf16.gmra.mxu1 %v1642_v14  ;;  %879 = vmatpush1.bf16.msra.mxu0 %v1331_v15 }
  0x56   : > { %1206 = vmatpush1.bf16.msra.mxu1 %v1331_v15  ;;  %880 = vmatprep.subr.bf16.mxu0 %v1336_v16 }
  0x57   : > { %1191 = vmatprep.subr.bf16.mxu1 %v1336_v16  ;;  %906 = vmatprep.mubr.bf16.mxu0 %v1570_v51 }
  0x58   : > { %916 = vmatprep.mubr.bf16.mxu1 %v180_v10 }
  0x59   : > { %881 = vmatpush1.bf16.msra.mxu0 %v1334_v17 }
  0x5a   : > { %1207 = vmatpush1.bf16.msra.mxu1 %v1334_v17  ;;  %882 = vmatprep.subr.bf16.mxu0 %v1339_v18 }
  0x5b   : > { %1192 = vmatprep.subr.bf16.mxu1 %v1339_v18 }
  0x5d   : > { %883 = vmatpush1.bf16.msra.mxu0 %v1337_v19 }
  0x5e   : > { %1208 = vmatpush1.bf16.msra.mxu1 %v1337_v19  ;;  %884 = vmatprep.subr.bf16.mxu0 %v1342_v20 }
  0x5f   : > { %1193 = vmatprep.subr.bf16.mxu1 %v1342_v20 }
  0x61   : > { %885 = vmatpush1.bf16.msra.mxu0 %v1340_v21 }
  0x62   : > { %1209 = vmatpush1.bf16.msra.mxu1 %v1340_v21  ;;  %886 = vmatprep.subr.bf16.mxu0 %v1345_v22  ;;  %v947_v21 = vrot.slane %v938_v2, %v946_v4 }
  0x63   : > { %1194 = vmatprep.subr.bf16.mxu1 %v1345_v22 }
  0x65   : > { %887 = vmatpush1.bf16.msra.mxu0 %v1343_v23 }
  0x66   : > { %1210 = vmatpush1.bf16.msra.mxu1 %v1343_v23  ;;  %888 = vmatprep.subr.bf16.mxu0 %v1348_v24 }
  0x67   : > { %1195 = vmatprep.subr.bf16.mxu1 %v1348_v24 }
  0x69   : > { %889 = vmatpush1.bf16.msra.mxu0 %v1346_v25 }
  0x6a   : > { %1211 = vmatpush1.bf16.msra.mxu1 %v1346_v25  ;;  %890 = vmatprep.subr.bf16.mxu0 %v1351_v26 }
  0x6b   : > { %1196 = vmatprep.subr.bf16.mxu1 %v1351_v26 }
  0x6d   : > { %891 = vmatpush2.bf16.msra.mxu0 %v1349_v27 }
  0x6e   : > { %1212 = vmatpush2.bf16.msra.mxu1 %v1349_v27  ;;  %892 = vmatprep.subr.bf16.mxu0 %v1354_v28 }
  0x6f   : > { %1197 = vmatprep.subr.bf16.mxu1 %v1354_v28 }
  0x71   : > { %893 = vmatpush2.bf16.msra.mxu0 %v1352_v29 }
  0x72   : > { %1213 = vmatpush2.bf16.msra.mxu1 %v1352_v29  ;;  %894 = vmatprep.subr.bf16.mxu0 %v1357_v30 }
  0x73   : > { %1198 = vmatprep.subr.bf16.mxu1 %v1357_v30 }
  0x75   : > { %895 = vmatpush2.bf16.msra.mxu0 %v1355_v31 }
  0x76   : > { %1214 = vmatpush2.bf16.msra.mxu1 %v1355_v31  ;;  %896 = vmatprep.subr.bf16.mxu0 %v1360_v32 }
  0x77   : > { %1199 = vmatprep.subr.bf16.mxu1 %v1360_v32 }
  0x79   : > { %897 = vmatpush2.bf16.msra.mxu0 %v1358_v33 }
  0x7a   : > { %1215 = vmatpush2.bf16.msra.mxu1 %v1358_v33  ;;  %898 = vmatprep.subr.bf16.mxu0 %v1363_v34 }
  0x7b   : > { %1200 = vmatprep.subr.bf16.mxu1 %v1363_v34 }
  0x7d   : > { %899 = vmatpush2.bf16.msra.mxu0 %v1361_v35 }
  0x7e   : > { %1216 = vmatpush2.bf16.msra.mxu1 %v1361_v35  ;;  %900 = vmatprep.subr.bf16.mxu0 %v1366_v36 }
  0x7f   : > { %1201 = vmatprep.subr.bf16.mxu1 %v1366_v36 }
  0x81   : > { %901 = vmatpush2.bf16.msra.mxu0 %v1364_v37 }
  0x82   : > { %1217 = vmatpush2.bf16.msra.mxu1 %v1364_v37  ;;  %902 = vmatprep.subr.bf16.mxu0 %v1369_v38 }
  0x83   : > { %1202 = vmatprep.subr.bf16.mxu1 %v1369_v38 }
  0x85   : > { %903 = vmatpush2.bf16.msra.mxu0 %v1367_v39 }
  0x86   : > { %1218 = vmatpush2.bf16.msra.mxu1 %v1367_v39  ;;  %904 = vmatprep.subr.bf16.mxu0 %v1372_v40 }
  0x87   : > { %1203 = vmatprep.subr.bf16.mxu1 %v1372_v40 }
  0x89   : > { %905 = vmatpush2.bf16.msra.mxu0 %v1370_v41 }
  0x8a   : > { %1219 = vmatpush2.bf16.msra.mxu1 %v1370_v41 }
  0x8c   : > { %907 = vmatmul.mubr.bf16.vlgmr.msra.gmra.mxu0 %v1625_v7 }
  0x8d   : > { %917 = vmatmul.mubr.bf16.vlgmr.msra.gmra.mxu1 %v1642_v14 }
 0x10c   : > { %v440_v42 = vpop.f32.mrf.mxu0 }
 0x10d   : > { %v684_v43 = vpop.f32.mrf.mxu1  ;;  %v701_v62 = vrot.slane %v440_v42, 1 }
 0x10e   : > { %v442_v44 = vpop.f32.mrf.mxu0  ;;  %v923_v63 = vrot.slane %v684_v43, 2 }
 0x10f   : > { %v686_v45 = vpop.f32.mrf.mxu1  ;;  %v702_v3 = vrot.slane %v442_v44, 1 }
 0x110   : > { %v444_v46 = vpop.f32.mrf.mxu0  ;;  %v924_v5 = vrot.slane %v686_v45, 2 }
 0x111   : > { %v688_v47 = vpop.f32.mrf.mxu1  ;;  %v703_v60 = vrot.slane %v444_v46, 1 }
 0x112   : > { %v446_v48 = vpop.f32.mrf.mxu0  ;;  %v925_v0 = vrot.slane %v688_v47, 2 }
 0x113   : > { %v690_v49 = vpop.f32.mrf.mxu1  ;;  %v704_v1 = vrot.slane %v446_v48, 1  ;;  %v712_v8 = vsel %vm709_vm0, %v701_v62, %v703_v60 }
 0x114   : > { %v450_v50 = vpop.f32.mrf.mxu0  ;;  %v926_v6 = vrot.slane %v690_v49, 2  ;;  %v932_v15 = vsel %vm929_vm1, %v923_v63, %v925_v0 }
 0x115   : > { %v694_v51 = vpop.f32.mrf.mxu1  ;;  %v705_v7 = vrot.slane %v450_v50, 1  ;;  %v713_v16 = vsel %vm709_vm0, %v702_v3, %v704_v1 }
 0x116   : > { %v452_v52 = vpop.f32.mrf.mxu0  ;;  %v927_v13 = vrot.slane %v694_v51, 2  ;;  %v933_v23 = vsel %vm929_vm1, %v924_v5, %v926_v6 }
 0x117   : > { %v696_v53 = vpop.f32.mrf.mxu1  ;;  %v706_v14 = vrot.slane %v452_v52, 1  ;;  %v710_v24 = vsel %vm709_vm0, %v703_v60, %v705_v7 }
 0x118   : > { %v454_v54 = vpop.f32.mrf.mxu0  ;;  %v928_v22 = vrot.slane %v696_v53, 2  ;;  %v930_v30 = vsel %vm929_vm1, %v925_v0, %v927_v13 }
 0x119   : > { %v698_v55 = vpop.f32.mrf.mxu1  ;;  %v711_v31 = vsel %vm709_vm0, %v704_v1, %v706_v14 }
 0x11a   : > { %v455_v56 = vpop.f32.mrf.mxu0  ;;  %v931_v38 = vsel %vm929_vm1, %v926_v6, %v928_v22 }
 0x11b   : > { %v699_v57 = vpop.f32.mrf.mxu1 }
 0x14c   : > { %v908_v9 = vpop.f32.mrf.mxu0 }
 0x14d   : > { %v918_v10 = vpop.f32.mrf.mxu1  ;;  %v909_v11 = vadd.f32 %v908_v9, %v712_v8 }
 0x14e   : > { %v910_v17 = vpop.f32.mrf.mxu0 }
 0x14f   : > { %v919_v18 = vpop.f32.mrf.mxu1  ;;  %v934_v19 = vadd.f32 %v932_v15, %v909_v11  ;;  %v911_v20 = vadd.f32 %v910_v17, %v713_v16 }
 0x150   : > { %v912_v25 = vpop.f32.mrf.mxu0 }
 0x151   : > { %v920_v26 = vpop.f32.mrf.mxu1  ;;  %v950_v27 = vadd.f32 %v943_v12, %v934_v19  ;;  %v935_v28 = vadd.f32 %v933_v23, %v911_v20  ;;  %v913_v29 = vadd.f32 %v912_v25, %v710_v24 }
 0x152   : > { %v914_v32 = vpop.f32.mrf.mxu0 }
 0x153   : > { %v921_v33 = vpop.f32.mrf.mxu1  ;;  %v954_v34 = vmax.f32 %v950_v27, 0.0  ;;  %v951_v35 = vadd.f32 %v947_v21, %v935_v28  ;;  %v936_v36 = vadd.f32 %v930_v30, %v913_v29  ;;  %v915_v37 = vadd.f32 %v914_v32, %v711_v31 }
 0x155   : > { %958 = vst [vmem:[%s170_s16] sm:$0xff] %v954_v34  ;;  %v955_v39 = vmax.f32 %v951_v35, 0.0  ;;  %v952_v40 = vadd.f32 %v943_v12, %v936_v36  ;;  %v937_v41 = vadd.f32 %v931_v38, %v915_v37 }
 0x157   : > { %959 = vst [vmem:[%s170_s16 + $0x8] sm:$0xff] %v955_v39  ;;  %v956_v42 = vmax.f32 %v952_v40, 0.0  ;;  %v953_v43 = vadd.f32 %v947_v21, %v937_v41 }
 0x159   : > { %960 = vst [vmem:[%s170_s16 + $0x10] sm:$0xff] %v956_v42  ;;  %v957_v44 = vmax.f32 %v953_v43, 0.0 }
 0x15b   : > { %961 = vst [vmem:[%s170_s16 + $0x18] sm:$0xff] %v957_v44 }
 0x15c PF: > { %s13_s12 = sadd.s32 1, %s1379_s12  }
 0x15d   : > { %p10_p4 = scmp.ge.s32.totalorder %s13_s12, 4  }
 0x15f   :  { %12 = sbr.rel (!%p10_p4) target bundleno = 1 (0x1), region = 64 }

// kernel: conformer_encoder_forward.6
= control target key start
LH: loop header
LB: loop body
LE: loop exit
PB: predicated region body
PF: predicated region fallthrough
CT: control target
= control target key end

     0   :  { %s4383_s12 = smov 0   ;;  %s5662_s0 = inlined_call_operand.vmem [shape: f32[2,16,512], index: 0, kind: input, shape index: {}]   ;;  %s5663_s1 = inlined_call_operand.vmem [shape: bf16[3,512,512], index: 1, kind: input, shape index: {}]   ;;  %s5664_s2 = inlined_call_operand.vmem [shape: f32[1,512], index: 2, kind: input, shape index: {}]   ;;  %s5665_s3 = inlined_call_operand.vmem [shape: f32[2,8,512], index: 3, kind: output, shape index: {}]  }
   0x1 LB: > { %s3118_s13 = sadd.s32 4294967295, %s4361_s12   ;;  %p3122_p0 = scmp.ge.s32.totalorder %s4361_s12, 1  ;;  %s4361_s12 = sphi %s4383_s12, %s13_s12  }
   0x2   : > { %p137_p1 = scmp.lt.s32.totalorder %s4361_s12, 3 }
   0x4   : > { %p138_p2 = pnand %p3122_p0, %p137_p1 }
   0x5   : > { %p161_p3 = scmp.lt.s32.totalorder (!%p138_p2), %s3118_s13, 1 }
   0x6   : > { %141 = sbr.rel (%p138_p2) target bundleno = 602 (0x25a), region = 32 }
   0xb   : > { %v3779_v0 = vld [vmem:[%s5663_s1 + $0x4e4] ss:$16 sps:$4 sm:$0xff]   ;;  %v3783_v2 = vld [vmem:[%s5663_s1 + $0x4e0] ss:$16 sps:$4 sm:$0xff]   ;;  %s5667_s13 = smov (!%p161_p3, %s3118_s13), 1 }
   0xc   : > { %v3781_v1 = vld [vmem:[%s5663_s1 + $0x6e4] ss:$16 sps:$4 sm:$0xff]   ;;  %1080 = vmatprep.subr.bf16.mxu0 %v3779_v0  ;;  %v3784_v3 = vld [vmem:[%s5663_s1 + $0x6e0] ss:$16 sps:$4 sm:$0xff]   ;;  %s3769_s21 = sshll.u32 %s5667_s13, 6  ;;  %s3770_s14 = sshll.u32 %s5667_s13, 5 }
   0xd   : > { %1123 = vmatprep.subr.bf16.mxu1 %v3781_v1  ;;  %v3785_v4 = vld [vmem:[%s5663_s1 + $0x4c4] ss:$16 sps:$4 sm:$0xff]   ;;  %1081 = vmatpush1.bf16.msra.mxu0 %v3783_v2  ;;  %v3789_v6 = vld [vmem:[%s5663_s1 + $0x4c0] ss:$16 sps:$4 sm:$0xff]   ;;  %s4533_s30 = scalar_lea.vmem %s5662_s0, %s3769_s21  ;;  %s170_s17 = scalar_lea.vmem %s5665_s3, %s3770_s14 }
   0xe   : > { %1124 = vmatpush1.bf16.msra.mxu1 %v3784_v3  ;;  %v3787_v5 = vld [vmem:[%s5663_s1 + $0x6c4] ss:$16 sps:$4 sm:$0xff]   ;;  %1082 = vmatprep.subr.bf16.mxu0 %v3785_v4  ;;  %v3790_v7 = vld [vmem:[%s5663_s1 + $0x6c0] ss:$16 sps:$4 sm:$0xff]   ;;  %v172_v46 = vld [vmem:[%s4533_s30 + $0x8] sm:$0xff] }
   0xf   : > { %1125 = vmatprep.subr.bf16.mxu1 %v3787_v5  ;;  %v3791_v8 = vld [vmem:[%s5663_s1 + $0x4a4] ss:$16 sps:$4 sm:$0xff]   ;;  %v3795_v10 = vld [vmem:[%s5663_s1 + $0x4a0] ss:$16 sps:$4 sm:$0xff]   ;;  %v176_v47 = vld [vmem:[%s4533_s30 + $0x28] sm:$0xff] }
  0x10   : > { %v3793_v9 = vld [vmem:[%s5663_s1 + $0x6a4] ss:$16 sps:$4 sm:$0xff]   ;;  %v3796_v11 = vld [vmem:[%s5663_s1 + $0x6a0] ss:$16 sps:$4 sm:$0xff]   ;;  %v174_v48 = vld [vmem:[%s4533_s30 + $0x18] sm:$0xff]  ;;  %v4554_v53 = vpack.c.bf16 %v176_v47, %v172_v46 }
  0x11   : > { %1083 = vmatpush1.bf16.msra.mxu0 %v3789_v6  ;;  %v3797_v12 = vld [vmem:[%s5663_s1 + $0x484] ss:$16 sps:$4 sm:$0xff]   ;;  %v3801_v14 = vld [vmem:[%s5663_s1 + $0x480] ss:$16 sps:$4 sm:$0xff]   ;;  %v178_v49 = vld [vmem:[%s4533_s30 + $0x38] sm:$0xff] }
  0x12   : > { %1126 = vmatpush1.bf16.msra.mxu1 %v3790_v7  ;;  %1084 = vmatprep.subr.bf16.mxu0 %v3791_v8  ;;  %v3799_v13 = vld [vmem:[%s5663_s1 + $0x684] ss:$16 sps:$4 sm:$0xff]   ;;  %v3802_v15 = vld [vmem:[%s5663_s1 + $0x680] ss:$16 sps:$4 sm:$0xff]   ;;  %v4556_v54 = vpack.c.bf16 %v178_v49, %v174_v48  ;;  %v3923_v46 = vld [vmem:[%s5663_s1 + $0x5e8] ss:$16 sps:$4 sm:$0xff]  }
  0x13   : > { %1127 = vmatprep.subr.bf16.mxu1 %v3793_v9  ;;  %v3803_v16 = vld [vmem:[%s5663_s1 + $0x464] ss:$16 sps:$4 sm:$0xff]   ;;  %v3807_v18 = vld [vmem:[%s5663_s1 + $0x460] ss:$16 sps:$4 sm:$0xff]   ;;  %1112 = vmatprep.mubr.bf16.mxu0 %v4554_v53  ;;  %v3926_v47 = vld [vmem:[%s5663_s1 + $0x7e8] ss:$16 sps:$4 sm:$0xff]  }
  0x14   : > { %v3805_v17 = vld [vmem:[%s5663_s1 + $0x664] ss:$16 sps:$4 sm:$0xff]   ;;  %v3808_v19 = vld [vmem:[%s5663_s1 + $0x660] ss:$16 sps:$4 sm:$0xff]   ;;  %1155 = vmatprep.mubr.bf16.mxu1 %v4556_v54  ;;  %v3931_v48 = vld [vmem:[%s5663_s1 + $0x5cc] ss:$16 sps:$4 sm:$0xff]  }
  0x15   : > { %1085 = vmatpush1.bf16.msra.mxu0 %v3795_v10  ;;  %v3809_v20 = vld [vmem:[%s5663_s1 + $0x444] ss:$16 sps:$4 sm:$0xff]   ;;  %v3813_v22 = vld [vmem:[%s5663_s1 + $0x440] ss:$16 sps:$4 sm:$0xff]   ;;  %v3877_v10 = vld [vmem:[%s5663_s1 + $0x4ec] ss:$16 sps:$4 sm:$0xff]  }
  0x16   : > { %1128 = vmatpush1.bf16.msra.mxu1 %v3796_v11  ;;  %1086 = vmatprep.subr.bf16.mxu0 %v3797_v12  ;;  %v3811_v21 = vld [vmem:[%s5663_s1 + $0x644] ss:$16 sps:$4 sm:$0xff]   ;;  %v3814_v23 = vld [vmem:[%s5663_s1 + $0x640] ss:$16 sps:$4 sm:$0xff]   ;;  %v3880_v11 = vld [vmem:[%s5663_s1 + $0x6ec] ss:$16 sps:$4 sm:$0xff]  }
  0x17   : > { %1129 = vmatprep.subr.bf16.mxu1 %v3799_v13  ;;  %v3815_v24 = vld [vmem:[%s5663_s1 + $0x424] ss:$16 sps:$4 sm:$0xff]   ;;  %v3819_v26 = vld [vmem:[%s5663_s1 + $0x420] ss:$16 sps:$4 sm:$0xff]   ;;  %v3934_v49 = vld [vmem:[%s5663_s1 + $0x7cc] ss:$16 sps:$4 sm:$0xff]  }
  0x18   : > { %v3817_v25 = vld [vmem:[%s5663_s1 + $0x624] ss:$16 sps:$4 sm:$0xff]   ;;  %v3820_v27 = vld [vmem:[%s5663_s1 + $0x620] ss:$16 sps:$4 sm:$0xff]  }
  0x19   : > { %1087 = vmatpush1.bf16.msra.mxu0 %v3801_v14  ;;  %v3821_v28 = vld [vmem:[%s5663_s1 + $0x404] ss:$16 sps:$4 sm:$0xff]   ;;  %v3825_v30 = vld [vmem:[%s5663_s1 + $0x400] ss:$16 sps:$4 sm:$0xff]   ;;  %v3875_v14 = vld [vmem:[%s5663_s1 + $0x4e8] ss:$16 sps:$4 sm:$0xff]  }
  0x1a   : > { %1130 = vmatpush1.bf16.msra.mxu1 %v3802_v15  ;;  %1088 = vmatprep.subr.bf16.mxu0 %v3803_v16  ;;  %v3823_v29 = vld [vmem:[%s5663_s1 + $0x604] ss:$16 sps:$4 sm:$0xff]   ;;  %v3826_v31 = vld [vmem:[%s5663_s1 + $0x600] ss:$16 sps:$4 sm:$0xff]   ;;  %v3878_v15 = vld [vmem:[%s5663_s1 + $0x6e8] ss:$16 sps:$4 sm:$0xff]  }
  0x1b   : > { %1131 = vmatprep.subr.bf16.mxu1 %v3805_v17  ;;  %v3827_v32 = vld [vmem:[%s5663_s1 + $0x5e4] ss:$16 sps:$4 sm:$0xff]   ;;  %v3831_v34 = vld [vmem:[%s5663_s1 + $0x5e0] ss:$16 sps:$4 sm:$0xff]   ;;  %v3883_v16 = vld [vmem:[%s5663_s1 + $0x4cc] ss:$16 sps:$4 sm:$0xff]  }
  0x1c   : > { %v3829_v33 = vld [vmem:[%s5663_s1 + $0x7e4] ss:$16 sps:$4 sm:$0xff]   ;;  %v3832_v35 = vld [vmem:[%s5663_s1 + $0x7e0] ss:$16 sps:$4 sm:$0xff]   ;;  %v3886_v17 = vld [vmem:[%s5663_s1 + $0x6cc] ss:$16 sps:$4 sm:$0xff]  }
  0x1d   : > { %1089 = vmatpush1.bf16.msra.mxu0 %v3807_v18  ;;  %v3833_v36 = vld [vmem:[%s5663_s1 + $0x5c4] ss:$16 sps:$4 sm:$0xff]   ;;  %v3837_v38 = vld [vmem:[%s5663_s1 + $0x5c0] ss:$16 sps:$4 sm:$0xff]   ;;  %v3881_v18 = vld [vmem:[%s5663_s1 + $0x4c8] ss:$16 sps:$4 sm:$0xff]  }
  0x1e   : > { %1132 = vmatpush1.bf16.msra.mxu1 %v3808_v19  ;;  %1090 = vmatprep.subr.bf16.mxu0 %v3809_v20  ;;  %v3835_v37 = vld [vmem:[%s5663_s1 + $0x7c4] ss:$16 sps:$4 sm:$0xff]   ;;  %v3838_v39 = vld [vmem:[%s5663_s1 + $0x7c0] ss:$16 sps:$4 sm:$0xff]   ;;  %v3884_v19 = vld [vmem:[%s5663_s1 + $0x6c8] ss:$16 sps:$4 sm:$0xff]  }
  0x1f   : > { %1133 = vmatprep.subr.bf16.mxu1 %v3811_v21  ;;  %v3839_v40 = vld [vmem:[%s5663_s1 + $0x5a4] ss:$16 sps:$4 sm:$0xff]   ;;  %v3843_v42 = vld [vmem:[%s5663_s1 + $0x5a0] ss:$16 sps:$4 sm:$0xff]   ;;  %v3889_v20 = vld [vmem:[%s5663_s1 + $0x4ac] ss:$16 sps:$4 sm:$0xff]  }
  0x20   : > { %v3841_v41 = vld [vmem:[%s5663_s1 + $0x7a4] ss:$16 sps:$4 sm:$0xff]   ;;  %v3844_v43 = vld [vmem:[%s5663_s1 + $0x7a0] ss:$16 sps:$4 sm:$0xff]   ;;  %v3892_v21 = vld [vmem:[%s5663_s1 + $0x6ac] ss:$16 sps:$4 sm:$0xff]  }
  0x21   : > { %1091 = vmatpush1.bf16.msra.mxu0 %v3813_v22  ;;  %v3845_v44 = vld [vmem:[%s5663_s1 + $0x584] ss:$16 sps:$4 sm:$0xff]   ;;  %v3849_v50 = vld [vmem:[%s5663_s1 + $0x580] ss:$16 sps:$4 sm:$0xff]   ;;  %v3887_v22 = vld [vmem:[%s5663_s1 + $0x4a8] ss:$16 sps:$4 sm:$0xff]  }
  0x22   : > { %1134 = vmatpush1.bf16.msra.mxu1 %v3814_v23  ;;  %1092 = vmatprep.subr.bf16.mxu0 %v3815_v24  ;;  %v3847_v45 = vld [vmem:[%s5663_s1 + $0x784] ss:$16 sps:$4 sm:$0xff]   ;;  %v3850_v51 = vld [vmem:[%s5663_s1 + $0x780] ss:$16 sps:$4 sm:$0xff]   ;;  %v3890_v23 = vld [vmem:[%s5663_s1 + $0x6a8] ss:$16 sps:$4 sm:$0xff]  }
  0x23   : > { %1135 = vmatprep.subr.bf16.mxu1 %v3817_v25  ;;  %v3851_v52 = vld [vmem:[%s5663_s1 + $0x564] ss:$16 sps:$4 sm:$0xff]   ;;  %v3855_v56 = vld [vmem:[%s5663_s1 + $0x560] ss:$16 sps:$4 sm:$0xff]   ;;  %v3895_v24 = vld [vmem:[%s5663_s1 + $0x48c] ss:$16 sps:$4 sm:$0xff]  }
  0x24   : > { %v3853_v55 = vld [vmem:[%s5663_s1 + $0x764] ss:$16 sps:$4 sm:$0xff]   ;;  %v3856_v57 = vld [vmem:[%s5663_s1 + $0x760] ss:$16 sps:$4 sm:$0xff]   ;;  %v3898_v25 = vld [vmem:[%s5663_s1 + $0x68c] ss:$16 sps:$4 sm:$0xff]  }
  0x25   : > { %1093 = vmatpush1.bf16.msra.mxu0 %v3819_v26  ;;  %v3857_v58 = vld [vmem:[%s5663_s1 + $0x544] ss:$16 sps:$4 sm:$0xff]   ;;  %v3861_v60 = vld [vmem:[%s5663_s1 + $0x540] ss:$16 sps:$4 sm:$0xff]   ;;  %v3893_v26 = vld [vmem:[%s5663_s1 + $0x488] ss:$16 sps:$4 sm:$0xff]  }
  0x26   : > { %1136 = vmatpush1.bf16.msra.mxu1 %v3820_v27  ;;  %1094 = vmatprep.subr.bf16.mxu0 %v3821_v28  ;;  %v3859_v59 = vld [vmem:[%s5663_s1 + $0x744] ss:$16 sps:$4 sm:$0xff]   ;;  %v3862_v61 = vld [vmem:[%s5663_s1 + $0x740] ss:$16 sps:$4 sm:$0xff]   ;;  %v3896_v27 = vld [vmem:[%s5663_s1 + $0x688] ss:$16 sps:$4 sm:$0xff]  }
  0x27   : > { %1137 = vmatprep.subr.bf16.mxu1 %v3823_v29  ;;  %v3863_v62 = vld [vmem:[%s5663_s1 + $0x524] ss:$16 sps:$4 sm:$0xff]   ;;  %v3867_v0 = vld [vmem:[%s5663_s1 + $0x520] ss:$16 sps:$4 sm:$0xff]   ;;  %v3901_v28 = vld [vmem:[%s5663_s1 + $0x46c] ss:$16 sps:$4 sm:$0xff]  }
  0x28   : > { %v3865_v63 = vld [vmem:[%s5663_s1 + $0x724] ss:$16 sps:$4 sm:$0xff]   ;;  %v3868_v1 = vld [vmem:[%s5663_s1 + $0x720] ss:$16 sps:$4 sm:$0xff]   ;;  %v3904_v29 = vld [vmem:[%s5663_s1 + $0x66c] ss:$16 sps:$4 sm:$0xff]  }
  0x29   : > { %1095 = vmatpush1.bf16.msra.mxu0 %v3825_v30  ;;  %v3869_v2 = vld [vmem:[%s5663_s1 + $0x504] ss:$16 sps:$4 sm:$0xff]   ;;  %v3873_v4 = vld [vmem:[%s5663_s1 + $0x500] ss:$16 sps:$4 sm:$0xff]   ;;  %v3899_v30 = vld [vmem:[%s5663_s1 + $0x468] ss:$16 sps:$4 sm:$0xff]  }
  0x2a   : > { %1138 = vmatpush1.bf16.msra.mxu1 %v3826_v31  ;;  %1096 = vmatprep.subr.bf16.mxu0 %v3827_v32  ;;  %v3871_v3 = vld [vmem:[%s5663_s1 + $0x704] ss:$16 sps:$4 sm:$0xff]   ;;  %v3874_v5 = vld [vmem:[%s5663_s1 + $0x700] ss:$16 sps:$4 sm:$0xff]   ;;  %v3902_v31 = vld [vmem:[%s5663_s1 + $0x668] ss:$16 sps:$4 sm:$0xff]  }
  0x2b   : > { %1139 = vmatprep.subr.bf16.mxu1 %v3829_v33  ;;  %v171_v6 = vld [vmem:[%s4533_s30] sm:$0xff]  ;;  %v173_v8 = vld [vmem:[%s4533_s30 + $0x10] sm:$0xff]  ;;  %v3907_v32 = vld [vmem:[%s5663_s1 + $0x44c] ss:$16 sps:$4 sm:$0xff]  }
  0x2c   : > { %v175_v7 = vld [vmem:[%s4533_s30 + $0x20] sm:$0xff]  ;;  %v177_v9 = vld [vmem:[%s4533_s30 + $0x30] sm:$0xff]  ;;  %v3910_v33 = vld [vmem:[%s5663_s1 + $0x64c] ss:$16 sps:$4 sm:$0xff]  }
  0x2d   : > { %1097 = vmatpush2.bf16.msra.mxu0 %v3831_v34  ;;  %v4615_v12 = vpack.c.bf16 %v175_v7, %v171_v6  ;;  %v4617_v13 = vpack.c.bf16 %v177_v9, %v173_v8  ;;  %v3905_v34 = vld [vmem:[%s5663_s1 + $0x448] ss:$16 sps:$4 sm:$0xff]   ;;  %v3961_v6 = vld [vmem:[%s5663_s1 + $0x52c] ss:$16 sps:$4 sm:$0xff]  }
  0x2e   : > { %1140 = vmatpush2.bf16.msra.mxu1 %v3832_v35  ;;  %1098 = vmatprep.subr.bf16.mxu0 %v3833_v36  ;;  %v3908_v35 = vld [vmem:[%s5663_s1 + $0x648] ss:$16 sps:$4 sm:$0xff]   ;;  %v3913_v36 = vld [vmem:[%s5663_s1 + $0x42c] ss:$16 sps:$4 sm:$0xff]  }
  0x2f   : > { %1141 = vmatprep.subr.bf16.mxu1 %v3835_v37  ;;  %v3916_v37 = vld [vmem:[%s5663_s1 + $0x62c] ss:$16 sps:$4 sm:$0xff]   ;;  %v3959_v8 = vld [vmem:[%s5663_s1 + $0x528] ss:$16 sps:$4 sm:$0xff]  }
  0x30   : > { %v3964_v7 = vld [vmem:[%s5663_s1 + $0x72c] ss:$16 sps:$4 sm:$0xff]   ;;  %v3962_v9 = vld [vmem:[%s5663_s1 + $0x728] ss:$16 sps:$4 sm:$0xff]  }
  0x31   : > { %1099 = vmatpush2.bf16.msra.mxu0 %v3837_v38  ;;  %v3911_v38 = vld [vmem:[%s5663_s1 + $0x428] ss:$16 sps:$4 sm:$0xff]  }
  0x32   : > { %1142 = vmatpush2.bf16.msra.mxu1 %v3838_v39  ;;  %1100 = vmatprep.subr.bf16.mxu0 %v3839_v40  ;;  %v3914_v39 = vld [vmem:[%s5663_s1 + $0x628] ss:$16 sps:$4 sm:$0xff]   ;;  %v3919_v40 = vld [vmem:[%s5663_s1 + $0x40c] ss:$16 sps:$4 sm:$0xff]  }
  0x33   : > { %1143 = vmatprep.subr.bf16.mxu1 %v3841_v41  ;;  %v3922_v41 = vld [vmem:[%s5663_s1 + $0x60c] ss:$16 sps:$4 sm:$0xff]  }
  0x35   : > { %1101 = vmatpush2.bf16.msra.mxu0 %v3843_v42  ;;  %v3917_v42 = vld [vmem:[%s5663_s1 + $0x408] ss:$16 sps:$4 sm:$0xff]  }
  0x36   : > { %1144 = vmatpush2.bf16.msra.mxu1 %v3844_v43  ;;  %1102 = vmatprep.subr.bf16.mxu0 %v3845_v44  ;;  %v3920_v43 = vld [vmem:[%s5663_s1 + $0x608] ss:$16 sps:$4 sm:$0xff]   ;;  %v3925_v44 = vld [vmem:[%s5663_s1 + $0x5ec] ss:$16 sps:$4 sm:$0xff]  }
  0x37   : > { %1145 = vmatprep.subr.bf16.mxu1 %v3847_v45  ;;  %v3928_v45 = vld [vmem:[%s5663_s1 + $0x7ec] ss:$16 sps:$4 sm:$0xff]  }
  0x39   : > { %1103 = vmatpush2.bf16.msra.mxu0 %v3849_v50  ;;  %v3929_v50 = vld [vmem:[%s5663_s1 + $0x5c8] ss:$16 sps:$4 sm:$0xff]  }
  0x3a   : > { %1146 = vmatpush2.bf16.msra.mxu1 %v3850_v51  ;;  %1104 = vmatprep.subr.bf16.mxu0 %v3851_v52  ;;  %v3932_v51 = vld [vmem:[%s5663_s1 + $0x7c8] ss:$16 sps:$4 sm:$0xff]   ;;  %v3937_v52 = vld [vmem:[%s5663_s1 + $0x5ac] ss:$16 sps:$4 sm:$0xff]  }
  0x3b   : > { %1147 = vmatprep.subr.bf16.mxu1 %v3853_v55  ;;  %v3940_v55 = vld [vmem:[%s5663_s1 + $0x7ac] ss:$16 sps:$4 sm:$0xff]  }
  0x3d   : > { %1105 = vmatpush2.bf16.msra.mxu0 %v3855_v56  ;;  %v3935_v56 = vld [vmem:[%s5663_s1 + $0x5a8] ss:$16 sps:$4 sm:$0xff]  }
  0x3e   : > { %1148 = vmatpush2.bf16.msra.mxu1 %v3856_v57  ;;  %1106 = vmatprep.subr.bf16.mxu0 %v3857_v58  ;;  %v3938_v57 = vld [vmem:[%s5663_s1 + $0x7a8] ss:$16 sps:$4 sm:$0xff]   ;;  %v3943_v58 = vld [vmem:[%s5663_s1 + $0x58c] ss:$16 sps:$4 sm:$0xff]  }
  0x3f   : > { %1149 = vmatprep.subr.bf16.mxu1 %v3859_v59  ;;  %v3946_v59 = vld [vmem:[%s5663_s1 + $0x78c] ss:$16 sps:$4 sm:$0xff]  }
  0x41   : > { %1107 = vmatpush2.bf16.msra.mxu0 %v3861_v60  ;;  %v3941_v60 = vld [vmem:[%s5663_s1 + $0x588] ss:$16 sps:$4 sm:$0xff]  }
  0x42   : > { %1150 = vmatpush2.bf16.msra.mxu1 %v3862_v61  ;;  %1108 = vmatprep.subr.bf16.mxu0 %v3863_v62  ;;  %v3944_v61 = vld [vmem:[%s5663_s1 + $0x788] ss:$16 sps:$4 sm:$0xff]   ;;  %v3949_v62 = vld [vmem:[%s5663_s1 + $0x56c] ss:$16 sps:$4 sm:$0xff]  }
  0x43   : > { %1151 = vmatprep.subr.bf16.mxu1 %v3865_v63  ;;  %v3952_v63 = vld [vmem:[%s5663_s1 + $0x76c] ss:$16 sps:$4 sm:$0xff]  }
  0x45   : > { %1109 = vmatpush2.bf16.msra.mxu0 %v3867_v0  ;;  %v3947_v0 = vld [vmem:[%s5663_s1 + $0x568] ss:$16 sps:$4 sm:$0xff]  }
  0x46   : > { %1152 = vmatpush2.bf16.msra.mxu1 %v3868_v1  ;;  %1110 = vmatprep.subr.bf16.mxu0 %v3869_v2  ;;  %v3950_v1 = vld [vmem:[%s5663_s1 + $0x768] ss:$16 sps:$4 sm:$0xff]   ;;  %v3955_v2 = vld [vmem:[%s5663_s1 + $0x54c] ss:$16 sps:$4 sm:$0xff]  }
  0x47   : > { %1153 = vmatprep.subr.bf16.mxu1 %v3871_v3  ;;  %v3958_v3 = vld [vmem:[%s5663_s1 + $0x74c] ss:$16 sps:$4 sm:$0xff]  }
  0x49   : > { %1111 = vmatpush2.bf16.msra.mxu0 %v3873_v4  ;;  %v3953_v4 = vld [vmem:[%s5663_s1 + $0x548] ss:$16 sps:$4 sm:$0xff]  }
  0x4a   : > { %1154 = vmatpush2.bf16.msra.mxu1 %v3874_v5  ;;  %1166 = vmatprep.subr.bf16.mxu0 %v3877_v10  ;;  %v3956_v5 = vld [vmem:[%s5663_s1 + $0x748] ss:$16 sps:$4 sm:$0xff]   ;;  %v3967_v10 = vld [vmem:[%s5663_s1 + $0x50c] ss:$16 sps:$4 sm:$0xff]  }
  0x4b   : > { %1209 = vmatprep.subr.bf16.mxu1 %v3880_v11  ;;  %v3970_v11 = vld [vmem:[%s5663_s1 + $0x70c] ss:$16 sps:$4 sm:$0xff]  }
  0x4c   : > { %1113 = vmatmul.mubr.bf16.vlgmr.msra.gmra.mxu0 %v4615_v12 }
  0x4d   : > { %1156 = vmatmul.mubr.bf16.vlgmr.msra.gmra.mxu1 %v4617_v13  ;;  %1167 = vmatpush1.bf16.msra.mxu0 %v3875_v14  ;;  %v3965_v14 = vld [vmem:[%s5663_s1 + $0x508] ss:$16 sps:$4 sm:$0xff]  }
  0x4e   : > { %1210 = vmatpush1.bf16.msra.mxu1 %v3878_v15  ;;  %1168 = vmatprep.subr.bf16.mxu0 %v3883_v16  ;;  %v3968_v15 = vld [vmem:[%s5663_s1 + $0x708] ss:$16 sps:$4 sm:$0xff]   ;;  %v3973_v16 = vld [vmem:[%s5663_s1 + $0x8e4] ss:$16 sps:$4 sm:$0xff]  }
  0x4f   : > { %1211 = vmatprep.subr.bf16.mxu1 %v3886_v17  ;;  %1198 = vmatprep.mubr.bf16.mxu0 %v4554_v53  ;;  %v3976_v17 = vld [vmem:[%s5663_s1 + $0xae4] ss:$16 sps:$4 sm:$0xff]  }
  0x50   : > { %1241 = vmatprep.mubr.bf16.mxu1 %v4556_v54 }
  0x51   : > { %1169 = vmatpush1.bf16.msra.mxu0 %v3881_v18  ;;  %v3971_v18 = vld [vmem:[%s5663_s1 + $0x8e0] ss:$16 sps:$4 sm:$0xff]  }
  0x52   : > { %1212 = vmatpush1.bf16.msra.mxu1 %v3884_v19  ;;  %1170 = vmatprep.subr.bf16.mxu0 %v3889_v20  ;;  %v3974_v19 = vld [vmem:[%s5663_s1 + $0xae0] ss:$16 sps:$4 sm:$0xff]   ;;  %v3979_v20 = vld [vmem:[%s5663_s1 + $0x8c4] ss:$16 sps:$4 sm:$0xff]  }
  0x53   : > { %1213 = vmatprep.subr.bf16.mxu1 %v3892_v21  ;;  %v3982_v21 = vld [vmem:[%s5663_s1 + $0xac4] ss:$16 sps:$4 sm:$0xff]  }
  0x55   : > { %1171 = vmatpush1.bf16.msra.mxu0 %v3887_v22  ;;  %v3977_v22 = vld [vmem:[%s5663_s1 + $0x8c0] ss:$16 sps:$4 sm:$0xff]  }
  0x56   : > { %1214 = vmatpush1.bf16.msra.mxu1 %v3890_v23  ;;  %1172 = vmatprep.subr.bf16.mxu0 %v3895_v24  ;;  %v3980_v23 = vld [vmem:[%s5663_s1 + $0xac0] ss:$16 sps:$4 sm:$0xff]   ;;  %v3985_v24 = vld [vmem:[%s5663_s1 + $0x8a4] ss:$16 sps:$4 sm:$0xff]  }
  0x57   : > { %1215 = vmatprep.subr.bf16.mxu1 %v3898_v25  ;;  %v3988_v25 = vld [vmem:[%s5663_s1 + $0xaa4] ss:$16 sps:$4 sm:$0xff]  }
  0x59   : > { %1173 = vmatpush1.bf16.msra.mxu0 %v3893_v26  ;;  %v3983_v26 = vld [vmem:[%s5663_s1 + $0x8a0] ss:$16 sps:$4 sm:$0xff]  }
  0x5a   : > { %1216 = vmatpush1.bf16.msra.mxu1 %v3896_v27  ;;  %1174 = vmatprep.subr.bf16.mxu0 %v3901_v28  ;;  %v3986_v27 = vld [vmem:[%s5663_s1 + $0xaa0] ss:$16 sps:$4 sm:$0xff]   ;;  %v3991_v28 = vld [vmem:[%s5663_s1 + $0x884] ss:$16 sps:$4 sm:$0xff]  }
  0x5b   : > { %1217 = vmatprep.subr.bf16.mxu1 %v3904_v29  ;;  %v3994_v29 = vld [vmem:[%s5663_s1 + $0xa84] ss:$16 sps:$4 sm:$0xff]  }
  0x5d   : > { %1175 = vmatpush1.bf16.msra.mxu0 %v3899_v30  ;;  %v3989_v30 = vld [vmem:[%s5663_s1 + $0x880] ss:$16 sps:$4 sm:$0xff]  }
  0x5e   : > { %1218 = vmatpush1.bf16.msra.mxu1 %v3902_v31  ;;  %1176 = vmatprep.subr.bf16.mxu0 %v3907_v32  ;;  %v3992_v31 = vld [vmem:[%s5663_s1 + $0xa80] ss:$16 sps:$4 sm:$0xff]   ;;  %v3997_v32 = vld [vmem:[%s5663_s1 + $0x864] ss:$16 sps:$4 sm:$0xff]  }
  0x5f   : > { %1219 = vmatprep.subr.bf16.mxu1 %v3910_v33  ;;  %v4000_v33 = vld [vmem:[%s5663_s1 + $0xa64] ss:$16 sps:$4 sm:$0xff]  }
  0x61   : > { %1177 = vmatpush1.bf16.msra.mxu0 %v3905_v34  ;;  %v3995_v34 = vld [vmem:[%s5663_s1 + $0x860] ss:$16 sps:$4 sm:$0xff]  }
  0x62   : > { %1220 = vmatpush1.bf16.msra.mxu1 %v3908_v35  ;;  %1178 = vmatprep.subr.bf16.mxu0 %v3913_v36  ;;  %v3998_v35 = vld [vmem:[%s5663_s1 + $0xa60] ss:$16 sps:$4 sm:$0xff]   ;;  %v4003_v36 = vld [vmem:[%s5663_s1 + $0x844] ss:$16 sps:$4 sm:$0xff]  }
  0x63   : > { %1221 = vmatprep.subr.bf16.mxu1 %v3916_v37  ;;  %v4006_v37 = vld [vmem:[%s5663_s1 + $0xa44] ss:$16 sps:$4 sm:$0xff]  }
  0x65   : > { %1179 = vmatpush1.bf16.msra.mxu0 %v3911_v38  ;;  %v4001_v38 = vld [vmem:[%s5663_s1 + $0x840] ss:$16 sps:$4 sm:$0xff]  }
  0x66   : > { %1222 = vmatpush1.bf16.msra.mxu1 %v3914_v39  ;;  %1180 = vmatprep.subr.bf16.mxu0 %v3919_v40  ;;  %v4004_v39 = vld [vmem:[%s5663_s1 + $0xa40] ss:$16 sps:$4 sm:$0xff]   ;;  %v4009_v40 = vld [vmem:[%s5663_s1 + $0x824] ss:$16 sps:$4 sm:$0xff]  }
  0x67   : > { %1223 = vmatprep.subr.bf16.mxu1 %v3922_v41  ;;  %v4012_v41 = vld [vmem:[%s5663_s1 + $0xa24] ss:$16 sps:$4 sm:$0xff]  }
  0x69   : > { %1181 = vmatpush1.bf16.msra.mxu0 %v3917_v42  ;;  %v4007_v42 = vld [vmem:[%s5663_s1 + $0x820] ss:$16 sps:$4 sm:$0xff]  }
  0x6a   : > { %1224 = vmatpush1.bf16.msra.mxu1 %v3920_v43  ;;  %1182 = vmatprep.subr.bf16.mxu0 %v3925_v44  ;;  %v4010_v43 = vld [vmem:[%s5663_s1 + $0xa20] ss:$16 sps:$4 sm:$0xff]   ;;  %v4015_v44 = vld [vmem:[%s5663_s1 + $0x804] ss:$16 sps:$4 sm:$0xff]  }
  0x6b   : > { %1225 = vmatprep.subr.bf16.mxu1 %v3928_v45  ;;  %v4018_v45 = vld [vmem:[%s5663_s1 + $0xa04] ss:$16 sps:$4 sm:$0xff]  }
  0x6d   : > { %1183 = vmatpush2.bf16.msra.mxu0 %v3923_v46  ;;  %v4013_v46 = vld [vmem:[%s5663_s1 + $0x800] ss:$16 sps:$4 sm:$0xff]  }
  0x6e   : > { %1226 = vmatpush2.bf16.msra.mxu1 %v3926_v47  ;;  %1184 = vmatprep.subr.bf16.mxu0 %v3931_v48  ;;  %v4016_v47 = vld [vmem:[%s5663_s1 + $0xa00] ss:$16 sps:$4 sm:$0xff]   ;;  %v4021_v48 = vld [vmem:[%s5663_s1 + $0x9e4] ss:$16 sps:$4 sm:$0xff]  }
  0x6f   : > { %1227 = vmatprep.subr.bf16.mxu1 %v3934_v49  ;;  %v4024_v49 = vld [vmem:[%s5663_s1 + $0xbe4] ss:$16 sps:$4 sm:$0xff]  }
  0x71   : > { %1185 = vmatpush2.bf16.msra.mxu0 %v3929_v50  ;;  %v4019_v50 = vld [vmem:[%s5663_s1 + $0x9e0] ss:$16 sps:$4 sm:$0xff]  }
  0x72   : > { %1228 = vmatpush2.bf16.msra.mxu1 %v3932_v51  ;;  %1186 = vmatprep.subr.bf16.mxu0 %v3937_v52  ;;  %v4022_v51 = vld [vmem:[%s5663_s1 + $0xbe0] ss:$16 sps:$4 sm:$0xff]   ;;  %v4027_v52 = vld [vmem:[%s5663_s1 + $0x9c4] ss:$16 sps:$4 sm:$0xff]  }
  0x73   : > { %1229 = vmatprep.subr.bf16.mxu1 %v3940_v55  ;;  %v4030_v55 = vld [vmem:[%s5663_s1 + $0xbc4] ss:$16 sps:$4 sm:$0xff]  }
  0x75   : > { %1187 = vmatpush2.bf16.msra.mxu0 %v3935_v56  ;;  %v4025_v56 = vld [vmem:[%s5663_s1 + $0x9c0] ss:$16 sps:$4 sm:$0xff]  }
  0x76   : > { %1230 = vmatpush2.bf16.msra.mxu1 %v3938_v57  ;;  %1188 = vmatprep.subr.bf16.mxu0 %v3943_v58  ;;  %v4028_v57 = vld [vmem:[%s5663_s1 + $0xbc0] ss:$16 sps:$4 sm:$0xff]   ;;  %v4033_v58 = vld [vmem:[%s5663_s1 + $0x9a4] ss:$16 sps:$4 sm:$0xff]  }
  0x77   : > { %1231 = vmatprep.subr.bf16.mxu1 %v3946_v59  ;;  %v4036_v59 = vld [vmem:[%s5663_s1 + $0xba4] ss:$16 sps:$4 sm:$0xff]  }
  0x79   : > { %1189 = vmatpush2.bf16.msra.mxu0 %v3941_v60  ;;  %v4031_v60 = vld [vmem:[%s5663_s1 + $0x9a0] ss:$16 sps:$4 sm:$0xff]  }
  0x7a   : > { %1232 = vmatpush2.bf16.msra.mxu1 %v3944_v61  ;;  %1190 = vmatprep.subr.bf16.mxu0 %v3949_v62  ;;  %v4034_v61 = vld [vmem:[%s5663_s1 + $0xba0] ss:$16 sps:$4 sm:$0xff]   ;;  %v4039_v62 = vld [vmem:[%s5663_s1 + $0x984] ss:$16 sps:$4 sm:$0xff]  }
  0x7b   : > { %1233 = vmatprep.subr.bf16.mxu1 %v3952_v63  ;;  %v4042_v63 = vld [vmem:[%s5663_s1 + $0xb84] ss:$16 sps:$4 sm:$0xff]  }
  0x7d   : > { %1191 = vmatpush2.bf16.msra.mxu0 %v3947_v0  ;;  %v4037_v0 = vld [vmem:[%s5663_s1 + $0x980] ss:$16 sps:$4 sm:$0xff]  }
  0x7e   : > { %1234 = vmatpush2.bf16.msra.mxu1 %v3950_v1  ;;  %1192 = vmatprep.subr.bf16.mxu0 %v3955_v2  ;;  %v4040_v1 = vld [vmem:[%s5663_s1 + $0xb80] ss:$16 sps:$4 sm:$0xff]   ;;  %v4045_v2 = vld [vmem:[%s5663_s1 + $0x964] ss:$16 sps:$4 sm:$0xff]  }
  0x7f   : > { %1235 = vmatprep.subr.bf16.mxu1 %v3958_v3  ;;  %v4048_v3 = vld [vmem:[%s5663_s1 + $0xb64] ss:$16 sps:$4 sm:$0xff]  }
  0x81   : > { %1193 = vmatpush2.bf16.msra.mxu0 %v3953_v4  ;;  %v4043_v4 = vld [vmem:[%s5663_s1 + $0x960] ss:$16 sps:$4 sm:$0xff]  }
  0x82   : > { %1236 = vmatpush2.bf16.msra.mxu1 %v3956_v5  ;;  %1194 = vmatprep.subr.bf16.mxu0 %v3961_v6  ;;  %v4046_v5 = vld [vmem:[%s5663_s1 + $0xb60] ss:$16 sps:$4 sm:$0xff]   ;;  %v4051_v6 = vld [vmem:[%s5663_s1 + $0x944] ss:$16 sps:$4 sm:$0xff]  }
  0x83   : > { %1237 = vmatprep.subr.bf16.mxu1 %v3964_v7  ;;  %v4054_v7 = vld [vmem:[%s5663_s1 + $0xb44] ss:$16 sps:$4 sm:$0xff]  }
  0x85   : > { %1195 = vmatpush2.bf16.msra.mxu0 %v3959_v8  ;;  %v4049_v8 = vld [vmem:[%s5663_s1 + $0x940] ss:$16 sps:$4 sm:$0xff]  }
  0x86   : > { %1238 = vmatpush2.bf16.msra.mxu1 %v3962_v9  ;;  %1196 = vmatprep.subr.bf16.mxu0 %v3967_v10  ;;  %v4052_v9 = vld [vmem:[%s5663_s1 + $0xb40] ss:$16 sps:$4 sm:$0xff]   ;;  %v4057_v10 = vld [vmem:[%s5663_s1 + $0x924] ss:$16 sps:$4 sm:$0xff]  }
  0x87   : > { %1239 = vmatprep.subr.bf16.mxu1 %v3970_v11  ;;  %v4060_v11 = vld [vmem:[%s5663_s1 + $0xb24] ss:$16 sps:$4 sm:$0xff]  }
  0x89   : > { %1197 = vmatpush2.bf16.msra.mxu0 %v3965_v14  ;;  %v4055_v14 = vld [vmem:[%s5663_s1 + $0x920] ss:$16 sps:$4 sm:$0xff]  }
  0x8a   : > { %1240 = vmatpush2.bf16.msra.mxu1 %v3968_v15  ;;  %2021 = vmatprep.subr.bf16.mxu0 %v3973_v16  ;;  %v4058_v15 = vld [vmem:[%s5663_s1 + $0xb20] ss:$16 sps:$4 sm:$0xff]   ;;  %v4063_v16 = vld [vmem:[%s5663_s1 + $0x904] ss:$16 sps:$4 sm:$0xff]  }
  0x8b   : > { %2064 = vmatprep.subr.bf16.mxu1 %v3976_v17  ;;  %v4066_v17 = vld [vmem:[%s5663_s1 + $0xb04] ss:$16 sps:$4 sm:$0xff]  }
  0x8c   : > { %1199 = vmatmul.mubr.bf16.vlgmr.msra.gmra.mxu0 %v4615_v12 }
  0x8d   : > { %1242 = vmatmul.mubr.bf16.vlgmr.msra.gmra.mxu1 %v4617_v13  ;;  %2022 = vmatpush1.bf16.msra.mxu0 %v3971_v18  ;;  %v4061_v18 = vld [vmem:[%s5663_s1 + $0x900] ss:$16 sps:$4 sm:$0xff]  }
  0x8e   : > { %2065 = vmatpush1.bf16.msra.mxu1 %v3974_v19  ;;  %2023 = vmatprep.subr.bf16.mxu0 %v3979_v20  ;;  %v4064_v19 = vld [vmem:[%s5663_s1 + $0xb00] ss:$16 sps:$4 sm:$0xff]   ;;  %v4069_v20 = vld [vmem:[%s5663_s1 + $0x8ec] ss:$16 sps:$4 sm:$0xff]  }
  0x8f   : > { %2066 = vmatprep.subr.bf16.mxu1 %v3982_v21  ;;  %2053 = vmatprep.mubr.bf16.mxu0 %v4554_v53  ;;  %v4072_v21 = vld [vmem:[%s5663_s1 + $0xaec] ss:$16 sps:$4 sm:$0xff]  }
  0x90   : > { %2096 = vmatprep.mubr.bf16.mxu1 %v4556_v54 }
  0x91   : > { %2024 = vmatpush1.bf16.msra.mxu0 %v3977_v22  ;;  %v4067_v22 = vld [vmem:[%s5663_s1 + $0x8e8] ss:$16 sps:$4 sm:$0xff]  }
  0x92   : > { %2067 = vmatpush1.bf16.msra.mxu1 %v3980_v23  ;;  %2025 = vmatprep.subr.bf16.mxu0 %v3985_v24  ;;  %v4070_v23 = vld [vmem:[%s5663_s1 + $0xae8] ss:$16 sps:$4 sm:$0xff]   ;;  %v4075_v24 = vld [vmem:[%s5663_s1 + $0x8cc] ss:$16 sps:$4 sm:$0xff]  }
  0x93   : > { %2068 = vmatprep.subr.bf16.mxu1 %v3988_v25  ;;  %v4078_v25 = vld [vmem:[%s5663_s1 + $0xacc] ss:$16 sps:$4 sm:$0xff]  }
  0x95   : > { %2026 = vmatpush1.bf16.msra.mxu0 %v3983_v26  ;;  %v4073_v26 = vld [vmem:[%s5663_s1 + $0x8c8] ss:$16 sps:$4 sm:$0xff]  }
  0x96   : > { %2069 = vmatpush1.bf16.msra.mxu1 %v3986_v27  ;;  %2027 = vmatprep.subr.bf16.mxu0 %v3991_v28  ;;  %v4076_v27 = vld [vmem:[%s5663_s1 + $0xac8] ss:$16 sps:$4 sm:$0xff]   ;;  %v4081_v28 = vld [vmem:[%s5663_s1 + $0x8ac] ss:$16 sps:$4 sm:$0xff]  }
  0x97   : > { %2070 = vmatprep.subr.bf16.mxu1 %v3994_v29  ;;  %v4084_v29 = vld [vmem:[%s5663_s1 + $0xaac] ss:$16 sps:$4 sm:$0xff]  }
  0x99   : > { %2028 = vmatpush1.bf16.msra.mxu0 %v3989_v30  ;;  %v4079_v30 = vld [vmem:[%s5663_s1 + $0x8a8] ss:$16 sps:$4 sm:$0xff]  }
  0x9a   : > { %2071 = vmatpush1.bf16.msra.mxu1 %v3992_v31  ;;  %2029 = vmatprep.subr.bf16.mxu0 %v3997_v32  ;;  %v4082_v31 = vld [vmem:[%s5663_s1 + $0xaa8] ss:$16 sps:$4 sm:$0xff]   ;;  %v4087_v32 = vld [vmem:[%s5663_s1 + $0x88c] ss:$16 sps:$4 sm:$0xff]  }
  0x9b   : > { %2072 = vmatprep.subr.bf16.mxu1 %v4000_v33  ;;  %v4090_v33 = vld [vmem:[%s5663_s1 + $0xa8c] ss:$16 sps:$4 sm:$0xff]  }
  0x9d   : > { %2030 = vmatpush1.bf16.msra.mxu0 %v3995_v34  ;;  %v4085_v34 = vld [vmem:[%s5663_s1 + $0x888] ss:$16 sps:$4 sm:$0xff]  }
  0x9e   : > { %2073 = vmatpush1.bf16.msra.mxu1 %v3998_v35  ;;  %2031 = vmatprep.subr.bf16.mxu0 %v4003_v36  ;;  %v4088_v35 = vld [vmem:[%s5663_s1 + $0xa88] ss:$16 sps:$4 sm:$0xff]   ;;  %v4093_v36 = vld [vmem:[%s5663_s1 + $0x86c] ss:$16 sps:$4 sm:$0xff]  }
  0x9f   : > { %2074 = vmatprep.subr.bf16.mxu1 %v4006_v37  ;;  %v4096_v37 = vld [vmem:[%s5663_s1 + $0xa6c] ss:$16 sps:$4 sm:$0xff]  }
  0xa1   : > { %2032 = vmatpush1.bf16.msra.mxu0 %v4001_v38  ;;  %v4091_v38 = vld [vmem:[%s5663_s1 + $0x868] ss:$16 sps:$4 sm:$0xff]  }
  0xa2   : > { %2075 = vmatpush1.bf16.msra.mxu1 %v4004_v39  ;;  %2033 = vmatprep.subr.bf16.mxu0 %v4009_v40  ;;  %v4094_v39 = vld [vmem:[%s5663_s1 + $0xa68] ss:$16 sps:$4 sm:$0xff]   ;;  %v4099_v40 = vld [vmem:[%s5663_s1 + $0x84c] ss:$16 sps:$4 sm:$0xff]  }
  0xa3   : > { %2076 = vmatprep.subr.bf16.mxu1 %v4012_v41  ;;  %v4102_v41 = vld [vmem:[%s5663_s1 + $0xa4c] ss:$16 sps:$4 sm:$0xff]  }
  0xa5   : > { %2034 = vmatpush1.bf16.msra.mxu0 %v4007_v42  ;;  %v4097_v42 = vld [vmem:[%s5663_s1 + $0x848] ss:$16 sps:$4 sm:$0xff]  }
  0xa6   : > { %2077 = vmatpush1.bf16.msra.mxu1 %v4010_v43  ;;  %2035 = vmatprep.subr.bf16.mxu0 %v4015_v44  ;;  %v4100_v43 = vld [vmem:[%s5663_s1 + $0xa48] ss:$16 sps:$4 sm:$0xff]   ;;  %v4105_v44 = vld [vmem:[%s5663_s1 + $0x82c] ss:$16 sps:$4 sm:$0xff]  }
  0xa7   : > { %2078 = vmatprep.subr.bf16.mxu1 %v4018_v45  ;;  %v4108_v45 = vld [vmem:[%s5663_s1 + $0xa2c] ss:$16 sps:$4 sm:$0xff]  }
  0xa9   : > { %2036 = vmatpush1.bf16.msra.mxu0 %v4013_v46  ;;  %v4103_v46 = vld [vmem:[%s5663_s1 + $0x828] ss:$16 sps:$4 sm:$0xff]  }
  0xaa   : > { %2079 = vmatpush1.bf16.msra.mxu1 %v4016_v47  ;;  %2037 = vmatprep.subr.bf16.mxu0 %v4021_v48  ;;  %v4106_v47 = vld [vmem:[%s5663_s1 + $0xa28] ss:$16 sps:$4 sm:$0xff]   ;;  %v4111_v48 = vld [vmem:[%s5663_s1 + $0x80c] ss:$16 sps:$4 sm:$0xff]  }
  0xab   : > { %2080 = vmatprep.subr.bf16.mxu1 %v4024_v49  ;;  %v4114_v49 = vld [vmem:[%s5663_s1 + $0xa0c] ss:$16 sps:$4 sm:$0xff]  }
  0xad   : > { %2038 = vmatpush2.bf16.msra.mxu0 %v4019_v50  ;;  %v4109_v50 = vld [vmem:[%s5663_s1 + $0x808] ss:$16 sps:$4 sm:$0xff]  }
  0xae   : > { %2081 = vmatpush2.bf16.msra.mxu1 %v4022_v51  ;;  %2039 = vmatprep.subr.bf16.mxu0 %v4027_v52  ;;  %v4112_v51 = vld [vmem:[%s5663_s1 + $0xa08] ss:$16 sps:$4 sm:$0xff]   ;;  %v4117_v52 = vld [vmem:[%s5663_s1 + $0x9ec] ss:$16 sps:$4 sm:$0xff]  }
  0xaf   : > { %2082 = vmatprep.subr.bf16.mxu1 %v4030_v55  ;;  %v4120_v55 = vld [vmem:[%s5663_s1 + $0xbec] ss:$16 sps:$4 sm:$0xff]  }
  0xb1   : > { %2040 = vmatpush2.bf16.msra.mxu0 %v4025_v56  ;;  %v4115_v56 = vld [vmem:[%s5663_s1 + $0x9e8] ss:$16 sps:$4 sm:$0xff]  }
  0xb2   : > { %2083 = vmatpush2.bf16.msra.mxu1 %v4028_v57  ;;  %2041 = vmatprep.subr.bf16.mxu0 %v4033_v58  ;;  %v4118_v57 = vld [vmem:[%s5663_s1 + $0xbe8] ss:$16 sps:$4 sm:$0xff]   ;;  %v4123_v58 = vld [vmem:[%s5663_s1 + $0x9cc] ss:$16 sps:$4 sm:$0xff]  }
  0xb3   : > { %2084 = vmatprep.subr.bf16.mxu1 %v4036_v59  ;;  %v4126_v59 = vld [vmem:[%s5663_s1 + $0xbcc] ss:$16 sps:$4 sm:$0xff]  }
  0xb5   : > { %2042 = vmatpush2.bf16.msra.mxu0 %v4031_v60  ;;  %v4121_v60 = vld [vmem:[%s5663_s1 + $0x9c8] ss:$16 sps:$4 sm:$0xff]  }
  0xb6   : > { %2085 = vmatpush2.bf16.msra.mxu1 %v4034_v61  ;;  %2043 = vmatprep.subr.bf16.mxu0 %v4039_v62  ;;  %v4124_v61 = vld [vmem:[%s5663_s1 + $0xbc8] ss:$16 sps:$4 sm:$0xff]   ;;  %v4129_v62 = vld [vmem:[%s5663_s1 + $0x9ac] ss:$16 sps:$4 sm:$0xff]  }
  0xb7   : > { %2086 = vmatprep.subr.bf16.mxu1 %v4042_v63  ;;  %v4132_v63 = vld [vmem:[%s5663_s1 + $0xbac] ss:$16 sps:$4 sm:$0xff]  }
  0xb9   : > { %2044 = vmatpush2.bf16.msra.mxu0 %v4037_v0  ;;  %v4127_v0 = vld [vmem:[%s5663_s1 + $0x9a8] ss:$16 sps:$4 sm:$0xff]  }
  0xba   : > { %2087 = vmatpush2.bf16.msra.mxu1 %v4040_v1  ;;  %2045 = vmatprep.subr.bf16.mxu0 %v4045_v2  ;;  %v4130_v1 = vld [vmem:[%s5663_s1 + $0xba8] ss:$16 sps:$4 sm:$0xff]   ;;  %v4135_v2 = vld [vmem:[%s5663_s1 + $0x98c] ss:$16 sps:$4 sm:$0xff]  }
  0xbb   : > { %2088 = vmatprep.subr.bf16.mxu1 %v4048_v3  ;;  %v4138_v3 = vld [vmem:[%s5663_s1 + $0xb8c] ss:$16 sps:$4 sm:$0xff]  }
  0xbd   : > { %2046 = vmatpush2.bf16.msra.mxu0 %v4043_v4  ;;  %v4133_v4 = vld [vmem:[%s5663_s1 + $0x988] ss:$16 sps:$4 sm:$0xff]  }
  0xbe   : > { %2089 = vmatpush2.bf16.msra.mxu1 %v4046_v5  ;;  %2047 = vmatprep.subr.bf16.mxu0 %v4051_v6  ;;  %v4136_v5 = vld [vmem:[%s5663_s1 + $0xb88] ss:$16 sps:$4 sm:$0xff]   ;;  %v4141_v6 = vld [vmem:[%s5663_s1 + $0x96c] ss:$16 sps:$4 sm:$0xff]  }
  0xbf   : > { %2090 = vmatprep.subr.bf16.mxu1 %v4054_v7  ;;  %v4144_v7 = vld [vmem:[%s5663_s1 + $0xb6c] ss:$16 sps:$4 sm:$0xff]  }
  0xc1   : > { %2048 = vmatpush2.bf16.msra.mxu0 %v4049_v8  ;;  %v4139_v8 = vld [vmem:[%s5663_s1 + $0x968] ss:$16 sps:$4 sm:$0xff]  }
  0xc2   : > { %2091 = vmatpush2.bf16.msra.mxu1 %v4052_v9  ;;  %2049 = vmatprep.subr.bf16.mxu0 %v4057_v10  ;;  %v4142_v9 = vld [vmem:[%s5663_s1 + $0xb68] ss:$16 sps:$4 sm:$0xff]   ;;  %v4147_v10 = vld [vmem:[%s5663_s1 + $0x94c] ss:$16 sps:$4 sm:$0xff]  }
  0xc3   : > { %2092 = vmatprep.subr.bf16.mxu1 %v4060_v11  ;;  %v4150_v11 = vld [vmem:[%s5663_s1 + $0xb4c] ss:$16 sps:$4 sm:$0xff]  }
  0xc5   : > { %2050 = vmatpush2.bf16.msra.mxu0 %v4055_v14  ;;  %v4145_v14 = vld [vmem:[%s5663_s1 + $0x948] ss:$16 sps:$4 sm:$0xff]  }
  0xc6   : > { %2093 = vmatpush2.bf16.msra.mxu1 %v4058_v15  ;;  %2051 = vmatprep.subr.bf16.mxu0 %v4063_v16  ;;  %v4148_v15 = vld [vmem:[%s5663_s1 + $0xb48] ss:$16 sps:$4 sm:$0xff]   ;;  %v4153_v16 = vld [vmem:[%s5663_s1 + $0x92c] ss:$16 sps:$4 sm:$0xff]  }
  0xc7   : > { %2094 = vmatprep.subr.bf16.mxu1 %v4066_v17  ;;  %v4156_v17 = vld [vmem:[%s5663_s1 + $0xb2c] ss:$16 sps:$4 sm:$0xff]  }
  0xc9   : > { %2052 = vmatpush2.bf16.msra.mxu0 %v4061_v18  ;;  %v4151_v18 = vld [vmem:[%s5663_s1 + $0x928] ss:$16 sps:$4 sm:$0xff]  }
  0xca   : > { %2095 = vmatpush2.bf16.msra.mxu1 %v4064_v19  ;;  %2107 = vmatprep.subr.bf16.mxu0 %v4069_v20  ;;  %v4154_v19 = vld [vmem:[%s5663_s1 + $0xb28] ss:$16 sps:$4 sm:$0xff]   ;;  %v4159_v20 = vld [vmem:[%s5663_s1 + $0x90c] ss:$16 sps:$4 sm:$0xff]  }
  0xcb   : > { %2150 = vmatprep.subr.bf16.mxu1 %v4072_v21  ;;  %v4162_v21 = vld [vmem:[%s5663_s1 + $0xb0c] ss:$16 sps:$4 sm:$0xff]  }
  0xcc   : > { %2054 = vmatmul.mubr.bf16.vlgmr.msra.gmra.mxu0 %v4615_v12 }
  0xcd   : > { %2097 = vmatmul.mubr.bf16.vlgmr.msra.gmra.mxu1 %v4617_v13  ;;  %2108 = vmatpush1.bf16.msra.mxu0 %v4067_v22  ;;  %v4157_v22 = vld [vmem:[%s5663_s1 + $0x908] ss:$16 sps:$4 sm:$0xff]  }
  0xce   : > { %2151 = vmatpush1.bf16.msra.mxu1 %v4070_v23  ;;  %2109 = vmatprep.subr.bf16.mxu0 %v4075_v24  ;;  %v4160_v23 = vld [vmem:[%s5663_s1 + $0xb08] ss:$16 sps:$4 sm:$0xff]   ;;  %v4165_v24 = vld [vmem:[%s5663_s1 + $0xe4] ss:$16 sps:$4 sm:$0xff]  }
  0xcf   : > { %2152 = vmatprep.subr.bf16.mxu1 %v4078_v25  ;;  %2139 = vmatprep.mubr.bf16.mxu0 %v4554_v53  ;;  %v4168_v25 = vld [vmem:[%s5663_s1 + $0x2e4] ss:$16 sps:$4 sm:$0xff]  }
  0xd0   : > { %2182 = vmatprep.mubr.bf16.mxu1 %v4556_v54 }
  0xd1   : > { %2110 = vmatpush1.bf16.msra.mxu0 %v4073_v26  ;;  %v4163_v26 = vld [vmem:[%s5663_s1 + $0xe0] ss:$16 sps:$4 sm:$0xff]  }
  0xd2   : > { %2153 = vmatpush1.bf16.msra.mxu1 %v4076_v27  ;;  %2111 = vmatprep.subr.bf16.mxu0 %v4081_v28  ;;  %v4166_v27 = vld [vmem:[%s5663_s1 + $0x2e0] ss:$16 sps:$4 sm:$0xff]   ;;  %v4171_v28 = vld [vmem:[%s5663_s1 + $0xc4] ss:$16 sps:$4 sm:$0xff]  }
  0xd3   : > { %2154 = vmatprep.subr.bf16.mxu1 %v4084_v29  ;;  %v4174_v29 = vld [vmem:[%s5663_s1 + $0x2c4] ss:$16 sps:$4 sm:$0xff]  }
  0xd5   : > { %2112 = vmatpush1.bf16.msra.mxu0 %v4079_v30  ;;  %v4169_v30 = vld [vmem:[%s5663_s1 + $0xc0] ss:$16 sps:$4 sm:$0xff]  }
  0xd6   : > { %2155 = vmatpush1.bf16.msra.mxu1 %v4082_v31  ;;  %2113 = vmatprep.subr.bf16.mxu0 %v4087_v32  ;;  %v4172_v31 = vld [vmem:[%s5663_s1 + $0x2c0] ss:$16 sps:$4 sm:$0xff]   ;;  %v4177_v32 = vld [vmem:[%s5663_s1 + $0xa4] ss:$16 sps:$4 sm:$0xff]  }
  0xd7   : > { %2156 = vmatprep.subr.bf16.mxu1 %v4090_v33  ;;  %v4180_v33 = vld [vmem:[%s5663_s1 + $0x2a4] ss:$16 sps:$4 sm:$0xff]  }
  0xd9   : > { %2114 = vmatpush1.bf16.msra.mxu0 %v4085_v34  ;;  %v4175_v34 = vld [vmem:[%s5663_s1 + $0xa0] ss:$16 sps:$4 sm:$0xff]  }
  0xda   : > { %2157 = vmatpush1.bf16.msra.mxu1 %v4088_v35  ;;  %2115 = vmatprep.subr.bf16.mxu0 %v4093_v36  ;;  %v4178_v35 = vld [vmem:[%s5663_s1 + $0x2a0] ss:$16 sps:$4 sm:$0xff]   ;;  %v4183_v36 = vld [vmem:[%s5663_s1 + $0x84] ss:$16 sps:$4 sm:$0xff]  }
  0xdb   : > { %2158 = vmatprep.subr.bf16.mxu1 %v4096_v37  ;;  %v4186_v37 = vld [vmem:[%s5663_s1 + $0x284] ss:$16 sps:$4 sm:$0xff]  }
  0xdd   : > { %2116 = vmatpush1.bf16.msra.mxu0 %v4091_v38  ;;  %v4181_v38 = vld [vmem:[%s5663_s1 + $0x80] ss:$16 sps:$4 sm:$0xff]  }
  0xde   : > { %2159 = vmatpush1.bf16.msra.mxu1 %v4094_v39  ;;  %2117 = vmatprep.subr.bf16.mxu0 %v4099_v40  ;;  %v4184_v39 = vld [vmem:[%s5663_s1 + $0x280] ss:$16 sps:$4 sm:$0xff]   ;;  %v4189_v40 = vld [vmem:[%s5663_s1 + $0x64] ss:$16 sps:$4 sm:$0xff]  }
  0xdf   : > { %2160 = vmatprep.subr.bf16.mxu1 %v4102_v41  ;;  %v4192_v41 = vld [vmem:[%s5663_s1 + $0x264] ss:$16 sps:$4 sm:$0xff]  }
  0xe1   : > { %2118 = vmatpush1.bf16.msra.mxu0 %v4097_v42  ;;  %v4187_v42 = vld [vmem:[%s5663_s1 + $0x60] ss:$16 sps:$4 sm:$0xff]  }
  0xe2   : > { %2161 = vmatpush1.bf16.msra.mxu1 %v4100_v43  ;;  %2119 = vmatprep.subr.bf16.mxu0 %v4105_v44  ;;  %v4190_v43 = vld [vmem:[%s5663_s1 + $0x260] ss:$16 sps:$4 sm:$0xff]   ;;  %v4195_v44 = vld [vmem:[%s5663_s1 + $0x44] ss:$16 sps:$4 sm:$0xff]  }
  0xe3   : > { %2162 = vmatprep.subr.bf16.mxu1 %v4108_v45  ;;  %v4198_v45 = vld [vmem:[%s5663_s1 + $0x244] ss:$16 sps:$4 sm:$0xff]  }
  0xe5   : > { %2120 = vmatpush1.bf16.msra.mxu0 %v4103_v46  ;;  %v4193_v46 = vld [vmem:[%s5663_s1 + $0x40] ss:$16 sps:$4 sm:$0xff]  }
  0xe6   : > { %2163 = vmatpush1.bf16.msra.mxu1 %v4106_v47  ;;  %2121 = vmatprep.subr.bf16.mxu0 %v4111_v48  ;;  %v4196_v47 = vld [vmem:[%s5663_s1 + $0x240] ss:$16 sps:$4 sm:$0xff]   ;;  %v4201_v48 = vld [vmem:[%s5663_s1 + $0x24] ss:$16 sps:$4 sm:$0xff]  }
  0xe7   : > { %2164 = vmatprep.subr.bf16.mxu1 %v4114_v49  ;;  %v4204_v49 = vld [vmem:[%s5663_s1 + $0x224] ss:$16 sps:$4 sm:$0xff]  }
  0xe9   : > { %2122 = vmatpush1.bf16.msra.mxu0 %v4109_v50  ;;  %v4199_v50 = vld [vmem:[%s5663_s1 + $0x20] ss:$16 sps:$4 sm:$0xff]  }
  0xea   : > { %2165 = vmatpush1.bf16.msra.mxu1 %v4112_v51  ;;  %2123 = vmatprep.subr.bf16.mxu0 %v4117_v52  ;;  %v4202_v51 = vld [vmem:[%s5663_s1 + $0x220] ss:$16 sps:$4 sm:$0xff]   ;;  %v4207_v52 = vld [vmem:[%s5663_s1 + $0x4] ss:$16 sps:$4 sm:$0xff]  }
  0xeb   : > { %2166 = vmatprep.subr.bf16.mxu1 %v4120_v55  ;;  %v4210_v55 = vld [vmem:[%s5663_s1 + $0x204] ss:$16 sps:$4 sm:$0xff]  }
  0xed   : > { %2124 = vmatpush2.bf16.msra.mxu0 %v4115_v56  ;;  %v4205_v56 = vld [vmem:[%s5663_s1] ss:$16 sps:$4 sm:$0xff]  }
  0xee   : > { %2167 = vmatpush2.bf16.msra.mxu1 %v4118_v57  ;;  %2125 = vmatprep.subr.bf16.mxu0 %v4123_v58  ;;  %v4208_v57 = vld [vmem:[%s5663_s1 + $0x200] ss:$16 sps:$4 sm:$0xff]   ;;  %v4213_v58 = vld [vmem:[%s5663_s1 + $0x1e4] ss:$16 sps:$4 sm:$0xff]  }
  0xef   : > { %2168 = vmatprep.subr.bf16.mxu1 %v4126_v59  ;;  %v4216_v59 = vld [vmem:[%s5663_s1 + $0x3e4] ss:$16 sps:$4 sm:$0xff]  }
  0xf1   : > { %2126 = vmatpush2.bf16.msra.mxu0 %v4121_v60  ;;  %v4211_v60 = vld [vmem:[%s5663_s1 + $0x1e0] ss:$16 sps:$4 sm:$0xff]  }
  0xf2   : > { %2169 = vmatpush2.bf16.msra.mxu1 %v4124_v61  ;;  %2127 = vmatprep.subr.bf16.mxu0 %v4129_v62  ;;  %v4214_v61 = vld [vmem:[%s5663_s1 + $0x3e0] ss:$16 sps:$4 sm:$0xff]   ;;  %v4219_v62 = vld [vmem:[%s5663_s1 + $0x1c4] ss:$16 sps:$4 sm:$0xff]  }
  0xf3   : > { %2170 = vmatprep.subr.bf16.mxu1 %v4132_v63  ;;  %v4222_v63 = vld [vmem:[%s5663_s1 + $0x3c4] ss:$16 sps:$4 sm:$0xff]  }
  0xf5   : > { %2128 = vmatpush2.bf16.msra.mxu0 %v4127_v0  ;;  %v4217_v0 = vld [vmem:[%s5663_s1 + $0x1c0] ss:$16 sps:$4 sm:$0xff]  }
  0xf6   : > { %2171 = vmatpush2.bf16.msra.mxu1 %v4130_v1  ;;  %2129 = vmatprep.subr.bf16.mxu0 %v4135_v2  ;;  %v4220_v1 = vld [vmem:[%s5663_s1 + $0x3c0] ss:$16 sps:$4 sm:$0xff]   ;;  %v4225_v2 = vld [vmem:[%s5663_s1 + $0x1a4] ss:$16 sps:$4 sm:$0xff]  }
  0xf7   : > { %2172 = vmatprep.subr.bf16.mxu1 %v4138_v3  ;;  %v4228_v3 = vld [vmem:[%s5663_s1 + $0x3a4] ss:$16 sps:$4 sm:$0xff]  }
  0xf9   : > { %2130 = vmatpush2.bf16.msra.mxu0 %v4133_v4  ;;  %v4223_v4 = vld [vmem:[%s5663_s1 + $0x1a0] ss:$16 sps:$4 sm:$0xff]  }
  0xfa   : > { %2173 = vmatpush2.bf16.msra.mxu1 %v4136_v5  ;;  %2131 = vmatprep.subr.bf16.mxu0 %v4141_v6  ;;  %v4226_v5 = vld [vmem:[%s5663_s1 + $0x3a0] ss:$16 sps:$4 sm:$0xff]   ;;  %v4231_v6 = vld [vmem:[%s5663_s1 + $0x184] ss:$16 sps:$4 sm:$0xff]  }
  0xfb   : > { %2174 = vmatprep.subr.bf16.mxu1 %v4144_v7  ;;  %v4234_v7 = vld [vmem:[%s5663_s1 + $0x384] ss:$16 sps:$4 sm:$0xff]  }
  0xfd   : > { %2132 = vmatpush2.bf16.msra.mxu0 %v4139_v8  ;;  %v4229_v8 = vld [vmem:[%s5663_s1 + $0x180] ss:$16 sps:$4 sm:$0xff]  }
  0xfe   : > { %2175 = vmatpush2.bf16.msra.mxu1 %v4142_v9  ;;  %2133 = vmatprep.subr.bf16.mxu0 %v4147_v10  ;;  %v4232_v9 = vld [vmem:[%s5663_s1 + $0x380] ss:$16 sps:$4 sm:$0xff]   ;;  %v4237_v10 = vld [vmem:[%s5663_s1 + $0x164] ss:$16 sps:$4 sm:$0xff]  }
  0xff   : > { %2176 = vmatprep.subr.bf16.mxu1 %v4150_v11  ;;  %v4240_v11 = vld [vmem:[%s5663_s1 + $0x364] ss:$16 sps:$4 sm:$0xff]  }
 0x101   : > { %2134 = vmatpush2.bf16.msra.mxu0 %v4145_v14  ;;  %v4235_v14 = vld [vmem:[%s5663_s1 + $0x160] ss:$16 sps:$4 sm:$0xff]  }
 0x102   : > { %2177 = vmatpush2.bf16.msra.mxu1 %v4148_v15  ;;  %2135 = vmatprep.subr.bf16.mxu0 %v4153_v16  ;;  %v4238_v15 = vld [vmem:[%s5663_s1 + $0x360] ss:$16 sps:$4 sm:$0xff]   ;;  %v4243_v16 = vld [vmem:[%s5663_s1 + $0x144] ss:$16 sps:$4 sm:$0xff]  }
 0x103   : > { %2178 = vmatprep.subr.bf16.mxu1 %v4156_v17  ;;  %v4246_v17 = vld [vmem:[%s5663_s1 + $0x344] ss:$16 sps:$4 sm:$0xff]  }
 0x105   : > { %2136 = vmatpush2.bf16.msra.mxu0 %v4151_v18  ;;  %v4241_v18 = vld [vmem:[%s5663_s1 + $0x140] ss:$16 sps:$4 sm:$0xff]  }
 0x106   : > { %2179 = vmatpush2.bf16.msra.mxu1 %v4154_v19  ;;  %2137 = vmatprep.subr.bf16.mxu0 %v4159_v20  ;;  %v4244_v19 = vld [vmem:[%s5663_s1 + $0x340] ss:$16 sps:$4 sm:$0xff]  }
 0x107   : > { %2180 = vmatprep.subr.bf16.mxu1 %v4162_v21 }
 0x109   : > { %2138 = vmatpush2.bf16.msra.mxu0 %v4157_v22  ;;  %v4249_v22 = vld [vmem:[%s5663_s1 + $0x124] ss:$16 sps:$4 sm:$0xff]  }
 0x10a   : > { %2181 = vmatpush2.bf16.msra.mxu1 %v4160_v23  ;;  %2848 = vmatprep.subr.bf16.mxu0 %v4165_v24  ;;  %v4252_v23 = vld [vmem:[%s5663_s1 + $0x324] ss:$16 sps:$4 sm:$0xff]   ;;  %v4247_v24 = vld [vmem:[%s5663_s1 + $0x120] ss:$16 sps:$4 sm:$0xff]  }
 0x10b   : > { %2889 = vmatprep.subr.bf16.mxu1 %v4168_v25  ;;  %v4250_v25 = vld [vmem:[%s5663_s1 + $0x320] ss:$16 sps:$4 sm:$0xff]  }
 0x10c   : > { %2140 = vmatmul.mubr.bf16.vlgmr.msra.gmra.mxu0 %v4615_v12  ;;  %v5373_v20 = vpop.f32.mrf.mxu0 }
 0x10d   : > { %2183 = vmatmul.mubr.bf16.vlgmr.msra.gmra.mxu1 %v4617_v13  ;;  %2849 = vmatpush1.bf16.msra.mxu0 %v4163_v26  ;;  %v5375_v21 = vpop.f32.mrf.mxu1 }
 0x10e   : > { %2890 = vmatpush1.bf16.msra.mxu1 %v4166_v27  ;;  %2850 = vmatprep.subr.bf16.mxu0 %v4171_v28  ;;  %v5389_v26 = vpop.f32.mrf.mxu0  ;;  %v4255_v28 = vld [vmem:[%s5663_s1 + $0x104] ss:$16 sps:$4 sm:$0xff]  }
 0x10f   : > { %2891 = vmatprep.subr.bf16.mxu1 %v4174_v29  ;;  %2880 = vmatprep.mubr.bf16.mxu0 %v4554_v53  ;;  %v5391_v27 = vpop.f32.mrf.mxu1  ;;  %v4258_v29 = vld [vmem:[%s5663_s1 + $0x304] ss:$16 sps:$4 sm:$0xff]  }
 0x110   : > { %2921 = vmatprep.mubr.bf16.mxu1 %v4556_v54 }
 0x111   : > { %2851 = vmatpush1.bf16.msra.mxu0 %v4169_v30  ;;  %v4253_v30 = vld [vmem:[%s5663_s1 + $0x100] ss:$16 sps:$4 sm:$0xff]  }
 0x112   : > { %2892 = vmatpush1.bf16.msra.mxu1 %v4172_v31  ;;  %2852 = vmatprep.subr.bf16.mxu0 %v4177_v32  ;;  %v4256_v31 = vld [vmem:[%s5663_s1 + $0x300] ss:$16 sps:$4 sm:$0xff]   ;;  %v5405_v32 = vpop.f32.mrf.mxu0 }
 0x113   : > { %2893 = vmatprep.subr.bf16.mxu1 %v4180_v33  ;;  %v5407_v33 = vpop.f32.mrf.mxu1 }
 0x115   : > { %2853 = vmatpush1.bf16.msra.mxu0 %v4175_v34  ;;  %v4261_v34 = vld [vmem:[%s5663_s1 + $0xec] ss:$16 sps:$4 sm:$0xff]  }
 0x116   : > { %2894 = vmatpush1.bf16.msra.mxu1 %v4178_v35  ;;  %2854 = vmatprep.subr.bf16.mxu0 %v4183_v36  ;;  %v4264_v35 = vld [vmem:[%s5663_s1 + $0x2ec] ss:$16 sps:$4 sm:$0xff]   ;;  %v4259_v36 = vld [vmem:[%s5663_s1 + $0xe8] ss:$16 sps:$4 sm:$0xff]  }
 0x117   : > { %2895 = vmatprep.subr.bf16.mxu1 %v4186_v37  ;;  %v4262_v37 = vld [vmem:[%s5663_s1 + $0x2e8] ss:$16 sps:$4 sm:$0xff]  }
 0x119   : > { %2855 = vmatpush1.bf16.msra.mxu0 %v4181_v38  ;;  %v5421_v38 = vpop.f32.mrf.mxu0 }
 0x11a   : > { %2896 = vmatpush1.bf16.msra.mxu1 %v4184_v39  ;;  %2856 = vmatprep.subr.bf16.mxu0 %v4189_v40  ;;  %v5423_v39 = vpop.f32.mrf.mxu1  ;;  %v4267_v40 = vld [vmem:[%s5663_s1 + $0xcc] ss:$16 sps:$4 sm:$0xff]  }
 0x11b   : > { %2897 = vmatprep.subr.bf16.mxu1 %v4192_v41  ;;  %v4270_v41 = vld [vmem:[%s5663_s1 + $0x2cc] ss:$16 sps:$4 sm:$0xff]  }
 0x11d   : > { %2857 = vmatpush1.bf16.msra.mxu0 %v4187_v42 }
 0x11e   : > { %2898 = vmatpush1.bf16.msra.mxu1 %v4190_v43  ;;  %2858 = vmatprep.subr.bf16.mxu0 %v4195_v44  ;;  %v2201_v44 = vlaneseq }
 0x11f   : > { %2899 = vmatprep.subr.bf16.mxu1 %v4198_v45 }
 0x121   : > { %2859 = vmatpush1.bf16.msra.mxu0 %v4193_v46  ;;  %v4265_v46 = vld [vmem:[%s5663_s1 + $0xc8] ss:$16 sps:$4 sm:$0xff]  }
 0x122   : > { %2900 = vmatpush1.bf16.msra.mxu1 %v4196_v47  ;;  %2860 = vmatprep.subr.bf16.mxu0 %v4201_v48  ;;  %v4268_v47 = vld [vmem:[%s5663_s1 + $0x2c8] ss:$16 sps:$4 sm:$0xff]  }
 0x123   : > { %2901 = vmatprep.subr.bf16.mxu1 %v4204_v49 }
 0x125   : > { %2861 = vmatpush1.bf16.msra.mxu0 %v4199_v50  ;;  %v4273_v50 = vld [vmem:[%s5663_s1 + $0xac] ss:$16 sps:$4 sm:$0xff]  }
 0x126   : > { %2902 = vmatpush1.bf16.msra.mxu1 %v4202_v51  ;;  %2862 = vmatprep.subr.bf16.mxu0 %v4207_v52  ;;  %v4276_v51 = vld [vmem:[%s5663_s1 + $0x2ac] ss:$16 sps:$4 sm:$0xff]  }
 0x127   : > { %2903 = vmatprep.subr.bf16.mxu1 %v4210_v55 }
 0x129   : > { %2863 = vmatpush1.bf16.msra.mxu0 %v4205_v56 }
 0x12a   : > { %2904 = vmatpush1.bf16.msra.mxu1 %v4208_v57  ;;  %2864 = vmatprep.subr.bf16.mxu0 %v4213_v58  ;;  %v5447_v57 = vshrl.u32 %v2201_v44, 7  ;;  %v4319_v44 = vld [vmem:[%s5663_s1 + $0x1a8] ss:$16 sps:$4 sm:$0xff]  }
 0x12b   : > { %2905 = vmatprep.subr.bf16.mxu1 %v4216_v59  ;;  %v4271_v59 = vld [vmem:[%s5663_s1 + $0xa8] ss:$16 sps:$4 sm:$0xff]  }
 0x12c   : > { %vm2203_vm0 = vcmp.lt.s32.totalorder %v5447_v57, 7  ;;  %vm3020_vm1 = vcmp.lt.s32.totalorder %v5447_v57, 6 }
 0x12d   : > { %2865 = vmatpush2.bf16.msra.mxu0 %v4211_v60  ;;  %v4274_v60 = vld [vmem:[%s5663_s1 + $0x2a8] ss:$16 sps:$4 sm:$0xff]  }
 0x12e   : > { %2906 = vmatpush2.bf16.msra.mxu1 %v4214_v61  ;;  %2866 = vmatprep.subr.bf16.mxu0 %v4219_v62 }
 0x12f   : > { %2907 = vmatprep.subr.bf16.mxu1 %v4222_v63 }
 0x131   : > { %2867 = vmatpush2.bf16.msra.mxu0 %v4217_v0 }
 0x132   : > { %2908 = vmatpush2.bf16.msra.mxu1 %v4220_v1  ;;  %2868 = vmatprep.subr.bf16.mxu0 %v4225_v2 }
 0x133   : > { %2909 = vmatprep.subr.bf16.mxu1 %v4228_v3 }
 0x135   : > { %2869 = vmatpush2.bf16.msra.mxu0 %v4223_v4  ;;  %v4277_v4 = vld [vmem:[%s5663_s1 + $0x88] ss:$16 sps:$4 sm:$0xff]  }
 0x136   : > { %2910 = vmatpush2.bf16.msra.mxu1 %v4226_v5  ;;  %2870 = vmatprep.subr.bf16.mxu0 %v4231_v6  ;;  %v4280_v5 = vld [vmem:[%s5663_s1 + $0x288] ss:$16 sps:$4 sm:$0xff]  }
 0x137   : > { %2911 = vmatprep.subr.bf16.mxu1 %v4234_v7  ;;  %v4285_v7 = vld [vmem:[%s5663_s1 + $0x6c] ss:$16 sps:$4 sm:$0xff]  }
 0x139   : > { %2871 = vmatpush2.bf16.msra.mxu0 %v4229_v8  ;;  %v4288_v8 = vld [vmem:[%s5663_s1 + $0x26c] ss:$16 sps:$4 sm:$0xff]  }
 0x13a   : > { %2912 = vmatpush2.bf16.msra.mxu1 %v4232_v9  ;;  %2872 = vmatprep.subr.bf16.mxu0 %v4237_v10  ;;  %v4283_v10 = vld [vmem:[%s5663_s1 + $0x68] ss:$16 sps:$4 sm:$0xff]  }
 0x13b   : > { %2913 = vmatprep.subr.bf16.mxu1 %v4240_v11  ;;  %v4286_v11 = vld [vmem:[%s5663_s1 + $0x268] ss:$16 sps:$4 sm:$0xff]  }
 0x13d   : > { %2873 = vmatpush2.bf16.msra.mxu0 %v4235_v14  ;;  %v4291_v14 = vld [vmem:[%s5663_s1 + $0x4c] ss:$16 sps:$4 sm:$0xff]  }
 0x13e   : > { %2914 = vmatpush2.bf16.msra.mxu1 %v4238_v15  ;;  %2874 = vmatprep.subr.bf16.mxu0 %v4243_v16  ;;  %v4294_v15 = vld [vmem:[%s5663_s1 + $0x24c] ss:$16 sps:$4 sm:$0xff]   ;;  %v4289_v16 = vld [vmem:[%s5663_s1 + $0x48] ss:$16 sps:$4 sm:$0xff]  }
 0x13f   : > { %2915 = vmatprep.subr.bf16.mxu1 %v4246_v17  ;;  %v4292_v17 = vld [vmem:[%s5663_s1 + $0x248] ss:$16 sps:$4 sm:$0xff]  }
 0x141   : > { %2875 = vmatpush2.bf16.msra.mxu0 %v4241_v18  ;;  %v4297_v18 = vld [vmem:[%s5663_s1 + $0x2c] ss:$16 sps:$4 sm:$0xff]  }
 0x142   : > { %2916 = vmatpush2.bf16.msra.mxu1 %v4244_v19  ;;  %2876 = vmatprep.subr.bf16.mxu0 %v4249_v22  ;;  %v4300_v19 = vld [vmem:[%s5663_s1 + $0x22c] ss:$16 sps:$4 sm:$0xff]   ;;  %v4295_v22 = vld [vmem:[%s5663_s1 + $0x28] ss:$16 sps:$4 sm:$0xff]  }
 0x143   : > { %2917 = vmatprep.subr.bf16.mxu1 %v4252_v23  ;;  %v4298_v23 = vld [vmem:[%s5663_s1 + $0x228] ss:$16 sps:$4 sm:$0xff]  }
 0x145   : > { %2877 = vmatpush2.bf16.msra.mxu0 %v4247_v24  ;;  %v4303_v24 = vld [vmem:[%s5663_s1 + $0xc] ss:$16 sps:$4 sm:$0xff]  }
 0x146   : > { %2918 = vmatpush2.bf16.msra.mxu1 %v4250_v25  ;;  %2878 = vmatprep.subr.bf16.mxu0 %v4255_v28  ;;  %v4306_v25 = vld [vmem:[%s5663_s1 + $0x20c] ss:$16 sps:$4 sm:$0xff]   ;;  %v4301_v28 = vld [vmem:[%s5663_s1 + $0x8] ss:$16 sps:$4 sm:$0xff]  }
 0x147   : > { %2919 = vmatprep.subr.bf16.mxu1 %v4258_v29  ;;  %v4304_v29 = vld [vmem:[%s5663_s1 + $0x208] ss:$16 sps:$4 sm:$0xff]  }
 0x149   : > { %2879 = vmatpush2.bf16.msra.mxu0 %v4253_v30  ;;  %v4309_v30 = vld [vmem:[%s5663_s1 + $0x1ec] ss:$16 sps:$4 sm:$0xff]  }
 0x14a   : > { %2920 = vmatpush2.bf16.msra.mxu1 %v4256_v31  ;;  %2930 = vmatprep.subr.bf16.mxu0 %v4261_v34  ;;  %v4312_v31 = vld [vmem:[%s5663_s1 + $0x3ec] ss:$16 sps:$4 sm:$0xff]   ;;  %v4307_v34 = vld [vmem:[%s5663_s1 + $0x1e8] ss:$16 sps:$4 sm:$0xff]  }
 0x14b   : > { %2971 = vmatprep.subr.bf16.mxu1 %v4264_v35  ;;  %v4310_v35 = vld [vmem:[%s5663_s1 + $0x3e8] ss:$16 sps:$4 sm:$0xff]  }
 0x14c   : > { %v1200_v42 = vpop.f32.mrf.mxu0  ;;  %2881 = vmatmul.mubr.bf16.vlgmr.msra.gmra.mxu0 %v4615_v12 }
 0x14d   : > { %v1243_v43 = vpop.f32.mrf.mxu1  ;;  %2922 = vmatmul.mubr.bf16.vlgmr.msra.gmra.mxu1 %v4617_v13  ;;  %2931 = vmatpush1.bf16.msra.mxu0 %v4259_v36  ;;  %v4315_v36 = vld [vmem:[%s5663_s1 + $0x1cc] ss:$16 sps:$4 sm:$0xff]  }
 0x14e   : > { %v1244_v45 = vadd.f32 %v1243_v43, %v1200_v42  ;;  %2972 = vmatpush1.bf16.msra.mxu1 %v4262_v37  ;;  %v1202_v48 = vpop.f32.mrf.mxu0  ;;  %2932 = vmatprep.subr.bf16.mxu0 %v4267_v40  ;;  %v4318_v37 = vld [vmem:[%s5663_s1 + $0x3cc] ss:$16 sps:$4 sm:$0xff]   ;;  %v4313_v40 = vld [vmem:[%s5663_s1 + $0x1c8] ss:$16 sps:$4 sm:$0xff]  }
 0x14f   : > { %v1245_v49 = vpop.f32.mrf.mxu1  ;;  %2973 = vmatprep.subr.bf16.mxu1 %v4270_v41  ;;  %2962 = vmatprep.mubr.bf16.mxu0 %v4554_v53  ;;  %v4279_v53 = vld [vmem:[%s5663_s1 + $0x8c] ss:$16 sps:$4 sm:$0xff]   ;;  %v4316_v41 = vld [vmem:[%s5663_s1 + $0x3c8] ss:$16 sps:$4 sm:$0xff]  }
 0x150   : > { %v1246_v52 = vadd.f32 %v1245_v49, %v1202_v48  ;;  %3003 = vmatprep.mubr.bf16.mxu1 %v4556_v54  ;;  %v1204_v55 = vpop.f32.mrf.mxu0  ;;  %v4282_v54 = vld [vmem:[%s5663_s1 + $0x28c] ss:$16 sps:$4 sm:$0xff]   ;;  %v2195_v63 = vrot.slane %v1244_v45, 1  ;;  %v4322_v45 = vld [vmem:[%s5663_s1 + $0x3a8] ss:$16 sps:$4 sm:$0xff]  }
 0x151   : > { %v1247_v56 = vpop.f32.mrf.mxu1  ;;  %2933 = vmatpush1.bf16.msra.mxu0 %v4265_v46  ;;  %v4321_v42 = vld [vmem:[%s5663_s1 + $0x1ac] ss:$16 sps:$4 sm:$0xff]   ;;  %v4325_v48 = vld [vmem:[%s5663_s1 + $0x188] ss:$16 sps:$4 sm:$0xff]  }
 0x152   : > { %v1248_v58 = vadd.f32 %v1247_v56, %v1204_v55  ;;  %2974 = vmatpush1.bf16.msra.mxu1 %v4268_v47  ;;  %v1206_v61 = vpop.f32.mrf.mxu0  ;;  %2934 = vmatprep.subr.bf16.mxu0 %v4273_v50  ;;  %v2196_v2 = vrot.slane %v1246_v52, 1  ;;  %v4324_v43 = vld [vmem:[%s5663_s1 + $0x3ac] ss:$16 sps:$4 sm:$0xff]   ;;  %v4328_v49 = vld [vmem:[%s5663_s1 + $0x388] ss:$16 sps:$4 sm:$0xff]  }
 0x153   : > { %v1249_v62 = vpop.f32.mrf.mxu1  ;;  %2975 = vmatprep.subr.bf16.mxu1 %v4276_v51  ;;  %v4327_v46 = vld [vmem:[%s5663_s1 + $0x18c] ss:$16 sps:$4 sm:$0xff]   ;;  %v4331_v52 = vld [vmem:[%s5663_s1 + $0x168] ss:$16 sps:$4 sm:$0xff]  }
 0x154   : > { %v2199_v0 = vrot.slane %v1248_v58, 1  ;;  %v1250_v1 = vadd.f32 %v1249_v62, %v1206_v61  ;;  %v4330_v47 = vld [vmem:[%s5663_s1 + $0x38c] ss:$16 sps:$4 sm:$0xff]   ;;  %v4334_v55 = vld [vmem:[%s5663_s1 + $0x368] ss:$16 sps:$4 sm:$0xff]  }
 0x155   : > { %2935 = vmatpush1.bf16.msra.mxu0 %v4271_v59  ;;  %v4333_v50 = vld [vmem:[%s5663_s1 + $0x16c] ss:$16 sps:$4 sm:$0xff]   ;;  %v4337_v59 = vld [vmem:[%s5663_s1 + $0x148] ss:$16 sps:$4 sm:$0xff]  }
 0x156   : > { %v2200_v3 = vrot.slane %v1250_v1, 1  ;;  %2976 = vmatpush1.bf16.msra.mxu1 %v4274_v60  ;;  %v5470_v6 = vsel %vm2203_vm0, %v2195_v63, %v2199_v0  ;;  %2936 = vmatprep.subr.bf16.mxu0 %v4279_v53  ;;  %v4336_v51 = vld [vmem:[%s5663_s1 + $0x36c] ss:$16 sps:$4 sm:$0xff]   ;;  %v4340_v60 = vld [vmem:[%s5663_s1 + $0x348] ss:$16 sps:$4 sm:$0xff]  }
 0x157   : > { %2977 = vmatprep.subr.bf16.mxu1 %v4282_v54  ;;  %v4339_v56 = vld [vmem:[%s5663_s1 + $0x14c] ss:$16 sps:$4 sm:$0xff]   ;;  %v4343_v53 = vld [vmem:[%s5663_s1 + $0x128] ss:$16 sps:$4 sm:$0xff]  }
 0x158   : > { %v5480_v9 = vsel %vm2203_vm0, %v2196_v2, %v2200_v3  ;;  %v4342_v58 = vld [vmem:[%s5663_s1 + $0x34c] ss:$16 sps:$4 sm:$0xff]   ;;  %v4346_v54 = vld [vmem:[%s5663_s1 + $0x328] ss:$16 sps:$4 sm:$0xff]  }
 0x159   : > { %2937 = vmatpush1.bf16.msra.mxu0 %v4277_v4  ;;  %v4345_v61 = vld [vmem:[%s5663_s1 + $0x12c] ss:$16 sps:$4 sm:$0xff]   ;;  %v4349_v1 = vld [vmem:[%s5663_s1 + $0x108] ss:$16 sps:$4 sm:$0xff]  }
 0x15a   : > { %2978 = vmatpush1.bf16.msra.mxu1 %v4280_v5  ;;  %2938 = vmatprep.subr.bf16.mxu0 %v4285_v7  ;;  %v4348_v62 = vld [vmem:[%s5663_s1 + $0x32c] ss:$16 sps:$4 sm:$0xff]   ;;  %v4352_v2 = vld [vmem:[%s5663_s1 + $0x308] ss:$16 sps:$4 sm:$0xff]  }
 0x15b   : > { %2979 = vmatprep.subr.bf16.mxu1 %v4288_v8  ;;  %v4351_v63 = vld [vmem:[%s5663_s1 + $0x10c] ss:$16 sps:$4 sm:$0xff]  }
 0x15c   : > { %v4354_v0 = vld [vmem:[%s5663_s1 + $0x30c] ss:$16 sps:$4 sm:$0xff]  }
 0x15d   : > { %2939 = vmatpush1.bf16.msra.mxu0 %v4283_v10 }
 0x15e   : > { %2980 = vmatpush1.bf16.msra.mxu1 %v4286_v11  ;;  %2940 = vmatprep.subr.bf16.mxu0 %v4291_v14 }
 0x15f   : > { %2981 = vmatprep.subr.bf16.mxu1 %v4294_v15 }
 0x161   : > { %2941 = vmatpush1.bf16.msra.mxu0 %v4289_v16 }
 0x162   : > { %2982 = vmatpush1.bf16.msra.mxu1 %v4292_v17  ;;  %2942 = vmatprep.subr.bf16.mxu0 %v4297_v18 }
 0x163   : > { %2983 = vmatprep.subr.bf16.mxu1 %v4300_v19 }
 0x165   : > { %2943 = vmatpush1.bf16.msra.mxu0 %v4295_v22 }
 0x166   : > { %2984 = vmatpush1.bf16.msra.mxu1 %v4298_v23  ;;  %2944 = vmatprep.subr.bf16.mxu0 %v4303_v24 }
 0x167   : > { %2985 = vmatprep.subr.bf16.mxu1 %v4306_v25 }
 0x169   : > { %2945 = vmatpush1.bf16.msra.mxu0 %v4301_v28 }
 0x16a   : > { %2986 = vmatpush1.bf16.msra.mxu1 %v4304_v29  ;;  %2946 = vmatprep.subr.bf16.mxu0 %v4309_v30 }
 0x16b   : > { %2987 = vmatprep.subr.bf16.mxu1 %v4312_v31 }
 0x16d   : > { %2947 = vmatpush2.bf16.msra.mxu0 %v4307_v34 }
 0x16e   : > { %2988 = vmatpush2.bf16.msra.mxu1 %v4310_v35  ;;  %2948 = vmatprep.subr.bf16.mxu0 %v4315_v36 }
 0x16f   : > { %2989 = vmatprep.subr.bf16.mxu1 %v4318_v37  ;;  %v1162_v37 = vadd.f32 %v5407_v33, %v5405_v32 }
 0x171   : > { %2949 = vmatpush2.bf16.msra.mxu0 %v4313_v40  ;;  %v1158_v40 = vadd.f32 %v5375_v21, %v5373_v20 }
 0x172   : > { %2990 = vmatpush2.bf16.msra.mxu1 %v4316_v41  ;;  %2950 = vmatprep.subr.bf16.mxu0 %v4321_v42  ;;  %v1164_v41 = vadd.f32 %v5423_v39, %v5421_v38  ;;  %v1160_v42 = vadd.f32 %v5391_v27, %v5389_v26  ;;  %v3029_v26 = vld [vmem:[%s5664_s2] sm:$0xf]  ;;  %v3037_v38 = vsub.s32 1, %v5447_v57 }
 0x173   : > { %2991 = vmatprep.subr.bf16.mxu1 %v4324_v43  ;;  %v2197_v43 = vrot.slane %v1162_v37, 1 }
 0x175   : > { %2951 = vmatpush2.bf16.msra.mxu0 %v4319_v44 }
 0x176   : > { %2992 = vmatpush2.bf16.msra.mxu1 %v4322_v45  ;;  %2952 = vmatprep.subr.bf16.mxu0 %v4327_v46  ;;  %v2193_v45 = vrot.slane %v1158_v40, 1  ;;  %v2198_v46 = vrot.slane %v1164_v41, 1 }
 0x177   : > { %2993 = vmatprep.subr.bf16.mxu1 %v4330_v47 }
 0x178   : > { %v2204_v20 = vsel %vm2203_vm0, %v2193_v45, %v2197_v43 }
 0x179   : > { %2953 = vmatpush2.bf16.msra.mxu0 %v4325_v48 }
 0x17a   : > { %2994 = vmatpush2.bf16.msra.mxu1 %v4328_v49  ;;  %2954 = vmatprep.subr.bf16.mxu0 %v4333_v50  ;;  %v3033_v49 = vsub.s32 0, %v5447_v57  ;;  %v2194_v50 = vrot.slane %v1160_v42, 1 }
 0x17b   : > { %2995 = vmatprep.subr.bf16.mxu1 %v4336_v51 }
 0x17d   : > { %2955 = vmatpush2.bf16.msra.mxu0 %v4331_v52 }
 0x17e   : > { %2996 = vmatpush2.bf16.msra.mxu1 %v4334_v55  ;;  %2956 = vmatprep.subr.bf16.mxu0 %v4339_v56  ;;  %v2205_v55 = vsel %vm2203_vm0, %v2194_v50, %v2198_v46 }
 0x17f   : > { %2997 = vmatprep.subr.bf16.mxu1 %v4342_v58 }
 0x181   : > { %2957 = vmatpush2.bf16.msra.mxu0 %v4337_v59 }
 0x182   : > { %2998 = vmatpush2.bf16.msra.mxu1 %v4340_v60  ;;  %2958 = vmatprep.subr.bf16.mxu0 %v4345_v61  ;;  %v3034_v60 = vrot.slane %v3029_v26, %v3033_v49 }
 0x183   : > { %2999 = vmatprep.subr.bf16.mxu1 %v4348_v62 }
 0x185   : > { %2959 = vmatpush2.bf16.msra.mxu0 %v4343_v53 }
 0x186   : > { %3000 = vmatpush2.bf16.msra.mxu1 %v4346_v54  ;;  %2960 = vmatprep.subr.bf16.mxu0 %v4351_v63 }
 0x187   : > { %3001 = vmatprep.subr.bf16.mxu1 %v4354_v0 }
 0x189   : > { %2961 = vmatpush2.bf16.msra.mxu0 %v4349_v1 }
 0x18a   : > { %3002 = vmatpush2.bf16.msra.mxu1 %v4352_v2  ;;  %v3038_v2 = vrot.slane %v3029_v26, %v3037_v38 }
 0x18c   : > { %2963 = vmatmul.mubr.bf16.vlgmr.msra.gmra.mxu0 %v4615_v12  ;;  %v2055_v3 = vpop.f32.mrf.mxu0 }
 0x18d   : > { %3004 = vmatmul.mubr.bf16.vlgmr.msra.gmra.mxu1 %v4617_v13  ;;  %v2098_v4 = vpop.f32.mrf.mxu1 }
 0x18e   : > { %v2057_v5 = vpop.f32.mrf.mxu0  ;;  %v2099_v47 = vadd.f32 %v2098_v4, %v2055_v3 }
 0x18f   : > { %v2100_v7 = vpop.f32.mrf.mxu1 }
 0x190   : > { %v2059_v8 = vpop.f32.mrf.mxu0  ;;  %v2101_v51 = vadd.f32 %v2100_v7, %v2057_v5  ;;  %v3012_v39 = vrot.slane %v2099_v47, 2 }
 0x191   : > { %v2102_v10 = vpop.f32.mrf.mxu1 }
 0x192   : > { %v2061_v11 = vpop.f32.mrf.mxu0  ;;  %v2103_v44 = vadd.f32 %v2102_v10, %v2059_v8  ;;  %v3013_v62 = vrot.slane %v2101_v51, 2 }
 0x193   : > { %v2104_v14 = vpop.f32.mrf.mxu1 }
 0x194   : > { %v2105_v48 = vadd.f32 %v2104_v14, %v2061_v11  ;;  %v3016_v32 = vrot.slane %v2103_v44, 2 }
 0x196   : > { %v3017_v52 = vrot.slane %v2105_v48, 2  ;;  %v3021_v53 = vsel %vm3020_vm1, %v3012_v39, %v3016_v32 }
 0x198   : > { %v3022_v3 = vsel %vm3020_vm1, %v3013_v62, %v3017_v52 }
 0x1cc   : > { %v2141_v15 = vpop.f32.mrf.mxu0 }
 0x1cd   : > { %v2184_v16 = vpop.f32.mrf.mxu1 }
 0x1ce   : > { %v2185_v17 = vadd.f32 %v2184_v16, %v2141_v15  ;;  %v2143_v18 = vpop.f32.mrf.mxu0  ;;  %v3041_v15 = vsub.s32 2, %v5447_v57 }
 0x1cf   : > { %v2186_v19 = vpop.f32.mrf.mxu1 }
 0x1d0   : > { %v2187_v22 = vadd.f32 %v2186_v19, %v2143_v18  ;;  %v2145_v23 = vpop.f32.mrf.mxu0  ;;  %v3014_v13 = vrot.slane %v2185_v17, 2  ;;  %v3045_v19 = vsub.s32 3, %v5447_v57 }
 0x1d1   : > { %v2188_v24 = vpop.f32.mrf.mxu1 }
 0x1d2   : > { %v2189_v25 = vadd.f32 %v2188_v24, %v2145_v23  ;;  %v2147_v12 = vpop.f32.mrf.mxu0  ;;  %v3015_v31 = vrot.slane %v2187_v22, 2 }
 0x1d3   : > { %v2190_v28 = vpop.f32.mrf.mxu1 }
 0x1d4   : > { %v3018_v29 = vrot.slane %v2189_v25, 2  ;;  %v2191_v30 = vadd.f32 %v2190_v28, %v2147_v12  ;;  %v3042_v25 = vrot.slane %v3029_v26, %v3041_v15 }
 0x1d6   : > { %v3019_v34 = vrot.slane %v2191_v30, 2  ;;  %v3023_v35 = vsel %vm3020_vm1, %v3014_v13, %v3018_v29 }
 0x1d8   : > { %v5627_v36 = vsel %vm3020_vm1, %v3015_v31, %v3019_v34  ;;  %v3046_v31 = vrot.slane %v3029_v26, %v3045_v19 }
 0x20c   : > { %v2882_v21 = vpop.f32.mrf.mxu0 }
 0x20d   : > { %v2923_v33 = vpop.f32.mrf.mxu1  ;;  %v2883_v27 = vadd.f32 %v2882_v21, %v2204_v20 }
 0x20e   : > { %v2884_v56 = vpop.f32.mrf.mxu0 }
 0x20f   : > { %v2925_v58 = vpop.f32.mrf.mxu1  ;;  %v2924_v59 = vadd.f32 %v2923_v33, %v2883_v27  ;;  %v2885_v61 = vadd.f32 %v2884_v56, %v2205_v55 }
 0x210   : > { %v2886_v54 = vpop.f32.mrf.mxu0 }
 0x211   : > { %v2927_v63 = vpop.f32.mrf.mxu1  ;;  %v3025_v0 = vadd.f32 %v3021_v53, %v2924_v59  ;;  %v2926_v1 = vadd.f32 %v2925_v58, %v2885_v61 }
 0x212   : > { %v2887_v4 = vpop.f32.mrf.mxu0 }
 0x213   : > { %v2928_v5 = vpop.f32.mrf.mxu1  ;;  %v3051_v7 = vadd.f32 %v3034_v60, %v3025_v0  ;;  %v3026_v8 = vadd.f32 %v3022_v3, %v2926_v1 }
 0x215   : > { %v3055_v10 = vmax.f32 %v3051_v7, 0.0  ;;  %v3052_v11 = vadd.f32 %v3038_v2, %v3026_v8 }
 0x217   : > { %3059 = vst [vmem:[%s170_s17] sm:$0xff] %v3055_v10  ;;  %v3056_v14 = vmax.f32 %v3052_v11, 0.0 }
 0x219   : > { %3060 = vst [vmem:[%s170_s17 + $0x8] sm:$0xff] %v3056_v14 }
 0x24c   : > { %v2964_v16 = vpop.f32.mrf.mxu0 }
 0x24d   : > { %v3005_v17 = vpop.f32.mrf.mxu1  ;;  %v2965_v18 = vadd.f32 %v2964_v16, %v5470_v6 }
 0x24e   : > { %v2966_v22 = vpop.f32.mrf.mxu0 }
 0x24f   : > { %v3007_v23 = vpop.f32.mrf.mxu1  ;;  %v3006_v24 = vadd.f32 %v3005_v17, %v2965_v18  ;;  %v2967_v12 = vadd.f32 %v2966_v22, %v5480_v9 }
 0x250   : > { %v2968_v28 = vpop.f32.mrf.mxu0 }
 0x251   : > { %v3009_v13 = vpop.f32.mrf.mxu1  ;;  %v3027_v29 = vadd.f32 %v3023_v35, %v3006_v24  ;;  %v3008_v30 = vadd.f32 %v3007_v23, %v2967_v12 }
 0x252   : > { %v2969_v34 = vpop.f32.mrf.mxu0 }
 0x253   : > { %v3010_v37 = vpop.f32.mrf.mxu1  ;;  %v3053_v40 = vadd.f32 %v3042_v25, %v3027_v29  ;;  %v3028_v41 = vadd.f32 %v5627_v36, %v3008_v30 }
 0x255   : > { %v3057_v42 = vmax.f32 %v3053_v40, 0.0  ;;  %v3054_v6 = vadd.f32 %v3046_v31, %v3028_v41 }
 0x257   : > { %3061 = vst [vmem:[%s170_s17 + $0x10] sm:$0xff] %v3057_v42  ;;  %v3058_v57 = vmax.f32 %v3054_v6, 0.0 }
 0x259   : > { %3062 = vst [vmem:[%s170_s17 + $0x18] sm:$0xff] %v3058_v57 }
 0x25a PF: > { %s13_s12 = sadd.s32 1, %s4361_s12  }
 0x25b   : > { %p10_p4 = scmp.ge.s32.totalorder %s13_s12, 4  }
 0x25d   :  { %12 = sbr.rel (!%p10_p4) target bundleno = 1 (0x1), region = 64 }

// kernel: conformer_encoder_forward.7
= control target key start
LH: loop header
LB: loop body
LE: loop exit
PB: predicated region body
PF: predicated region fallthrough
CT: control target
= control target key end

     0   :  { %14 = vsyncpa [#allocation4], 0  ;;  %s4042_s30 = smov 0   ;;  %s4044_s10 = smov 0   ;;  %s4670_s0 = inlined_call_operand.vmem [shape: f32[16,512], index: 0, kind: input, shape index: {}]   ;;  %s4671_s1 = inlined_call_operand.vmem [shape: f32[2,1,512], index: 1, kind: input, shape index: {}]   ;;  %s4672_s2 = inlined_call_operand.vmem [shape: f32[2,1,512], index: 2, kind: input, shape index: {}]   ;;  %s4673_s3 = inlined_call_operand.vmem [shape: bf16[2,512,512], index: 3, kind: input, shape index: {}]   ;;  %s4674_s4 = inlined_call_operand.vmem [shape: f32[2,1,512], index: 4, kind: input, shape index: {}]   ;;  %s4675_s5 = inlined_call_operand.vmem [shape: bf16[2,512,512], index: 5, kind: input, shape index: {}]   ;;  %s4676_s6 = inlined_call_operand.vmem [shape: f32[2,1,512], index: 6, kind: input, shape index: {}]   ;;  %s4677_s7 = inlined_call_operand.vmem [shape: bf16[512,128], index: 7, kind: input, shape index: {}]   ;;  %s4678_s8 = inlined_call_operand.vmem [shape: f32[1,128], index: 8, kind: input, shape index: {}]   ;;  %s4679_s9 = inlined_call_operand.hbm [shape: f32[16,128], index: 9, kind: output, shape index: {}]  }
   0x1   :  { %s4046_s11 = smov 0  }
   0x2 LB: > { %s3093_s12 = sadd.s32 4294967295, %s3986_s11   ;;  %s29_s13 = sadd.s32 1, %s3982_s10  ;;  %s3986_s11 = sphi %s4046_s11, %s20_s11   ;;  %s3982_s10 = sphi %s4044_s10, %s4682_s10   ;;  %s3978_s30 = sphi %s4042_s30, %s4681_s30  }
   0x3   : > { %p30_p0 = scmp.ge.s32.totalorder %s29_s13, 2  ;;  %p3096_p1 = scmp.ge.s32.totalorder %s3986_s11, 1 }
   0x4   : > { %p302_p2 = scmp.lt.s32.totalorder %s3986_s11, 3 }
   0x5   : > { %s4684_s13 = smov (%p30_p0, %s29_s13), 0 }
   0x6   : > { %p303_p3 = pnand %p3096_p1, %p302_p2 }
   0x7   : > { %p3097_p4 = scmp.ne.s32.totalorder (!%p303_p3), %s3978_s30, 0 }
   0x8   : > { %306 = sbr.rel (%p303_p3) target bundleno = 1052 (0x41c), region = 56 }
   0xd   : > { %346 = sbr.rel (%p3097_p4) target bundleno = 23 (0x17), region = 60 }
  0x12   : > { %v347_v0 = vld [vmem:[%s4670_s0] sm:$0xff]  ;;  %v348_v1 = vld [vmem:[%s4670_s0 + $0x8] sm:$0xff]  ;;  %v349_v2 = vld [vmem:[%s4670_s0 + $0x10] sm:$0xff] }
  0x13   : > { %355 = vst [vmem:[#allocation2 + $0x30] sm:$0xff] %v347_v0  ;;  %356 = vst [vmem:[#allocation2] sm:$0xff] %v348_v1  ;;  %v350_v3 = vld [vmem:[%s4670_s0 + $0x18] sm:$0xff]  ;;  %v351_v4 = vld [vmem:[%s4670_s0 + $0x20] sm:$0xff] }
  0x14   : > { %357 = vst [vmem:[#allocation2 + $0x18] sm:$0xff] %v349_v2  ;;  %v352_v5 = vld [vmem:[%s4670_s0 + $0x28] sm:$0xff]  ;;  %358 = vst [vmem:[#allocation2 + $0x10] sm:$0xff] %v350_v3  ;;  %v353_v6 = vld [vmem:[%s4670_s0 + $0x30] sm:$0xff] }
  0x15   : > { %359 = vst [vmem:[#allocation2 + $0x8] sm:$0xff] %v351_v4  ;;  %360 = vst [vmem:[#allocation2 + $0x20] sm:$0xff] %v352_v5  ;;  %v354_v7 = vld [vmem:[%s4670_s0 + $0x38] sm:$0xff] }
  0x16   : > { %361 = vst [vmem:[#allocation2 + $0x28] sm:$0xff] %v353_v6  ;;  %362 = vst [vmem:[#allocation2 + $0x38] sm:$0xff] %v354_v7 }
  0x17 PF: > { %s3396_s14 = sshll.u32 %s3978_s30, 10  ;;  %s4210_s21 = sshll.u32 %s3978_s30, 2 }
  0x18   : > { %s4114_s17 = scalar_lea.vmem %s4673_s3, %s3396_s14  ;;  %s4207_s20 = scalar_lea.vmem %s4675_s5, %s3396_s14 }
  0x19   : > { %v3476_v27 = vld [vmem:[%s4114_s17 + $0xe4] ss:$16 sps:$4 sm:$0xff]   ;;  %v3480_v31 = vld [vmem:[%s4114_s17 + $0xe0] ss:$16 sps:$4 sm:$0xff]   ;;  %s689_s24 = scalar_lea.vmem %s4671_s1, %s4210_s21  ;;  %s720_s27 = scalar_lea.vmem %s4672_s2, %s4210_s21 }
  0x1a   : > { %v4088_v8 = vld [vmem:[#allocation2 + $0x30] sm:$0xff]  ;;  %v4090_v9 = vld [vmem:[#allocation2] sm:$0xff]  ;;  %1418 = vmatprep.subr.bf16.mxu0 %v3476_v27  ;;  %s755_s14 = scalar_lea.vmem %s4674_s4, %s4210_s21  ;;  %p3358_p5 = scmp.ne.s32.totalorder %s3978_s30, 1 }
  0x1b   : > { %v4092_v10 = vld [vmem:[#allocation2 + $0x18] sm:$0xff]  ;;  %v4095_v11 = vld [vmem:[#allocation2 + $0x10] sm:$0xff]  ;;  %v632_v12 = vadd.f32 %v4090_v9, %v4088_v8  ;;  %v644_v13 = vmul.f32 %v4088_v8, %v4088_v8  ;;  %v645_v14 = vmul.f32 %v4090_v9, %v4090_v9  ;;  %1419 = vmatpush1.bf16.msra.mxu0 %v3480_v31 }
  0x1c   : > { %v646_v15 = vmul.f32 %v4092_v10, %v4092_v10  ;;  %v4105_v16 = vld [vmem:[#allocation2 + $0x8] sm:$0xff]  ;;  %v4107_v17 = vld [vmem:[#allocation2 + $0x20] sm:$0xff]  ;;  %v647_v24 = vmul.f32 %v4095_v11, %v4095_v11 }
  0x1d   : > { %v4116_v18 = vld [vmem:[#allocation2 + $0x28] sm:$0xff]  ;;  %v4118_v19 = vld [vmem:[#allocation2 + $0x38] sm:$0xff]  ;;  %v637_v20 = vadd.f32 %v4107_v17, %v4105_v16  ;;  %v648_v21 = vmul.f32 %v4105_v16, %v4105_v16  ;;  %v649_v22 = vmul.f32 %v4107_v17, %v4107_v17  ;;  %v633_v23 = vadd.f32 %v632_v12, %v4092_v10  ;;  %v3478_v30 = vld [vmem:[%s4114_s17 + $0x2e4] ss:$16 sps:$4 sm:$0xff]  }
  0x1e   : > { %v652_v25 = vadd.f32 %v645_v14, %v644_v13  ;;  %v650_v26 = vmul.f32 %v4116_v18, %v4116_v18  ;;  %v651_v34 = vmul.f32 %v4118_v19, %v4118_v19  ;;  %v3481_v35 = vld [vmem:[%s4114_s17 + $0x2e0] ss:$16 sps:$4 sm:$0xff]   ;;  %1461 = vmatprep.subr.bf16.mxu1 %v3478_v30  ;;  %v3482_v37 = vld [vmem:[%s4114_s17 + $0xc4] ss:$16 sps:$4 sm:$0xff]  }
  0x1f   : > { %v638_v28 = vadd.f32 %v637_v20, %v4116_v18  ;;  %v657_v29 = vadd.f32 %v649_v22, %v648_v21  ;;  %v634_v32 = vadd.f32 %v633_v23, %v4095_v11  ;;  %1462 = vmatpush1.bf16.msra.mxu1 %v3481_v35  ;;  %v3484_v40 = vld [vmem:[%s4114_s17 + $0x2c4] ss:$16 sps:$4 sm:$0xff]   ;;  %v3486_v41 = vld [vmem:[%s4114_s17 + $0xc0] ss:$16 sps:$4 sm:$0xff]   ;;  %1420 = vmatprep.subr.bf16.mxu0 %v3482_v37 }
  0x20   : > { %v653_v33 = vadd.f32 %v652_v25, %v646_v15  ;;  %v3487_v42 = vld [vmem:[%s4114_s17 + $0x2c0] ss:$16 sps:$4 sm:$0xff]   ;;  %v3488_v43 = vld [vmem:[%s4114_s17 + $0xa4] ss:$16 sps:$4 sm:$0xff]   ;;  %1463 = vmatprep.subr.bf16.mxu1 %v3484_v40  ;;  %1421 = vmatpush1.bf16.msra.mxu0 %v3486_v41 }
  0x21   : > { %v658_v36 = vadd.f32 %v657_v29, %v650_v26  ;;  %635 = vadd.xlane.f32.xlu0 %v634_v32  ;;  %v639_v39 = vadd.f32 %v638_v28, %v4118_v19  ;;  %v3490_v45 = vld [vmem:[%s4114_s17 + $0x2a4] ss:$16 sps:$4 sm:$0xff]   ;;  %v3492_v46 = vld [vmem:[%s4114_s17 + $0xa0] ss:$16 sps:$4 sm:$0xff]   ;;  %1422 = vmatprep.subr.bf16.mxu0 %v3488_v43 }
  0x22   : > { %v654_v38 = vadd.f32 %v653_v33, %v647_v24  ;;  %v3493_v47 = vld [vmem:[%s4114_s17 + $0x2a0] ss:$16 sps:$4 sm:$0xff]   ;;  %v3494_v48 = vld [vmem:[%s4114_s17 + $0x84] ss:$16 sps:$4 sm:$0xff]  }
  0x23   : > { %v659_v44 = vadd.f32 %v658_v36, %v651_v34  ;;  %1464 = vmatpush1.bf16.msra.mxu1 %v3487_v42  ;;  %v3496_v49 = vld [vmem:[%s4114_s17 + $0x284] ss:$16 sps:$4 sm:$0xff]   ;;  %v3498_v50 = vld [vmem:[%s4114_s17 + $0x80] ss:$16 sps:$4 sm:$0xff]  }
  0x24   : > { %655 = vadd.xlane.f32.xlu1 %v654_v38  ;;  %1465 = vmatprep.subr.bf16.mxu1 %v3490_v45  ;;  %v3499_v51 = vld [vmem:[%s4114_s17 + $0x280] ss:$16 sps:$4 sm:$0xff]   ;;  %v3500_v52 = vld [vmem:[%s4114_s17 + $0x64] ss:$16 sps:$4 sm:$0xff]   ;;  %v3577_v45 = vld [vmem:[%s4114_s17 + $0x2ec] ss:$16 sps:$4 sm:$0xff]  }
  0x25   : > { %640 = vadd.xlane.f32.xlu0 %v639_v39  ;;  %1423 = vmatpush1.bf16.msra.mxu0 %v3492_v46  ;;  %v3502_v53 = vld [vmem:[%s4114_s17 + $0x264] ss:$16 sps:$4 sm:$0xff]   ;;  %v3504_v54 = vld [vmem:[%s4114_s17 + $0x60] ss:$16 sps:$4 sm:$0xff]  }
  0x26   : > { %1424 = vmatprep.subr.bf16.mxu0 %v3494_v48  ;;  %v3505_v55 = vld [vmem:[%s4114_s17 + $0x260] ss:$16 sps:$4 sm:$0xff]   ;;  %v3506_v56 = vld [vmem:[%s4114_s17 + $0x44] ss:$16 sps:$4 sm:$0xff]  }
  0x27   : > { %1466 = vmatpush1.bf16.msra.mxu1 %v3493_v47  ;;  %v3508_v57 = vld [vmem:[%s4114_s17 + $0x244] ss:$16 sps:$4 sm:$0xff]   ;;  %v3510_v58 = vld [vmem:[%s4114_s17 + $0x40] ss:$16 sps:$4 sm:$0xff]  }
  0x28   : > { %660 = vadd.xlane.f32.xlu1 %v659_v44  ;;  %1467 = vmatprep.subr.bf16.mxu1 %v3496_v49  ;;  %v3511_v59 = vld [vmem:[%s4114_s17 + $0x240] ss:$16 sps:$4 sm:$0xff]   ;;  %v3512_v60 = vld [vmem:[%s4114_s17 + $0x24] ss:$16 sps:$4 sm:$0xff]   ;;  %v3574_v44 = vld [vmem:[%s4114_s17 + $0xec] ss:$16 sps:$4 sm:$0xff]  }
  0x29   : > { %1425 = vmatpush1.bf16.msra.mxu0 %v3498_v50  ;;  %v3514_v61 = vld [vmem:[%s4114_s17 + $0x224] ss:$16 sps:$4 sm:$0xff]   ;;  %v3516_v62 = vld [vmem:[%s4114_s17 + $0x20] ss:$16 sps:$4 sm:$0xff]  }
  0x2a   : > { %1426 = vmatprep.subr.bf16.mxu0 %v3500_v52  ;;  %v3517_v63 = vld [vmem:[%s4114_s17 + $0x220] ss:$16 sps:$4 sm:$0xff]   ;;  %v3518_v0 = vld [vmem:[%s4114_s17 + $0x4] ss:$16 sps:$4 sm:$0xff]  }
  0x2b   : > { %1468 = vmatpush1.bf16.msra.mxu1 %v3499_v51  ;;  %v3520_v1 = vld [vmem:[%s4114_s17 + $0x204] ss:$16 sps:$4 sm:$0xff]   ;;  %v3522_v2 = vld [vmem:[%s4114_s17] ss:$16 sps:$4 sm:$0xff]  }
  0x2c   : > { %1469 = vmatprep.subr.bf16.mxu1 %v3502_v53  ;;  %v3523_v3 = vld [vmem:[%s4114_s17 + $0x200] ss:$16 sps:$4 sm:$0xff]   ;;  %v3524_v4 = vld [vmem:[%s4114_s17 + $0x1e4] ss:$16 sps:$4 sm:$0xff]  }
  0x2d   : > { %1427 = vmatpush1.bf16.msra.mxu0 %v3504_v54  ;;  %v3526_v5 = vld [vmem:[%s4114_s17 + $0x3e4] ss:$16 sps:$4 sm:$0xff]   ;;  %v3528_v6 = vld [vmem:[%s4114_s17 + $0x1e0] ss:$16 sps:$4 sm:$0xff]  }
  0x2e   : > { %1428 = vmatprep.subr.bf16.mxu0 %v3506_v56  ;;  %v3529_v7 = vld [vmem:[%s4114_s17 + $0x3e0] ss:$16 sps:$4 sm:$0xff]   ;;  %v3530_v12 = vld [vmem:[%s4114_s17 + $0x1c4] ss:$16 sps:$4 sm:$0xff]  }
  0x2f   : > { %1470 = vmatpush1.bf16.msra.mxu1 %v3505_v55  ;;  %v3532_v13 = vld [vmem:[%s4114_s17 + $0x3c4] ss:$16 sps:$4 sm:$0xff]   ;;  %v3534_v14 = vld [vmem:[%s4114_s17 + $0x1c0] ss:$16 sps:$4 sm:$0xff]  }
  0x30   : > { %1471 = vmatprep.subr.bf16.mxu1 %v3508_v57  ;;  %v3535_v15 = vld [vmem:[%s4114_s17 + $0x3c0] ss:$16 sps:$4 sm:$0xff]   ;;  %v3536_v20 = vld [vmem:[%s4114_s17 + $0x1a4] ss:$16 sps:$4 sm:$0xff]  }
  0x31   : > { %1429 = vmatpush1.bf16.msra.mxu0 %v3510_v58  ;;  %v3538_v21 = vld [vmem:[%s4114_s17 + $0x3a4] ss:$16 sps:$4 sm:$0xff]   ;;  %v3540_v22 = vld [vmem:[%s4114_s17 + $0x1a0] ss:$16 sps:$4 sm:$0xff]  }
  0x32   : > { %1430 = vmatprep.subr.bf16.mxu0 %v3512_v60  ;;  %v3541_v23 = vld [vmem:[%s4114_s17 + $0x3a0] ss:$16 sps:$4 sm:$0xff]   ;;  %v3542_v24 = vld [vmem:[%s4114_s17 + $0x184] ss:$16 sps:$4 sm:$0xff]   ;;  %v692_v60 = vlaneseq }
  0x33   : > { %1472 = vmatpush1.bf16.msra.mxu1 %v3511_v59  ;;  %v3544_v25 = vld [vmem:[%s4114_s17 + $0x384] ss:$16 sps:$4 sm:$0xff]   ;;  %v3546_v26 = vld [vmem:[%s4114_s17 + $0x180] ss:$16 sps:$4 sm:$0xff]  }
  0x34   : > { %1473 = vmatprep.subr.bf16.mxu1 %v3514_v61  ;;  %v3547_v27 = vld [vmem:[%s4114_s17 + $0x380] ss:$16 sps:$4 sm:$0xff]   ;;  %v3548_v28 = vld [vmem:[%s4114_s17 + $0x164] ss:$16 sps:$4 sm:$0xff]   ;;  %v693_v61 = vshrl.u32 %v692_v60, 7 }
  0x35   : > { %1431 = vmatpush1.bf16.msra.mxu0 %v3516_v62  ;;  %v3550_v29 = vld [vmem:[%s4114_s17 + $0x364] ss:$16 sps:$4 sm:$0xff]   ;;  %v3552_v30 = vld [vmem:[%s4114_s17 + $0x160] ss:$16 sps:$4 sm:$0xff]   ;;  %v3592_v60 = vld [vmem:[%s4114_s17 + $0x8c] ss:$16 sps:$4 sm:$0xff]  }
  0x36   : > { %1432 = vmatprep.subr.bf16.mxu0 %v3518_v0  ;;  %v3553_v31 = vld [vmem:[%s4114_s17 + $0x360] ss:$16 sps:$4 sm:$0xff]   ;;  %v3554_v32 = vld [vmem:[%s4114_s17 + $0x144] ss:$16 sps:$4 sm:$0xff]   ;;  %v4216_v62 = vsub.s32 1, %v693_v61 }
  0x37   : > { %1474 = vmatpush1.bf16.msra.mxu1 %v3517_v63  ;;  %v3556_v33 = vld [vmem:[%s4114_s17 + $0x344] ss:$16 sps:$4 sm:$0xff]   ;;  %v3558_v34 = vld [vmem:[%s4114_s17 + $0x140] ss:$16 sps:$4 sm:$0xff]   ;;  %v4222_v63 = vsub.s32 3, %v693_v61 }
  0x38   : > { %1475 = vmatprep.subr.bf16.mxu1 %v3520_v1  ;;  %v3559_v35 = vld [vmem:[%s4114_s17 + $0x340] ss:$16 sps:$4 sm:$0xff]   ;;  %v3560_v36 = vld [vmem:[%s4114_s17 + $0x124] ss:$16 sps:$4 sm:$0xff]   ;;  %v4224_v1 = vsub.s32 0, %v693_v61 }
  0x39   : > { %1433 = vmatpush1.bf16.msra.mxu0 %v3522_v2  ;;  %v3562_v37 = vld [vmem:[%s4114_s17 + $0x324] ss:$16 sps:$4 sm:$0xff]   ;;  %v3564_v38 = vld [vmem:[%s4114_s17 + $0x120] ss:$16 sps:$4 sm:$0xff]   ;;  %v4226_v2 = vsub.s32 2, %v693_v61 }
  0x3a   : > { %1434 = vmatprep.subr.bf16.mxu0 %v3524_v4  ;;  %v3565_v39 = vld [vmem:[%s4114_s17 + $0x320] ss:$16 sps:$4 sm:$0xff]   ;;  %v3566_v40 = vld [vmem:[%s4114_s17 + $0x104] ss:$16 sps:$4 sm:$0xff]   ;;  %v3595_v61 = vld [vmem:[%s4114_s17 + $0x28c] ss:$16 sps:$4 sm:$0xff]  }
  0x3b   : > { %1476 = vmatpush1.bf16.msra.mxu1 %v3523_v3  ;;  %v3568_v41 = vld [vmem:[%s4114_s17 + $0x304] ss:$16 sps:$4 sm:$0xff]   ;;  %v3570_v42 = vld [vmem:[%s4114_s17 + $0x100] ss:$16 sps:$4 sm:$0xff]  }
  0x3c   : > { %1477 = vmatprep.subr.bf16.mxu1 %v3526_v5  ;;  %v3571_v43 = vld [vmem:[%s4114_s17 + $0x300] ss:$16 sps:$4 sm:$0xff]  }
  0x3d   : > { %1435 = vmatpush2.bf16.msra.mxu0 %v3528_v6  ;;  %v690_v0 = vld [vmem:[%s689_s24] sm:$0xf] }
  0x3e   : > { %1436 = vmatprep.subr.bf16.mxu0 %v3530_v12  ;;  %v721_v6 = vld [vmem:[%s720_s27] sm:$0xf] }
  0x3f   : > { %1478 = vmatpush2.bf16.msra.mxu1 %v3529_v7 }
  0x40   : > { %1479 = vmatprep.subr.bf16.mxu1 %v3532_v13 }
  0x41   : > { %1437 = vmatpush2.bf16.msra.mxu0 %v3534_v14  ;;  %v699_v14 = vrot.slane %v690_v0, %v4216_v62 }
  0x42   : > { %1438 = vmatprep.subr.bf16.mxu0 %v3536_v20  ;;  %v707_v20 = vrot.slane %v690_v0, %v4222_v63 }
  0x43   : > { %1480 = vmatpush2.bf16.msra.mxu1 %v3535_v15 }
  0x44   : > { %1481 = vmatprep.subr.bf16.mxu1 %v3538_v21 }
  0x45   : > { %1439 = vmatpush2.bf16.msra.mxu0 %v3540_v22  ;;  %v695_v22 = vrot.slane %v690_v0, %v4224_v1 }
  0x46   : > { %1440 = vmatprep.subr.bf16.mxu0 %v3542_v24  ;;  %v730_v24 = vrot.slane %v721_v6, %v4216_v62 }
  0x47   : > { %1482 = vmatpush2.bf16.msra.mxu1 %v3541_v23 }
  0x48   : > { %1483 = vmatprep.subr.bf16.mxu1 %v3544_v25 }
  0x49   : > { %1441 = vmatpush2.bf16.msra.mxu0 %v3546_v26 }
  0x4a   : > { %1442 = vmatprep.subr.bf16.mxu0 %v3548_v28 }
  0x4b   : > { %1484 = vmatpush2.bf16.msra.mxu1 %v3547_v27  ;;  %v726_v27 = vrot.slane %v721_v6, %v4224_v1 }
  0x4c   : > { %1485 = vmatprep.subr.bf16.mxu1 %v3550_v29  ;;  %v734_v29 = vrot.slane %v721_v6, %v4226_v2 }
  0x4d   : > { %1443 = vmatpush2.bf16.msra.mxu0 %v3552_v30 }
  0x4e   : > { %1444 = vmatprep.subr.bf16.mxu0 %v3554_v32 }
  0x4f   : > { %1486 = vmatpush2.bf16.msra.mxu1 %v3553_v31 }
  0x50   : > { %1487 = vmatprep.subr.bf16.mxu1 %v3556_v33 }
  0x51   : > { %1445 = vmatpush2.bf16.msra.mxu0 %v3558_v34 }
  0x52   : > { %1446 = vmatprep.subr.bf16.mxu0 %v3560_v36 }
  0x53   : > { %1488 = vmatpush2.bf16.msra.mxu1 %v3559_v35 }
  0x54   : > { %1489 = vmatprep.subr.bf16.mxu1 %v3562_v37 }
  0x55   : > { %1447 = vmatpush2.bf16.msra.mxu0 %v3564_v38 }
  0x56   : > { %1448 = vmatprep.subr.bf16.mxu0 %v3566_v40 }
  0x57   : > { %1490 = vmatpush2.bf16.msra.mxu1 %v3565_v39 }
  0x58   : > { %1491 = vmatprep.subr.bf16.mxu1 %v3568_v41 }
  0x59   : > { %1449 = vmatpush2.bf16.msra.mxu0 %v3570_v42 }
  0x5a   : > { %1504 = vmatprep.subr.bf16.mxu0 %v3574_v44 }
  0x5b   : > { %1492 = vmatpush2.bf16.msra.mxu1 %v3571_v43 }
  0x5c   : > { %1547 = vmatprep.subr.bf16.mxu1 %v3577_v45 }
  0xaa   : > { %v636_v46 = vpop.xlane.xlu0 %635 }
  0xab   : > { %v642_v47 = vmul.f32 0.001953125, %v636_v46 }
  0xad   : > { %v656_v48 = vpop.xlane.xlu1 %655  ;;  %v664_v50 = vmul.f32 %v642_v47, %v642_v47  ;;  %v669_v3 = vsub.f32 %v4090_v9, %v642_v47  ;;  %v671_v4 = vsub.f32 %v4095_v11, %v642_v47  ;;  %v668_v7 = vsub.f32 %v4088_v8, %v642_v47 }
  0xae   : > { %v662_v49 = vmul.f32 0.001953125, %v656_v48  ;;  %v641_v51 = vpop.xlane.xlu0 %640  ;;  %v670_v12 = vsub.f32 %v4092_v10, %v642_v47  ;;  %v703_v9 = vrot.slane %v690_v0, %v4226_v2  ;;  %v738_v10 = vrot.slane %v721_v6, %v4222_v63  ;;  %v3572_v48 = vld [vmem:[%s4114_s17 + $0xe8] ss:$16 sps:$4 sm:$0xff]  }
  0xaf   : > { %v643_v53 = vmul.f32 0.001953125, %v641_v51  ;;  %v3590_v0 = vld [vmem:[%s4114_s17 + $0x88] ss:$16 sps:$4 sm:$0xff]  }
  0xb0   : > { %v666_v52 = vsub.f32 %v662_v49, %v664_v50  ;;  %v3575_v49 = vld [vmem:[%s4114_s17 + $0x2e8] ss:$16 sps:$4 sm:$0xff]  }
  0xb1   : > { %v661_v54 = vpop.xlane.xlu1 %660  ;;  %v665_v57 = vmul.f32 %v643_v53, %v643_v53  ;;  %v673_v11 = vsub.f32 %v4107_v17, %v643_v53  ;;  %v675_v8 = vsub.f32 %v4118_v19, %v643_v53  ;;  %v672_v26 = vsub.f32 %v4105_v16, %v643_v53  ;;  %v3596_v6 = vld [vmem:[%s4114_s17 + $0x68] ss:$16 sps:$4 sm:$0xff]  }
  0xb2   : > { %v676_v55 = vadd.f32 1e-05, %v666_v52  ;;  %v663_v56 = vmul.f32 0.001953125, %v661_v54  ;;  %v674_v28 = vsub.f32 %v4116_v18, %v643_v53  ;;  %v3580_v52 = vld [vmem:[%s4114_s17 + $0xcc] ss:$16 sps:$4 sm:$0xff]  }
  0xb3   : > { %v3583_v53 = vld [vmem:[%s4114_s17 + $0x2cc] ss:$16 sps:$4 sm:$0xff]   ;;  %v3578_v54 = vld [vmem:[%s4114_s17 + $0xc8] ss:$16 sps:$4 sm:$0xff]  }
  0xb4   : > { %3860 = vrsqrt.f32 %v676_v55  ;;  %v667_v58 = vsub.f32 %v663_v56, %v665_v57  ;;  %v3581_v55 = vld [vmem:[%s4114_s17 + $0x2c8] ss:$16 sps:$4 sm:$0xff]   ;;  %v3586_v56 = vld [vmem:[%s4114_s17 + $0xac] ss:$16 sps:$4 sm:$0xff]  }
  0xb5   : > { %v3589_v57 = vld [vmem:[%s4114_s17 + $0x2ac] ss:$16 sps:$4 sm:$0xff]  }
  0xb6   : > { %v677_v59 = vadd.f32 1e-05, %v667_v58  ;;  %v3584_v58 = vld [vmem:[%s4114_s17 + $0xa8] ss:$16 sps:$4 sm:$0xff]  }
  0xb8   : > { %3862 = vrsqrt.f32 %v677_v59  ;;  %v3587_v59 = vld [vmem:[%s4114_s17 + $0x2a8] ss:$16 sps:$4 sm:$0xff]  }
  0xc1   : > { %v3861_v5 = vpop.eup %3860 }
  0xc2   : > { %v681_v13 = vmul.f32 %v3861_v5, %v669_v3  ;;  %v683_v15 = vmul.f32 %v3861_v5, %v671_v4  ;;  %v680_v21 = vmul.f32 %v3861_v5, %v668_v7  ;;  %v682_v23 = vmul.f32 %v3861_v5, %v670_v12  ;;  %v3593_v3 = vld [vmem:[%s4114_s17 + $0x288] ss:$16 sps:$4 sm:$0xff]   ;;  %v3598_v4 = vld [vmem:[%s4114_s17 + $0x6c] ss:$16 sps:$4 sm:$0xff]  }
  0xc3   : > { %v3601_v5 = vld [vmem:[%s4114_s17 + $0x26c] ss:$16 sps:$4 sm:$0xff]   ;;  %v3599_v7 = vld [vmem:[%s4114_s17 + $0x268] ss:$16 sps:$4 sm:$0xff]  }
  0xc4   : > { %v713_v31 = vmul.f32 %v699_v14, %v681_v13  ;;  %v715_v33 = vmul.f32 %v707_v20, %v683_v15  ;;  %v712_v34 = vmul.f32 %v695_v22, %v680_v21  ;;  %v714_v19 = vmul.f32 %v703_v9, %v682_v23  ;;  %v3604_v12 = vld [vmem:[%s4114_s17 + $0x4c] ss:$16 sps:$4 sm:$0xff]   ;;  %v3605_v15 = vld [vmem:[%s4114_s17 + $0x248] ss:$16 sps:$4 sm:$0xff]  }
  0xc5   : > { %v3863_v25 = vpop.eup %3862  ;;  %v3607_v13 = vld [vmem:[%s4114_s17 + $0x24c] ss:$16 sps:$4 sm:$0xff]   ;;  %v3611_v23 = vld [vmem:[%s4114_s17 + $0x228] ss:$16 sps:$4 sm:$0xff]  }
  0xc6   : > { %v685_v30 = vmul.f32 %v3863_v25, %v673_v11  ;;  %v687_v32 = vmul.f32 %v3863_v25, %v675_v8  ;;  %v684_v17 = vmul.f32 %v3863_v25, %v672_v26  ;;  %v686_v35 = vmul.f32 %v3863_v25, %v674_v28  ;;  %v3613_v21 = vld [vmem:[%s4114_s17 + $0x22c] ss:$16 sps:$4 sm:$0xff]   ;;  %v3617_v8 = vld [vmem:[%s4114_s17 + $0x208] ss:$16 sps:$4 sm:$0xff]  }
  0xc7   : > { %v744_v39 = vadd.f32 %v730_v24, %v713_v31  ;;  %v746_v18 = vadd.f32 %v738_v10, %v715_v33  ;;  %v743_v42 = vadd.f32 %v726_v27, %v712_v34  ;;  %v745_v44 = vadd.f32 %v734_v29, %v714_v19  ;;  %v3619_v11 = vld [vmem:[%s4114_s17 + $0x20c] ss:$16 sps:$4 sm:$0xff]   ;;  %v3620_v26 = vld [vmem:[%s4114_s17 + $0x1e8] ss:$16 sps:$4 sm:$0xff]  }
  0xc8   : > { %v717_v36 = vmul.f32 %v699_v14, %v685_v30  ;;  %v719_v37 = vmul.f32 %v707_v20, %v687_v32  ;;  %v716_v38 = vmul.f32 %v695_v22, %v684_v17  ;;  %v718_v16 = vmul.f32 %v703_v9, %v686_v35  ;;  %v3602_v14 = vld [vmem:[%s4114_s17 + $0x48] ss:$16 sps:$4 sm:$0xff]   ;;  %v3610_v20 = vld [vmem:[%s4114_s17 + $0x2c] ss:$16 sps:$4 sm:$0xff]  }
  0xc9   : > { %v3608_v22 = vld [vmem:[%s4114_s17 + $0x28] ss:$16 sps:$4 sm:$0xff]   ;;  %v3616_v9 = vld [vmem:[%s4114_s17 + $0xc] ss:$16 sps:$4 sm:$0xff]  }
  0xca   : > { %v748_v40 = vadd.f32 %v730_v24, %v717_v36  ;;  %v750_v41 = vadd.f32 %v738_v10, %v719_v37  ;;  %v747_v43 = vadd.f32 %v726_v27, %v716_v38  ;;  %v749_v45 = vadd.f32 %v734_v29, %v718_v16  ;;  %v3614_v24 = vld [vmem:[%s4114_s17 + $0x8] ss:$16 sps:$4 sm:$0xff]   ;;  %v3622_v10 = vld [vmem:[%s4114_s17 + $0x1ec] ss:$16 sps:$4 sm:$0xff]  }
  0xcb   : > { %v3625_v25 = vld [vmem:[%s4114_s17 + $0x3ec] ss:$16 sps:$4 sm:$0xff]   ;;  %v3623_v27 = vld [vmem:[%s4114_s17 + $0x3e8] ss:$16 sps:$4 sm:$0xff]  }
  0xcc   : > { %v752_v46 = vpack.c.bf16 %v748_v40, %v744_v39  ;;  %v754_v47 = vpack.c.bf16 %v750_v41, %v746_v18  ;;  %v4246_v50 = vpack.c.bf16 %v747_v43, %v743_v42  ;;  %v4248_v51 = vpack.c.bf16 %v749_v45, %v745_v44  ;;  %v3628_v28 = vld [vmem:[%s4114_s17 + $0x1cc] ss:$16 sps:$4 sm:$0xff]   ;;  %v3626_v30 = vld [vmem:[%s4114_s17 + $0x1c8] ss:$16 sps:$4 sm:$0xff]  }
  0xcd   : > { %v3631_v29 = vld [vmem:[%s4114_s17 + $0x3cc] ss:$16 sps:$4 sm:$0xff]   ;;  %v3629_v31 = vld [vmem:[%s4114_s17 + $0x3c8] ss:$16 sps:$4 sm:$0xff]  }
  0xce   : > { %1450 = vmatprep.mubr.bf16.mxu0 %v752_v46  ;;  %1493 = vmatprep.mubr.bf16.mxu1 %v754_v47  ;;  %v3634_v32 = vld [vmem:[%s4114_s17 + $0x1ac] ss:$16 sps:$4 sm:$0xff]   ;;  %v3632_v17 = vld [vmem:[%s4114_s17 + $0x1a8] ss:$16 sps:$4 sm:$0xff]  }
  0xcf   : > { %1451 = vmatmul.mubr.bf16.vlgmr.msra.gmra.mxu0 %v4246_v50  ;;  %1494 = vmatmul.mubr.bf16.vlgmr.msra.gmra.mxu1 %v4248_v51  ;;  %v3637_v33 = vld [vmem:[%s4114_s17 + $0x3ac] ss:$16 sps:$4 sm:$0xff]   ;;  %v3635_v34 = vld [vmem:[%s4114_s17 + $0x3a8] ss:$16 sps:$4 sm:$0xff]  }
  0xd0   : > { %1505 = vmatpush1.bf16.msra.mxu0 %v3572_v48  ;;  %1548 = vmatpush1.bf16.msra.mxu1 %v3575_v49  ;;  %v3640_v35 = vld [vmem:[%s4114_s17 + $0x18c] ss:$16 sps:$4 sm:$0xff]   ;;  %v3638_v36 = vld [vmem:[%s4114_s17 + $0x188] ss:$16 sps:$4 sm:$0xff]  }
  0xd1   : > { %1536 = vmatprep.mubr.bf16.mxu0 %v752_v46  ;;  %1579 = vmatprep.mubr.bf16.mxu1 %v754_v47  ;;  %v3643_v19 = vld [vmem:[%s4114_s17 + $0x38c] ss:$16 sps:$4 sm:$0xff]   ;;  %v3641_v37 = vld [vmem:[%s4114_s17 + $0x388] ss:$16 sps:$4 sm:$0xff]  }
  0xd2   : > { %1506 = vmatprep.subr.bf16.mxu0 %v3580_v52  ;;  %1549 = vmatprep.subr.bf16.mxu1 %v3583_v53  ;;  %v3646_v38 = vld [vmem:[%s4114_s17 + $0x16c] ss:$16 sps:$4 sm:$0xff]   ;;  %v3644_v39 = vld [vmem:[%s4114_s17 + $0x168] ss:$16 sps:$4 sm:$0xff]  }
  0xd3   : > { %v3649_v16 = vld [vmem:[%s4114_s17 + $0x36c] ss:$16 sps:$4 sm:$0xff]   ;;  %v3647_v40 = vld [vmem:[%s4114_s17 + $0x368] ss:$16 sps:$4 sm:$0xff]  }
  0xd4   : > { %1507 = vmatpush1.bf16.msra.mxu0 %v3578_v54  ;;  %1550 = vmatpush1.bf16.msra.mxu1 %v3581_v55  ;;  %v3652_v18 = vld [vmem:[%s4114_s17 + $0x14c] ss:$16 sps:$4 sm:$0xff]   ;;  %v3650_v42 = vld [vmem:[%s4114_s17 + $0x148] ss:$16 sps:$4 sm:$0xff]   ;;  %v3670_v54 = vld [vmem:[%s4207_s20 + $0xe4] ss:$16 sps:$4 sm:$0xff]  }
  0xd5   : > { %1508 = vmatprep.subr.bf16.mxu0 %v3586_v56  ;;  %1551 = vmatprep.subr.bf16.mxu1 %v3589_v57  ;;  %v3655_v41 = vld [vmem:[%s4114_s17 + $0x34c] ss:$16 sps:$4 sm:$0xff]   ;;  %v3653_v43 = vld [vmem:[%s4114_s17 + $0x348] ss:$16 sps:$4 sm:$0xff]   ;;  %v3668_v55 = vld [vmem:[%s4207_s20 + $0xe0] ss:$16 sps:$4 sm:$0xff]  }
  0xd6   : > { %v3658_v44 = vld [vmem:[%s4114_s17 + $0x12c] ss:$16 sps:$4 sm:$0xff]   ;;  %v3656_v46 = vld [vmem:[%s4114_s17 + $0x128] ss:$16 sps:$4 sm:$0xff]   ;;  %v3673_v56 = vld [vmem:[%s4207_s20 + $0xc4] ss:$16 sps:$4 sm:$0xff]  }
  0xd7   : > { %v3661_v45 = vld [vmem:[%s4114_s17 + $0x32c] ss:$16 sps:$4 sm:$0xff]   ;;  %v3659_v47 = vld [vmem:[%s4114_s17 + $0x328] ss:$16 sps:$4 sm:$0xff]   ;;  %v3671_v57 = vld [vmem:[%s4207_s20 + $0xc0] ss:$16 sps:$4 sm:$0xff]  }
  0xd8   : > { %1509 = vmatpush1.bf16.msra.mxu0 %v3584_v58  ;;  %1552 = vmatpush1.bf16.msra.mxu1 %v3587_v59  ;;  %v3664_v48 = vld [vmem:[%s4114_s17 + $0x10c] ss:$16 sps:$4 sm:$0xff]   ;;  %v3662_v52 = vld [vmem:[%s4114_s17 + $0x108] ss:$16 sps:$4 sm:$0xff]   ;;  %v3676_v58 = vld [vmem:[%s4207_s20 + $0xa4] ss:$16 sps:$4 sm:$0xff]  }
  0xd9   : > { %1510 = vmatprep.subr.bf16.mxu0 %v3592_v60  ;;  %1553 = vmatprep.subr.bf16.mxu1 %v3595_v61  ;;  %v3667_v49 = vld [vmem:[%s4114_s17 + $0x30c] ss:$16 sps:$4 sm:$0xff]   ;;  %v3665_v53 = vld [vmem:[%s4114_s17 + $0x308] ss:$16 sps:$4 sm:$0xff]   ;;  %v3674_v59 = vld [vmem:[%s4207_s20 + $0xa0] ss:$16 sps:$4 sm:$0xff]   ;;  %s1802_s17 = scalar_lea.vmem %s4676_s6, %s4210_s21 }
  0xda   : > { %v3679_v60 = vld [vmem:[%s4207_s20 + $0x84] ss:$16 sps:$4 sm:$0xff]   ;;  %v3677_v61 = vld [vmem:[%s4207_s20 + $0x80] ss:$16 sps:$4 sm:$0xff]  }
  0xdc   : > { %1511 = vmatpush1.bf16.msra.mxu0 %v3590_v0  ;;  %1554 = vmatpush1.bf16.msra.mxu1 %v3593_v3  ;;  %v3685_v0 = vld [vmem:[%s4207_s20 + $0x44] ss:$16 sps:$4 sm:$0xff]   ;;  %v3683_v3 = vld [vmem:[%s4207_s20 + $0x40] ss:$16 sps:$4 sm:$0xff]  }
  0xdd   : > { %1512 = vmatprep.subr.bf16.mxu0 %v3598_v4  ;;  %1555 = vmatprep.subr.bf16.mxu1 %v3601_v5  ;;  %v3688_v4 = vld [vmem:[%s4207_s20 + $0x24] ss:$16 sps:$4 sm:$0xff]   ;;  %v3686_v5 = vld [vmem:[%s4207_s20 + $0x20] ss:$16 sps:$4 sm:$0xff]  }
  0xe0   : > { %1513 = vmatpush1.bf16.msra.mxu0 %v3596_v6  ;;  %1556 = vmatpush1.bf16.msra.mxu1 %v3599_v7  ;;  %v3691_v6 = vld [vmem:[%s4207_s20 + $0x4] ss:$16 sps:$4 sm:$0xff]   ;;  %v3689_v7 = vld [vmem:[%s4207_s20] ss:$16 sps:$4 sm:$0xff]  }
  0xe1   : > { %1514 = vmatprep.subr.bf16.mxu0 %v3604_v12  ;;  %1557 = vmatprep.subr.bf16.mxu1 %v3607_v13  ;;  %v3694_v12 = vld [vmem:[%s4207_s20 + $0x1e4] ss:$16 sps:$4 sm:$0xff]   ;;  %v3692_v13 = vld [vmem:[%s4207_s20 + $0x1e0] ss:$16 sps:$4 sm:$0xff]  }
  0xe4   : > { %1515 = vmatpush1.bf16.msra.mxu0 %v3602_v14  ;;  %1558 = vmatpush1.bf16.msra.mxu1 %v3605_v15  ;;  %v3697_v14 = vld [vmem:[%s4207_s20 + $0x1c4] ss:$16 sps:$4 sm:$0xff]   ;;  %v3695_v15 = vld [vmem:[%s4207_s20 + $0x1c0] ss:$16 sps:$4 sm:$0xff]  }
  0xe5   : > { %1516 = vmatprep.subr.bf16.mxu0 %v3610_v20  ;;  %1559 = vmatprep.subr.bf16.mxu1 %v3613_v21  ;;  %v3700_v20 = vld [vmem:[%s4207_s20 + $0x1a4] ss:$16 sps:$4 sm:$0xff]   ;;  %v3698_v21 = vld [vmem:[%s4207_s20 + $0x1a0] ss:$16 sps:$4 sm:$0xff]  }
  0xe8   : > { %1517 = vmatpush1.bf16.msra.mxu0 %v3608_v22  ;;  %1560 = vmatpush1.bf16.msra.mxu1 %v3611_v23  ;;  %v3703_v22 = vld [vmem:[%s4207_s20 + $0x184] ss:$16 sps:$4 sm:$0xff]   ;;  %v3701_v23 = vld [vmem:[%s4207_s20 + $0x180] ss:$16 sps:$4 sm:$0xff]  }
  0xe9   : > { %1518 = vmatprep.subr.bf16.mxu0 %v3616_v9  ;;  %1561 = vmatprep.subr.bf16.mxu1 %v3619_v11  ;;  %v3706_v9 = vld [vmem:[%s4207_s20 + $0x164] ss:$16 sps:$4 sm:$0xff]   ;;  %v3704_v11 = vld [vmem:[%s4207_s20 + $0x160] ss:$16 sps:$4 sm:$0xff]  }
  0xec   : > { %1519 = vmatpush1.bf16.msra.mxu0 %v3614_v24  ;;  %1562 = vmatpush1.bf16.msra.mxu1 %v3617_v8  ;;  %v3709_v24 = vld [vmem:[%s4207_s20 + $0x144] ss:$16 sps:$4 sm:$0xff]   ;;  %v3707_v8 = vld [vmem:[%s4207_s20 + $0x140] ss:$16 sps:$4 sm:$0xff]  }
  0xed   : > { %1520 = vmatprep.subr.bf16.mxu0 %v3622_v10  ;;  %1563 = vmatprep.subr.bf16.mxu1 %v3625_v25  ;;  %v3712_v10 = vld [vmem:[%s4207_s20 + $0x124] ss:$16 sps:$4 sm:$0xff]   ;;  %v3710_v25 = vld [vmem:[%s4207_s20 + $0x120] ss:$16 sps:$4 sm:$0xff]  }
  0xf0   : > { %1521 = vmatpush2.bf16.msra.mxu0 %v3620_v26  ;;  %1564 = vmatpush2.bf16.msra.mxu1 %v3623_v27  ;;  %v3715_v26 = vld [vmem:[%s4207_s20 + $0x104] ss:$16 sps:$4 sm:$0xff]   ;;  %v3713_v27 = vld [vmem:[%s4207_s20 + $0x100] ss:$16 sps:$4 sm:$0xff]  }
  0xf1   : > { %1522 = vmatprep.subr.bf16.mxu0 %v3628_v28  ;;  %1565 = vmatprep.subr.bf16.mxu1 %v3631_v29  ;;  %v3716_v28 = vld [vmem:[%s4207_s20 + $0x2e0] ss:$16 sps:$4 sm:$0xff]   ;;  %v3718_v29 = vld [vmem:[%s4207_s20 + $0x2e4] ss:$16 sps:$4 sm:$0xff]  }
  0xf4   : > { %1523 = vmatpush2.bf16.msra.mxu0 %v3626_v30  ;;  %1566 = vmatpush2.bf16.msra.mxu1 %v3629_v31  ;;  %v3721_v30 = vld [vmem:[%s4207_s20 + $0xec] ss:$16 sps:$4 sm:$0xff]   ;;  %v3724_v31 = vld [vmem:[%s4207_s20 + $0x2c4] ss:$16 sps:$4 sm:$0xff]  }
  0xf5   : > { %1524 = vmatprep.subr.bf16.mxu0 %v3634_v32  ;;  %1567 = vmatprep.subr.bf16.mxu1 %v3637_v33  ;;  %v3722_v32 = vld [vmem:[%s4207_s20 + $0x2c0] ss:$16 sps:$4 sm:$0xff]   ;;  %v3730_v33 = vld [vmem:[%s4207_s20 + $0x2a4] ss:$16 sps:$4 sm:$0xff]  }
  0xf8   : > { %1525 = vmatpush2.bf16.msra.mxu0 %v3632_v17  ;;  %1568 = vmatpush2.bf16.msra.mxu1 %v3635_v34  ;;  %v3728_v17 = vld [vmem:[%s4207_s20 + $0x2a0] ss:$16 sps:$4 sm:$0xff]   ;;  %v3736_v34 = vld [vmem:[%s4207_s20 + $0x284] ss:$16 sps:$4 sm:$0xff]  }
  0xf9   : > { %1526 = vmatprep.subr.bf16.mxu0 %v3640_v35  ;;  %1569 = vmatprep.subr.bf16.mxu1 %v3643_v19  ;;  %v3734_v35 = vld [vmem:[%s4207_s20 + $0x280] ss:$16 sps:$4 sm:$0xff]   ;;  %v3742_v19 = vld [vmem:[%s4207_s20 + $0x264] ss:$16 sps:$4 sm:$0xff]  }
  0xfc   : > { %1527 = vmatpush2.bf16.msra.mxu0 %v3638_v36  ;;  %1570 = vmatpush2.bf16.msra.mxu1 %v3641_v37  ;;  %v3740_v36 = vld [vmem:[%s4207_s20 + $0x260] ss:$16 sps:$4 sm:$0xff]   ;;  %v3748_v37 = vld [vmem:[%s4207_s20 + $0x244] ss:$16 sps:$4 sm:$0xff]  }
  0xfd   : > { %1528 = vmatprep.subr.bf16.mxu0 %v3646_v38  ;;  %1571 = vmatprep.subr.bf16.mxu1 %v3649_v16  ;;  %v3746_v38 = vld [vmem:[%s4207_s20 + $0x240] ss:$16 sps:$4 sm:$0xff]   ;;  %v3754_v16 = vld [vmem:[%s4207_s20 + $0x224] ss:$16 sps:$4 sm:$0xff]  }
 0x100   : > { %1529 = vmatpush2.bf16.msra.mxu0 %v3644_v39  ;;  %1572 = vmatpush2.bf16.msra.mxu1 %v3647_v40  ;;  %v3752_v39 = vld [vmem:[%s4207_s20 + $0x220] ss:$16 sps:$4 sm:$0xff]   ;;  %v3760_v40 = vld [vmem:[%s4207_s20 + $0x204] ss:$16 sps:$4 sm:$0xff]  }
 0x101   : > { %1530 = vmatprep.subr.bf16.mxu0 %v3652_v18  ;;  %1573 = vmatprep.subr.bf16.mxu1 %v3655_v41  ;;  %v3758_v18 = vld [vmem:[%s4207_s20 + $0x200] ss:$16 sps:$4 sm:$0xff]   ;;  %v3766_v41 = vld [vmem:[%s4207_s20 + $0x3e4] ss:$16 sps:$4 sm:$0xff]  }
 0x104   : > { %1531 = vmatpush2.bf16.msra.mxu0 %v3650_v42  ;;  %1574 = vmatpush2.bf16.msra.mxu1 %v3653_v43  ;;  %v3764_v42 = vld [vmem:[%s4207_s20 + $0x3e0] ss:$16 sps:$4 sm:$0xff]   ;;  %v3772_v43 = vld [vmem:[%s4207_s20 + $0x3c4] ss:$16 sps:$4 sm:$0xff]  }
 0x105   : > { %1532 = vmatprep.subr.bf16.mxu0 %v3658_v44  ;;  %1575 = vmatprep.subr.bf16.mxu1 %v3661_v45  ;;  %v3770_v44 = vld [vmem:[%s4207_s20 + $0x3c0] ss:$16 sps:$4 sm:$0xff]   ;;  %v3778_v45 = vld [vmem:[%s4207_s20 + $0x3a4] ss:$16 sps:$4 sm:$0xff]  }
 0x108   : > { %1533 = vmatpush2.bf16.msra.mxu0 %v3656_v46  ;;  %1576 = vmatpush2.bf16.msra.mxu1 %v3659_v47  ;;  %v3776_v46 = vld [vmem:[%s4207_s20 + $0x3a0] ss:$16 sps:$4 sm:$0xff]   ;;  %v3784_v47 = vld [vmem:[%s4207_s20 + $0x384] ss:$16 sps:$4 sm:$0xff]  }
 0x109   : > { %1534 = vmatprep.subr.bf16.mxu0 %v3664_v48  ;;  %1577 = vmatprep.subr.bf16.mxu1 %v3667_v49  ;;  %v3782_v48 = vld [vmem:[%s4207_s20 + $0x380] ss:$16 sps:$4 sm:$0xff]   ;;  %v3790_v49 = vld [vmem:[%s4207_s20 + $0x364] ss:$16 sps:$4 sm:$0xff]  }
 0x10c   : > { %1535 = vmatpush2.bf16.msra.mxu0 %v3662_v52  ;;  %1578 = vmatpush2.bf16.msra.mxu1 %v3665_v53  ;;  %v3788_v52 = vld [vmem:[%s4207_s20 + $0x360] ss:$16 sps:$4 sm:$0xff]   ;;  %v3796_v53 = vld [vmem:[%s4207_s20 + $0x344] ss:$16 sps:$4 sm:$0xff]  }
 0x10d   : > { %2465 = vmatprep.subr.bf16.mxu0 %v3670_v54  ;;  %2508 = vmatprep.subr.bf16.mxu1 %v3718_v29  ;;  %v3794_v54 = vld [vmem:[%s4207_s20 + $0x340] ss:$16 sps:$4 sm:$0xff]  }
 0x10f   : > { %1537 = vmatmul.mubr.bf16.vlgmr.msra.gmra.mxu0 %v4246_v50  ;;  %1580 = vmatmul.mubr.bf16.vlgmr.msra.gmra.mxu1 %v4248_v51  ;;  %v3682_v50 = vld [vmem:[%s4207_s20 + $0x64] ss:$16 sps:$4 sm:$0xff]   ;;  %v3680_v51 = vld [vmem:[%s4207_s20 + $0x60] ss:$16 sps:$4 sm:$0xff]  }
 0x110   : > { %2466 = vmatpush1.bf16.msra.mxu0 %v3668_v55  ;;  %2509 = vmatpush1.bf16.msra.mxu1 %v3716_v28  ;;  %v3802_v55 = vld [vmem:[%s4207_s20 + $0x324] ss:$16 sps:$4 sm:$0xff]  }
 0x111   : > { %2467 = vmatprep.subr.bf16.mxu0 %v3673_v56  ;;  %2510 = vmatprep.subr.bf16.mxu1 %v3724_v31  ;;  %v3800_v56 = vld [vmem:[%s4207_s20 + $0x320] ss:$16 sps:$4 sm:$0xff]  }
 0x114   : > { %2468 = vmatpush1.bf16.msra.mxu0 %v3671_v57  ;;  %2511 = vmatpush1.bf16.msra.mxu1 %v3722_v32  ;;  %v4381_v57 = vld [vmem:[%s755_s14] sm:$0xf] }
 0x115   : > { %2469 = vmatprep.subr.bf16.mxu0 %v3676_v58  ;;  %2512 = vmatprep.subr.bf16.mxu1 %v3730_v33  ;;  %v3808_v58 = vld [vmem:[%s4207_s20 + $0x304] ss:$16 sps:$4 sm:$0xff]  }
 0x118   : > { %2470 = vmatpush1.bf16.msra.mxu0 %v3674_v59  ;;  %2513 = vmatpush1.bf16.msra.mxu1 %v3728_v17  ;;  %v3806_v59 = vld [vmem:[%s4207_s20 + $0x300] ss:$16 sps:$4 sm:$0xff]  }
 0x119   : > { %2471 = vmatprep.subr.bf16.mxu0 %v3679_v60  ;;  %2514 = vmatprep.subr.bf16.mxu1 %v3736_v34  ;;  %v761_v60 = vrot.slane %v4381_v57, %v4224_v1 }
 0x11c   : > { %2472 = vmatpush1.bf16.msra.mxu0 %v3677_v61  ;;  %2515 = vmatpush1.bf16.msra.mxu1 %v3734_v35  ;;  %v765_v61 = vrot.slane %v4381_v57, %v4216_v62 }
 0x11d   : > { %2473 = vmatprep.subr.bf16.mxu0 %v3682_v50  ;;  %2516 = vmatprep.subr.bf16.mxu1 %v3742_v19  ;;  %v3814_v50 = vld [vmem:[%s4207_s20 + $0x2ec] ss:$16 sps:$4 sm:$0xff]  }
 0x120   : > { %2474 = vmatpush1.bf16.msra.mxu0 %v3680_v51  ;;  %2517 = vmatpush1.bf16.msra.mxu1 %v3740_v36 }
 0x121   : > { %2475 = vmatprep.subr.bf16.mxu0 %v3685_v0  ;;  %2518 = vmatprep.subr.bf16.mxu1 %v3748_v37 }
 0x124   : > { %2476 = vmatpush1.bf16.msra.mxu0 %v3683_v3  ;;  %2519 = vmatpush1.bf16.msra.mxu1 %v3746_v38 }
 0x125   : > { %2477 = vmatprep.subr.bf16.mxu0 %v3688_v4  ;;  %2520 = vmatprep.subr.bf16.mxu1 %v3754_v16 }
 0x128   : > { %2478 = vmatpush1.bf16.msra.mxu0 %v3686_v5  ;;  %2521 = vmatpush1.bf16.msra.mxu1 %v3752_v39 }
 0x129   : > { %2479 = vmatprep.subr.bf16.mxu0 %v3691_v6  ;;  %2522 = vmatprep.subr.bf16.mxu1 %v3760_v40 }
 0x12c   : > { %2480 = vmatpush1.bf16.msra.mxu0 %v3689_v7  ;;  %2523 = vmatpush1.bf16.msra.mxu1 %v3758_v18 }
 0x12d   : > { %2481 = vmatprep.subr.bf16.mxu0 %v3694_v12  ;;  %2524 = vmatprep.subr.bf16.mxu1 %v3766_v41 }
 0x130   : > { %2482 = vmatpush2.bf16.msra.mxu0 %v3692_v13  ;;  %2525 = vmatpush2.bf16.msra.mxu1 %v3764_v42 }
 0x131   : > { %2483 = vmatprep.subr.bf16.mxu0 %v3697_v14  ;;  %2526 = vmatprep.subr.bf16.mxu1 %v3772_v43 }
 0x134   : > { %2484 = vmatpush2.bf16.msra.mxu0 %v3695_v15  ;;  %2527 = vmatpush2.bf16.msra.mxu1 %v3770_v44 }
 0x135   : > { %2485 = vmatprep.subr.bf16.mxu0 %v3700_v20  ;;  %2528 = vmatprep.subr.bf16.mxu1 %v3778_v45 }
 0x138   : > { %2486 = vmatpush2.bf16.msra.mxu0 %v3698_v21  ;;  %2529 = vmatpush2.bf16.msra.mxu1 %v3776_v46 }
 0x139   : > { %2487 = vmatprep.subr.bf16.mxu0 %v3703_v22  ;;  %2530 = vmatprep.subr.bf16.mxu1 %v3784_v47 }
 0x13c   : > { %2488 = vmatpush2.bf16.msra.mxu0 %v3701_v23  ;;  %2531 = vmatpush2.bf16.msra.mxu1 %v3782_v48 }
 0x13d   : > { %2489 = vmatprep.subr.bf16.mxu0 %v3706_v9  ;;  %2532 = vmatprep.subr.bf16.mxu1 %v3790_v49 }
 0x140   : > { %2490 = vmatpush2.bf16.msra.mxu0 %v3704_v11  ;;  %2533 = vmatpush2.bf16.msra.mxu1 %v3788_v52 }
 0x141   : > { %2491 = vmatprep.subr.bf16.mxu0 %v3709_v24  ;;  %2534 = vmatprep.subr.bf16.mxu1 %v3796_v53 }
 0x144   : > { %2492 = vmatpush2.bf16.msra.mxu0 %v3707_v8  ;;  %2535 = vmatpush2.bf16.msra.mxu1 %v3794_v54 }
 0x145   : > { %2493 = vmatprep.subr.bf16.mxu0 %v3712_v10  ;;  %2536 = vmatprep.subr.bf16.mxu1 %v3802_v55 }
 0x148   : > { %2494 = vmatpush2.bf16.msra.mxu0 %v3710_v25  ;;  %2537 = vmatpush2.bf16.msra.mxu1 %v3800_v56 }
 0x149   : > { %2495 = vmatprep.subr.bf16.mxu0 %v3715_v26  ;;  %2538 = vmatprep.subr.bf16.mxu1 %v3808_v58 }
 0x14c   : > { %2496 = vmatpush2.bf16.msra.mxu0 %v3713_v27  ;;  %2539 = vmatpush2.bf16.msra.mxu1 %v3806_v59 }
 0x14d   : > { %2551 = vmatprep.subr.bf16.mxu0 %v3721_v30  ;;  %2594 = vmatprep.subr.bf16.mxu1 %v3814_v50 }
 0x18f   : > { %v1452_v51 = vpop.f32.mrf.mxu0  ;;  %v1495_v0 = vpop.f32.mrf.mxu1 }
 0x190   : > { %v1453_v3 = vadd.f32 %v1452_v51, %v761_v60 }
 0x191   : > { %v1454_v4 = vpop.f32.mrf.mxu0  ;;  %v1497_v5 = vpop.f32.mrf.mxu1 }
 0x192   : > { %v4390_v6 = vadd.f32 %v1495_v0, %v1453_v3  ;;  %v1455_v7 = vadd.f32 %v1454_v4, %v765_v61 }
 0x193   : > { %v1456_v12 = vpop.f32.mrf.mxu0  ;;  %v1499_v20 = vpop.f32.mrf.mxu1 }
 0x194   : > { %v4393_v13 = vmul.f32 0.70710677, %v4390_v6  ;;  %v4395_v14 = vadd.f32 %v1497_v5, %v1455_v7  ;;  %v1457_v15 = vadd.f32 %v1456_v12, %v761_v60 }
 0x195   : > { %v1458_v21 = vpop.f32.mrf.mxu0  ;;  %v1501_v10 = vpop.f32.mrf.mxu1 }
 0x196   : > { %v1622_v22 = vand.u32 2147483647, %v4393_v13  ;;  %v4399_v23 = vmul.f32 0.70710677, %v4395_v14  ;;  %v4401_v9 = vadd.f32 %v1499_v20, %v1457_v15  ;;  %v1459_v11 = vadd.f32 %v1458_v21, %v765_v61 }
 0x197   : > { %vm1606_vm0 = vcmp.lt.f32.partialorder %v4393_v13, 0.0 }
 0x198   : > { %v1630_v24 = vmul.f32 0.3275911, %v1622_v22  ;;  %v1623_v8 = vand.u32 2147483647, %v4399_v23  ;;  %v4405_v25 = vmul.f32 0.70710677, %v4401_v9  ;;  %v4407_v26 = vadd.f32 %v1501_v10, %v1459_v11 }
 0x199   : > { %v1726_v19 = vsub.f32 0.0, %v1622_v22  ;;  %vm1607_vm1 = vcmp.lt.f32.partialorder %v4399_v23, 0.0 }
 0x19a   : > { %v1638_v27 = vadd.f32 1.0, %v1630_v24  ;;  %v1631_v28 = vmul.f32 0.3275911, %v1623_v8  ;;  %v1626_v29 = vand.u32 2147483647, %v4405_v25  ;;  %v1727_v36 = vsub.f32 0.0, %v1623_v8 }
 0x19b   : > { %v4411_v30 = vmul.f32 0.70710677, %v4407_v26  ;;  %v1734_v37 = vmul.f32 %v1726_v19, %v1622_v22  ;;  %vm1610_vm2 = vcmp.lt.f32.partialorder %v4405_v25, 0.0 }
 0x19c   : > { %3864 = vrcp.f32 %v1638_v27  ;;  %v1639_v31 = vadd.f32 1.0, %v1631_v28  ;;  %v1634_v32 = vmul.f32 0.3275911, %v1626_v29  ;;  %v1730_v38 = vsub.f32 0.0, %v1626_v29 }
 0x19d   : > { %v1627_v33 = vand.u32 2147483647, %v4411_v30  ;;  %v1735_v39 = vmul.f32 %v1727_v36, %v1623_v8  ;;  %v1742_v41 = vmul.f32 1.442695, %v1734_v37  ;;  %vm1611_vm3 = vcmp.lt.f32.partialorder %v4411_v30, 0.0 }
 0x19e   : > { %3866 = vrcp.f32 %v1639_v31  ;;  %v1642_v17 = vadd.f32 1.0, %v1634_v32  ;;  %v1738_v42 = vmul.f32 %v1730_v38, %v1626_v29  ;;  %v1590_v30 = vmul.f32 0.5, %v4390_v6 }
 0x19f   : > { %v1635_v34 = vmul.f32 0.3275911, %v1627_v33  ;;  %v1731_v18 = vsub.f32 0.0, %v1627_v33  ;;  %v1744_v46 = vmul.f32 1.442695, %v1735_v39 }
 0x1a0   : > { %3868 = vrcp.f32 %v1642_v17  ;;  %v1750_v54 = vmul.f32 1.442695, %v1738_v42 }
 0x1a1   : > { %v1643_v35 = vadd.f32 1.0, %v1635_v34  ;;  %v1739_v49 = vmul.f32 %v1731_v18, %v1627_v33 }
 0x1a3   : > { %3870 = vrcp.f32 %v1643_v35  ;;  %v1752_v50 = vmul.f32 1.442695, %v1739_v49 }
 0x1a4   : > { %3872 = vpow2.f32 %v1742_v41 }
 0x1a5   : > { %3874 = vpow2.f32 %v1744_v46 }
 0x1a6   : > { %3876 = vpow2.f32 %v1750_v54 }
 0x1a7   : > { %3878 = vpow2.f32 %v1752_v50 }
 0x1a9   : > { %v3865_v16 = vpop.eup %3864 }
 0x1aa   : > { %v1654_v40 = vmul.f32 1.0614054, %v3865_v16 }
 0x1ab   : > { %v3867_v43 = vpop.eup %3866 }
 0x1ac   : > { %v1662_v44 = vadd.f32 -1.4531521, %v1654_v40  ;;  %v1655_v45 = vmul.f32 1.0614054, %v3867_v43 }
 0x1ad   : > { %v3869_v47 = vpop.eup %3868 }
 0x1ae   : > { %v1670_v48 = vmul.f32 %v3865_v16, %v1662_v44  ;;  %v1663_v52 = vadd.f32 -1.4531521, %v1655_v45  ;;  %v1658_v53 = vmul.f32 1.0614054, %v3869_v47  ;;  %v3988_v44 = vmov 1.0  }
 0x1af   : > { %v1615_v45 = vsel %vm1607_vm1, -1.0, %v3988_v44  ;;  %v1619_v25 = vsel %vm1611_vm3, -1.0, %v3988_v44 }
 0x1b0   : > { %v1678_v55 = vadd.f32 1.4214138, %v1670_v48  ;;  %v3871_v56 = vpop.eup %3870  ;;  %v1671_v58 = vmul.f32 %v3867_v43, %v1663_v52  ;;  %v1666_v59 = vadd.f32 -1.4531521, %v1658_v53  ;;  %v1618_v48 = vsel %vm1610_vm2, -1.0, %v3988_v44 }
 0x1b1   : > { %v1659_v61 = vmul.f32 1.0614054, %v3871_v56  ;;  %v3873_v31 = vpop.eup %3872 }
 0x1b2   : > { %v1686_v60 = vmul.f32 %v3865_v16, %v1678_v55  ;;  %v1679_v51 = vadd.f32 1.4214138, %v1671_v58  ;;  %v1674_v0 = vmul.f32 %v3869_v47, %v1666_v59  ;;  %v3875_v35 = vpop.eup %3874  ;;  %v1594_v58 = vmul.f32 0.5, %v4401_v9 }
 0x1b3   : > { %v1667_v4 = vadd.f32 -1.4531521, %v1659_v61  ;;  %v3877_v38 = vpop.eup %3876  ;;  %v1591_v59 = vmul.f32 0.5, %v4395_v14  ;;  %v773_v9 = vrot.slane %v4381_v57, %v4222_v63 }
 0x1b4   : > { %v1694_v3 = vadd.f32 -0.28449672, %v1686_v60  ;;  %v1687_v5 = vmul.f32 %v3867_v43, %v1679_v51  ;;  %v1682_v7 = vadd.f32 1.4214138, %v1674_v0  ;;  %v3879_v42 = vpop.eup %3878  ;;  %v1595_v60 = vmul.f32 0.5, %v4407_v26 }
 0x1b5   : > { %v1675_v15 = vmul.f32 %v3871_v56, %v1667_v4 }
 0x1b6   : > { %v1702_v12 = vmul.f32 %v3865_v16, %v1694_v3  ;;  %v1695_v20 = vadd.f32 -0.28449672, %v1687_v5  ;;  %v1690_v21 = vmul.f32 %v3869_v47, %v1682_v7  ;;  %v769_v3 = vrot.slane %v4381_v57, %v4226_v2  ;;  %v3719_v7 = vld [vmem:[%s4207_s20 + $0xe8] ss:$16 sps:$4 sm:$0xff]  }
 0x1b7   : > { %v1683_v11 = vadd.f32 1.4214138, %v1675_v15  ;;  %v3727_v15 = vld [vmem:[%s4207_s20 + $0xcc] ss:$16 sps:$4 sm:$0xff]  }
 0x1b8   : > { %v1710_v22 = vadd.f32 0.2548296, %v1702_v12  ;;  %v1703_v24 = vmul.f32 %v3867_v43, %v1695_v20  ;;  %v1698_v8 = vadd.f32 -0.28449672, %v1690_v21 }
 0x1b9   : > { %v1691_v27 = vmul.f32 %v3871_v56, %v1683_v11 }
 0x1ba   : > { %v1718_v10 = vmul.f32 %v3865_v16, %v1710_v22  ;;  %v1711_v28 = vadd.f32 0.2548296, %v1703_v24  ;;  %v1706_v29 = vmul.f32 %v3869_v47, %v1698_v8  ;;  %v3725_v24 = vld [vmem:[%s4207_s20 + $0xc8] ss:$16 sps:$4 sm:$0xff]   ;;  %v3733_v8 = vld [vmem:[%s4207_s20 + $0xac] ss:$16 sps:$4 sm:$0xff]  }
 0x1bb   : > { %v1699_v32 = vadd.f32 -0.28449672, %v1691_v27 }
 0x1bc   : > { %v1758_v33 = vmul.f32 %v3873_v31, %v1718_v10  ;;  %v1719_v17 = vmul.f32 %v3867_v43, %v1711_v28  ;;  %v1714_v34 = vadd.f32 0.2548296, %v1706_v29  ;;  %v1614_v43 = vsel %vm1606_vm0, -1.0, %v3988_v44 }
 0x1bd   : > { %v1707_v19 = vmul.f32 %v3871_v56, %v1699_v32 }
 0x1be   : > { %v1759_v36 = vmul.f32 %v3875_v35, %v1719_v17  ;;  %v1722_v37 = vmul.f32 %v3869_v47, %v1714_v34  ;;  %v1766_v40 = vsub.f32 1.0, %v1758_v33  ;;  %v3731_v17 = vld [vmem:[%s4207_s20 + $0xa8] ss:$16 sps:$4 sm:$0xff]  }
 0x1bf   : > { %v1715_v39 = vadd.f32 0.2548296, %v1707_v19  ;;  %v3739_v19 = vld [vmem:[%s4207_s20 + $0x8c] ss:$16 sps:$4 sm:$0xff]  }
 0x1c0   : > { %v1767_v16 = vsub.f32 1.0, %v1759_v36  ;;  %v1762_v18 = vmul.f32 %v3877_v38, %v1722_v37  ;;  %v1774_v23 = vmul.f32 %v1766_v40, %v1614_v43 }
 0x1c1   : > { %v1723_v41 = vmul.f32 %v3871_v56, %v1715_v39 }
 0x1c2   : > { %v1770_v46 = vsub.f32 1.0, %v1762_v18  ;;  %v1775_v47 = vmul.f32 %v1767_v16, %v1615_v45  ;;  %v1782_v56 = vadd.f32 1.0, %v1774_v23  ;;  %v3745_v45 = vld [vmem:[%s4207_s20 + $0x6c] ss:$16 sps:$4 sm:$0xff]  }
 0x1c3   : > { %v1763_v13 = vmul.f32 %v3879_v42, %v1723_v41  ;;  %v3737_v41 = vld [vmem:[%s4207_s20 + $0x88] ss:$16 sps:$4 sm:$0xff]  }
 0x1c4   : > { %v1778_v49 = vmul.f32 %v1770_v46, %v1618_v48  ;;  %v1783_v54 = vadd.f32 1.0, %v1775_v47  ;;  %v1790_v4 = vmul.f32 %v1782_v56, %v1590_v30 }
 0x1c5   : > { %v1771_v52 = vsub.f32 1.0, %v1763_v13  ;;  %v3743_v13 = vld [vmem:[%s4207_s20 + $0x68] ss:$16 sps:$4 sm:$0xff]  }
 0x1c6   : > { %v1786_v53 = vadd.f32 1.0, %v1778_v49  ;;  %v1791_v51 = vmul.f32 %v1783_v54, %v1591_v59  ;;  %v3751_v49 = vld [vmem:[%s4207_s20 + $0x4c] ss:$16 sps:$4 sm:$0xff]  }
 0x1c7   : > { %v1779_v55 = vmul.f32 %v1771_v52, %v1619_v25  ;;  %v3749_v25 = vld [vmem:[%s4207_s20 + $0x48] ss:$16 sps:$4 sm:$0xff]  }
 0x1c8   : > { %v1794_v50 = vmul.f32 %v1786_v53, %v1594_v58  ;;  %v3755_v58 = vld [vmem:[%s4207_s20 + $0x28] ss:$16 sps:$4 sm:$0xff]  }
 0x1c9   : > { %v1787_v61 = vadd.f32 1.0, %v1779_v55  ;;  %v3757_v55 = vld [vmem:[%s4207_s20 + $0x2c] ss:$16 sps:$4 sm:$0xff]  }
 0x1ca   : > { %v4431_v12 = vpack.c.bf16 %v1794_v50, %v1790_v4 }
 0x1cb   : > { %v1795_v0 = vmul.f32 %v1787_v61, %v1595_v60  ;;  %v3763_v61 = vld [vmem:[%s4207_s20 + $0xc] ss:$16 sps:$4 sm:$0xff]  }
 0x1cd   : > { %v1799_v5 = vpack.c.bf16 %v1795_v0, %v1791_v51 }
 0x1cf   : > { %v1538_v14 = vpop.f32.mrf.mxu0  ;;  %v1581_v26 = vpop.f32.mrf.mxu1  ;;  %2497 = vmatprep.mubr.bf16.mxu0 %v1799_v5 }
 0x1d0   : > { %v1539_v6 = vadd.f32 %v1538_v14, %v769_v3  ;;  %2498 = vmatmul.mubr.bf16.vlgmr.msra.gmra.mxu0 %v4431_v12 }
 0x1d1   : > { %v1540_v20 = vpop.f32.mrf.mxu0  ;;  %v1583_v21 = vpop.f32.mrf.mxu1  ;;  %2552 = vmatpush1.bf16.msra.mxu0 %v3719_v7  ;;  %2583 = vmatprep.mubr.bf16.mxu0 %v1799_v5  ;;  %v3769_v7 = vld [vmem:[%s4207_s20 + $0x1ec] ss:$16 sps:$4 sm:$0xff]  }
 0x1d2   : > { %v4435_v22 = vadd.f32 %v1581_v26, %v1539_v6  ;;  %v1541_v11 = vadd.f32 %v1540_v20, %v773_v9  ;;  %2553 = vmatprep.subr.bf16.mxu0 %v3727_v15 }
 0x1d3   : > { %v1542_v57 = vpop.f32.mrf.mxu0  ;;  %v1585_v29 = vpop.f32.mrf.mxu1 }
 0x1d4   : > { %v4440_v10 = vmul.f32 0.70710677, %v4435_v22  ;;  %v4442_v27 = vadd.f32 %v1583_v21, %v1541_v11  ;;  %v1543_v28 = vadd.f32 %v1542_v57, %v769_v3  ;;  %v3761_v3 = vld [vmem:[%s4207_s20 + $0x8] ss:$16 sps:$4 sm:$0xff]  }
 0x1d5   : > { %v1544_v31 = vpop.f32.mrf.mxu0  ;;  %2554 = vmatpush1.bf16.msra.mxu0 %v3725_v24  ;;  %v1587_v38 = vpop.f32.mrf.mxu1  ;;  %v3767_v11 = vld [vmem:[%s4207_s20 + $0x1e8] ss:$16 sps:$4 sm:$0xff]   ;;  %v3775_v24 = vld [vmem:[%s4207_s20 + $0x1cc] ss:$16 sps:$4 sm:$0xff]  }
 0x1d6   : > { %v1624_v32 = vand.u32 2147483647, %v4440_v10  ;;  %v4446_v33 = vmul.f32 0.70710677, %v4442_v27  ;;  %v4449_v34 = vadd.f32 %v1585_v29, %v1543_v28  ;;  %v1545_v35 = vadd.f32 %v1544_v31, %v773_v9  ;;  %2555 = vmatprep.subr.bf16.mxu0 %v3733_v8 }
 0x1d7   : > { %vm1608_vm4 = vcmp.lt.f32.partialorder %v4440_v10, 0.0  ;;  %v3805_v10 = vld [vmem:[%s4207_s20 + $0x12c] ss:$16 sps:$4 sm:$0xff]  }
 0x1d8   : > { %v1632_v36 = vmul.f32 0.3275911, %v1624_v32  ;;  %v1625_v37 = vand.u32 2147483647, %v4446_v33  ;;  %v4454_v39 = vmul.f32 0.70710677, %v4449_v34  ;;  %v4456_v40 = vadd.f32 %v1587_v38, %v1545_v35 }
 0x1d9   : > { %2556 = vmatpush1.bf16.msra.mxu0 %v3731_v17  ;;  %v1728_v54 = vsub.f32 0.0, %v1624_v32  ;;  %vm1609_vm5 = vcmp.lt.f32.partialorder %v4446_v33, 0.0 }
 0x1da   : > { %v1640_v16 = vadd.f32 1.0, %v1632_v36  ;;  %v1633_v18 = vmul.f32 0.3275911, %v1625_v37  ;;  %v1628_v42 = vand.u32 2147483647, %v4454_v39  ;;  %2557 = vmatprep.subr.bf16.mxu0 %v3739_v19  ;;  %v1729_v56 = vsub.f32 0.0, %v1625_v37 }
 0x1db   : > { %v4461_v43 = vmul.f32 0.70710677, %v4456_v40  ;;  %v1736_v59 = vmul.f32 %v1728_v54, %v1624_v32  ;;  %vm1612_vm6 = vcmp.lt.f32.partialorder %v4454_v39, 0.0 }
 0x1dc   : > { %3880 = vrcp.f32 %v1640_v16  ;;  %v1641_v46 = vadd.f32 1.0, %v1633_v18  ;;  %v1636_v47 = vmul.f32 0.3275911, %v1628_v42  ;;  %v1732_v60 = vsub.f32 0.0, %v1628_v42  ;;  %v3781_v18 = vld [vmem:[%s4207_s20 + $0x1ac] ss:$16 sps:$4 sm:$0xff]  }
 0x1dd   : > { %v1629_v48 = vand.u32 2147483647, %v4461_v43  ;;  %2558 = vmatpush1.bf16.msra.mxu0 %v3737_v41  ;;  %v1737_v50 = vmul.f32 %v1729_v56, %v1625_v37  ;;  %v1746_v4 = vmul.f32 1.442695, %v1736_v59  ;;  %v3773_v37 = vld [vmem:[%s4207_s20 + $0x1c8] ss:$16 sps:$4 sm:$0xff]  }
 0x1de   : > { %3882 = vrcp.f32 %v1641_v46  ;;  %v1644_v23 = vadd.f32 1.0, %v1636_v47  ;;  %2559 = vmatprep.subr.bf16.mxu0 %v3745_v45  ;;  %v1740_v5 = vmul.f32 %v1732_v60, %v1628_v42  ;;  %v3785_v59 = vld [vmem:[%s4207_s20 + $0x188] ss:$16 sps:$4 sm:$0xff]   ;;  %vm1613_vm7 = vcmp.lt.f32.partialorder %v4461_v43, 0.0 }
 0x1df   : > { %v1637_v52 = vmul.f32 0.3275911, %v1629_v48  ;;  %v1733_v0 = vsub.f32 0.0, %v1629_v48  ;;  %v1748_v15 = vmul.f32 1.442695, %v1737_v50  ;;  %v1593_v43 = vmul.f32 0.5, %v4442_v27 }
 0x1e0   : > { %3884 = vrcp.f32 %v1644_v23  ;;  %v1754_v28 = vmul.f32 1.442695, %v1740_v5  ;;  %v3793_v50 = vld [vmem:[%s4207_s20 + $0x16c] ss:$16 sps:$4 sm:$0xff]  }
 0x1e1   : > { %v1645_v53 = vadd.f32 1.0, %v1637_v52  ;;  %2560 = vmatpush1.bf16.msra.mxu0 %v3743_v13  ;;  %v1741_v21 = vmul.f32 %v1733_v0, %v1629_v48  ;;  %v3779_v13 = vld [vmem:[%s4207_s20 + $0x1a8] ss:$16 sps:$4 sm:$0xff]   ;;  %v3787_v52 = vld [vmem:[%s4207_s20 + $0x18c] ss:$16 sps:$4 sm:$0xff]  }
 0x1e2   : > { %2561 = vmatprep.subr.bf16.mxu0 %v3751_v49 }
 0x1e3   : > { %3886 = vrcp.f32 %v1645_v53  ;;  %v1756_v36 = vmul.f32 1.442695, %v1741_v21 }
 0x1e4   : > { %3888 = vpow2.f32 %v1746_v4 }
 0x1e5   : > { %2562 = vmatpush1.bf16.msra.mxu0 %v3749_v25  ;;  %3890 = vpow2.f32 %v1748_v15 }
 0x1e6   : > { %2563 = vmatprep.subr.bf16.mxu0 %v3757_v55  ;;  %3892 = vpow2.f32 %v1754_v28  ;;  %v3797_v28 = vld [vmem:[%s4207_s20 + $0x148] ss:$16 sps:$4 sm:$0xff]  }
 0x1e7   : > { %3894 = vpow2.f32 %v1756_v36 }
 0x1e9   : > { %v3881_v30 = vpop.eup %3880  ;;  %2564 = vmatpush1.bf16.msra.mxu0 %v3755_v58 }
 0x1ea   : > { %v1656_v51 = vmul.f32 1.0614054, %v3881_v30  ;;  %2565 = vmatprep.subr.bf16.mxu0 %v3763_v61 }
 0x1eb   : > { %v3883_v9 = vpop.eup %3882 }
 0x1ec   : > { %v1664_v14 = vadd.f32 -1.4531521, %v1656_v51  ;;  %v1657_v26 = vmul.f32 1.0614054, %v3883_v9 }
 0x1ed   : > { %v3885_v6 = vpop.eup %3884  ;;  %2566 = vmatpush1.bf16.msra.mxu0 %v3761_v3 }
 0x1ee   : > { %v1672_v20 = vmul.f32 %v3881_v30, %v1664_v14  ;;  %v1665_v57 = vadd.f32 -1.4531521, %v1657_v26  ;;  %v1660_v8 = vmul.f32 1.0614054, %v3885_v6  ;;  %2567 = vmatprep.subr.bf16.mxu0 %v3769_v7  ;;  %v3791_v26 = vld [vmem:[%s4207_s20 + $0x168] ss:$16 sps:$4 sm:$0xff]  }
 0x1f0   : > { %v1680_v29 = vadd.f32 1.4214138, %v1672_v20  ;;  %v3887_v31 = vpop.eup %3886  ;;  %v1673_v32 = vmul.f32 %v3883_v9, %v1665_v57  ;;  %v1668_v17 = vadd.f32 -1.4531521, %v1660_v8  ;;  %v3799_v20 = vld [vmem:[%s4207_s20 + $0x14c] ss:$16 sps:$4 sm:$0xff]  }
 0x1f1   : > { %v1661_v19 = vmul.f32 1.0614054, %v3887_v31  ;;  %2568 = vmatpush2.bf16.msra.mxu0 %v3767_v11  ;;  %v3889_v51 = vpop.eup %3888 }
 0x1f2   : > { %v1688_v35 = vmul.f32 %v3881_v30, %v1680_v29  ;;  %v1681_v38 = vadd.f32 1.4214138, %v1673_v32  ;;  %v1676_v16 = vmul.f32 %v3885_v6, %v1668_v17  ;;  %2569 = vmatprep.subr.bf16.mxu0 %v3775_v24  ;;  %v3891_v7 = vpop.eup %3890  ;;  %v1617_v32 = vsel %vm1609_vm5, -1.0, %v3988_v44 }
 0x1f3   : > { %v1669_v42 = vadd.f32 -1.4531521, %v1661_v19  ;;  %v3893_v21 = vpop.eup %3892 }
 0x1f4   : > { %v1696_v41 = vadd.f32 -0.28449672, %v1688_v35  ;;  %v1689_v45 = vmul.f32 %v3883_v9, %v1681_v38  ;;  %v1684_v46 = vadd.f32 1.4214138, %v1676_v16  ;;  %v3895_v29 = vpop.eup %3894  ;;  %v1620_v35 = vsel %vm1612_vm6, -1.0, %v3988_v44 }
 0x1f5   : > { %v1677_v48 = vmul.f32 %v3887_v31, %v1669_v42  ;;  %2570 = vmatpush2.bf16.msra.mxu0 %v3773_v37  ;;  %v3803_v37 = vld [vmem:[%s4207_s20 + $0x128] ss:$16 sps:$4 sm:$0xff]   ;;  %v1621_v16 = vsel %vm1613_vm7, -1.0, %v3988_v44 }
 0x1f6   : > { %v1704_v47 = vmul.f32 %v3881_v30, %v1696_v41  ;;  %v1697_v23 = vadd.f32 -0.28449672, %v1689_v45  ;;  %v1692_v49 = vmul.f32 %v3885_v6, %v1684_v46  ;;  %2571 = vmatprep.subr.bf16.mxu0 %v3781_v18  ;;  %v3811_v18 = vld [vmem:[%s4207_s20 + $0x10c] ss:$16 sps:$4 sm:$0xff]   ;;  %v1596_v46 = vmul.f32 0.5, %v4449_v34 }
 0x1f7   : > { %v1685_v25 = vadd.f32 1.4214138, %v1677_v48 }
 0x1f8   : > { %v1712_v53 = vadd.f32 0.2548296, %v1704_v47  ;;  %v1705_v54 = vmul.f32 %v3883_v9, %v1697_v23  ;;  %v1700_v55 = vadd.f32 -0.28449672, %v1692_v49  ;;  %v1597_v47 = vmul.f32 0.5, %v4456_v40 }
 0x1f9   : > { %v1693_v58 = vmul.f32 %v3887_v31, %v1685_v25  ;;  %2572 = vmatpush2.bf16.msra.mxu0 %v3779_v13  ;;  %v3809_v13 = vld [vmem:[%s4207_s20 + $0x108] ss:$16 sps:$4 sm:$0xff]   ;;  %v1592_v23 = vmul.f32 0.5, %v4435_v22  ;;  %v3817_v40 = vld [vmem:[%s4207_s20 + $0x2cc] ss:$16 sps:$4 sm:$0xff]  }
 0x1fa   : > { %v1720_v56 = vmul.f32 %v3881_v30, %v1712_v53  ;;  %v1713_v60 = vadd.f32 0.2548296, %v1705_v54  ;;  %v1708_v61 = vmul.f32 %v3885_v6, %v1700_v55  ;;  %2573 = vmatprep.subr.bf16.mxu0 %v3787_v52  ;;  %v3812_v25 = vld [vmem:[%s4207_s20 + $0x2e8] ss:$16 sps:$4 sm:$0xff]   ;;  %v3820_v54 = vld [vmem:[%s4207_s20 + $0x2ac] ss:$16 sps:$4 sm:$0xff]  }
 0x1fb   : > { %v1701_v0 = vadd.f32 -0.28449672, %v1693_v58  ;;  %v3815_v22 = vld [vmem:[%s4207_s20 + $0x2c8] ss:$16 sps:$4 sm:$0xff]  }
 0x1fc   : > { %v1760_v3 = vmul.f32 %v3889_v51, %v1720_v56  ;;  %v1721_v4 = vmul.f32 %v3883_v9, %v1713_v60  ;;  %v1716_v5 = vadd.f32 0.2548296, %v1708_v61  ;;  %v3818_v55 = vld [vmem:[%s4207_s20 + $0x2a8] ss:$16 sps:$4 sm:$0xff]   ;;  %v3823_v56 = vld [vmem:[%s4207_s20 + $0x28c] ss:$16 sps:$4 sm:$0xff]  }
 0x1fd   : > { %v1709_v14 = vmul.f32 %v3887_v31, %v1701_v0  ;;  %2574 = vmatpush2.bf16.msra.mxu0 %v3785_v59  ;;  %v3821_v58 = vld [vmem:[%s4207_s20 + $0x288] ss:$16 sps:$4 sm:$0xff]   ;;  %v3826_v59 = vld [vmem:[%s4207_s20 + $0x26c] ss:$16 sps:$4 sm:$0xff]  }
 0x1fe   : > { %v1761_v30 = vmul.f32 %v3891_v7, %v1721_v4  ;;  %v1724_v15 = vmul.f32 %v3885_v6, %v1716_v5  ;;  %2575 = vmatprep.subr.bf16.mxu0 %v3793_v50  ;;  %v1768_v24 = vsub.f32 1.0, %v1760_v3  ;;  %v1616_v6 = vsel %vm1608_vm4, -1.0, %v3988_v44  ;;  %v3829_v60 = vld [vmem:[%s4207_s20 + $0x24c] ss:$16 sps:$4 sm:$0xff]   ;;  %v3827_v61 = vld [vmem:[%s4207_s20 + $0x248] ss:$16 sps:$4 sm:$0xff]  }
 0x1ff   : > { %v1717_v11 = vadd.f32 0.2548296, %v1709_v14  ;;  %v3832_v50 = vld [vmem:[%s4207_s20 + $0x22c] ss:$16 sps:$4 sm:$0xff]   ;;  %v3830_v51 = vld [vmem:[%s4207_s20 + $0x228] ss:$16 sps:$4 sm:$0xff]  }
 0x200   : > { %v1769_v57 = vsub.f32 1.0, %v1761_v30  ;;  %v1764_v9 = vmul.f32 %v3893_v21, %v1724_v15  ;;  %v1776_v19 = vmul.f32 %v1768_v24, %v1616_v6  ;;  %v3835_v0 = vld [vmem:[%s4207_s20 + $0x20c] ss:$16 sps:$4 sm:$0xff]   ;;  %v3833_v3 = vld [vmem:[%s4207_s20 + $0x208] ss:$16 sps:$4 sm:$0xff]  }
 0x201   : > { %v1725_v8 = vmul.f32 %v3887_v31, %v1717_v11  ;;  %2576 = vmatpush2.bf16.msra.mxu0 %v3791_v26  ;;  %v3838_v4 = vld [vmem:[%s4207_s20 + $0x3ec] ss:$16 sps:$4 sm:$0xff]   ;;  %v3836_v5 = vld [vmem:[%s4207_s20 + $0x3e8] ss:$16 sps:$4 sm:$0xff]  }
 0x202   : > { %v1772_v17 = vsub.f32 1.0, %v1764_v9  ;;  %2577 = vmatprep.subr.bf16.mxu0 %v3799_v20  ;;  %v1777_v33 = vmul.f32 %v1769_v57, %v1617_v32  ;;  %v1784_v45 = vadd.f32 1.0, %v1776_v19  ;;  %v3841_v7 = vld [vmem:[%s4207_s20 + $0x3cc] ss:$16 sps:$4 sm:$0xff]   ;;  %v3839_v14 = vld [vmem:[%s4207_s20 + $0x3c8] ss:$16 sps:$4 sm:$0xff]  }
 0x203   : > { %v1765_v39 = vmul.f32 %v3895_v29, %v1725_v8  ;;  %v3844_v26 = vld [vmem:[%s4207_s20 + $0x3ac] ss:$16 sps:$4 sm:$0xff]   ;;  %v3842_v30 = vld [vmem:[%s4207_s20 + $0x3a8] ss:$16 sps:$4 sm:$0xff]   ;;  %v1803_v32 = vld [vmem:[%s1802_s17] sm:$0xf] }
 0x204   : > { %v1780_v31 = vmul.f32 %v1772_v17, %v1620_v35  ;;  %v1785_v41 = vadd.f32 1.0, %v1777_v33  ;;  %v1792_v53 = vmul.f32 %v1784_v45, %v1592_v23  ;;  %v3847_v15 = vld [vmem:[%s4207_s20 + $0x38c] ss:$16 sps:$4 sm:$0xff]   ;;  %v3845_v20 = vld [vmem:[%s4207_s20 + $0x388] ss:$16 sps:$4 sm:$0xff]   ;;  %v1812_v33 = vrot.slane %v1803_v32, %v4216_v62 }
 0x205   : > { %v1773_v36 = vsub.f32 1.0, %v1765_v39  ;;  %2578 = vmatpush2.bf16.msra.mxu0 %v3797_v28  ;;  %v3850_v21 = vld [vmem:[%s4207_s20 + $0x36c] ss:$16 sps:$4 sm:$0xff]   ;;  %v3848_v11 = vld [vmem:[%s4207_s20 + $0x368] ss:$16 sps:$4 sm:$0xff]  }
 0x206   : > { %v1788_v38 = vadd.f32 1.0, %v1780_v31  ;;  %2579 = vmatprep.subr.bf16.mxu0 %v3805_v10  ;;  %v1793_v49 = vmul.f32 %v1785_v41, %v1593_v43  ;;  %v3853_v24 = vld [vmem:[%s4207_s20 + $0x34c] ss:$16 sps:$4 sm:$0xff]   ;;  %v3851_v57 = vld [vmem:[%s4207_s20 + $0x348] ss:$16 sps:$4 sm:$0xff]   ;;  %v1808_v10 = vrot.slane %v1803_v32, %v4224_v1  ;;  %v3897_v43 = vld [vmem:[#allocation2] sm:$0xff] }
 0x207   : > { %v1781_v42 = vmul.f32 %v1773_v36, %v1621_v16  ;;  %v3856_v9 = vld [vmem:[%s4207_s20 + $0x32c] ss:$16 sps:$4 sm:$0xff]   ;;  %v3854_v8 = vld [vmem:[%s4207_s20 + $0x328] ss:$16 sps:$4 sm:$0xff]  }
 0x208   : > { %v1796_v44 = vmul.f32 %v1788_v38, %v1596_v46  ;;  %v3859_v28 = vld [vmem:[%s4207_s20 + $0x30c] ss:$16 sps:$4 sm:$0xff]   ;;  %v3857_v29 = vld [vmem:[%s4207_s20 + $0x308] ss:$16 sps:$4 sm:$0xff]  }
 0x209   : > { %v1789_v48 = vadd.f32 1.0, %v1781_v42  ;;  %2580 = vmatpush2.bf16.msra.mxu0 %v3803_v37  ;;  %v3898_v62 = vld [vmem:[#allocation2 + $0x8] sm:$0xff] }
 0x20a   : > { %2581 = vmatprep.subr.bf16.mxu0 %v3811_v18  ;;  %v4501_v27 = vpack.c.bf16 %v1796_v44, %v1792_v53  ;;  %v3896_v18 = vld [vmem:[#allocation2 + $0x30] sm:$0xff]  ;;  %v3899_v44 = vld [vmem:[#allocation2 + $0x20] sm:$0xff] }
 0x20b   : > { %v1797_v52 = vmul.f32 %v1789_v48, %v1597_v47 }
 0x20d   : > { %2582 = vmatpush2.bf16.msra.mxu0 %v3809_v13  ;;  %v1801_v34 = vpack.c.bf16 %v1797_v52, %v1793_v49 }
 0x20f   : > { %2540 = vmatprep.mubr.bf16.mxu1 %v1801_v34 }
 0x210   : > { %2541 = vmatmul.mubr.bf16.vlgmr.msra.gmra.mxu1 %v4501_v27  ;;  %2584 = vmatmul.mubr.bf16.vlgmr.msra.gmra.mxu0 %v4431_v12  ;;  %v3824_v12 = vld [vmem:[%s4207_s20 + $0x268] ss:$16 sps:$4 sm:$0xff]  }
 0x211   : > { %2595 = vmatpush1.bf16.msra.mxu1 %v3812_v25  ;;  %2626 = vmatprep.mubr.bf16.mxu1 %v1801_v34  ;;  %v1816_v34 = vrot.slane %v1803_v32, %v4226_v2  ;;  %v1820_v25 = vrot.slane %v1803_v32, %v4222_v63  ;;  %v3902_v63 = vld [vmem:[#allocation2 + $0x28] sm:$0xff] }
 0x212   : > { %2596 = vmatprep.subr.bf16.mxu1 %v3817_v40 }
 0x215   : > { %2597 = vmatpush1.bf16.msra.mxu1 %v3815_v22 }
 0x216   : > { %2598 = vmatprep.subr.bf16.mxu1 %v3820_v54 }
 0x219   : > { %2599 = vmatpush1.bf16.msra.mxu1 %v3818_v55 }
 0x21a   : > { %2600 = vmatprep.subr.bf16.mxu1 %v3823_v56 }
 0x21d   : > { %2601 = vmatpush1.bf16.msra.mxu1 %v3821_v58 }
 0x21e   : > { %2602 = vmatprep.subr.bf16.mxu1 %v3826_v59 }
 0x221   : > { %2603 = vmatpush1.bf16.msra.mxu1 %v3824_v12  ;;  %v3900_v12 = vld [vmem:[#allocation2 + $0x18] sm:$0xff] }
 0x222   : > { %2604 = vmatprep.subr.bf16.mxu1 %v3829_v60 }
 0x225   : > { %2605 = vmatpush1.bf16.msra.mxu1 %v3827_v61 }
 0x226   : > { %2606 = vmatprep.subr.bf16.mxu1 %v3832_v50 }
 0x229   : > { %2607 = vmatpush1.bf16.msra.mxu1 %v3830_v51 }
 0x22a   : > { %2608 = vmatprep.subr.bf16.mxu1 %v3835_v0  ;;  %v3901_v0 = vld [vmem:[#allocation2 + $0x10] sm:$0xff] }
 0x22d   : > { %2609 = vmatpush1.bf16.msra.mxu1 %v3833_v3 }
 0x22e   : > { %2610 = vmatprep.subr.bf16.mxu1 %v3838_v4 }
 0x231   : > { %2611 = vmatpush2.bf16.msra.mxu1 %v3836_v5 }
 0x232   : > { %2612 = vmatprep.subr.bf16.mxu1 %v3841_v7 }
 0x235   : > { %2613 = vmatpush2.bf16.msra.mxu1 %v3839_v14  ;;  %v3903_v14 = vld [vmem:[#allocation2 + $0x38] sm:$0xff] }
 0x236   : > { %2614 = vmatprep.subr.bf16.mxu1 %v3844_v26 }
 0x239   : > { %2615 = vmatpush2.bf16.msra.mxu1 %v3842_v30 }
 0x23a   : > { %2616 = vmatprep.subr.bf16.mxu1 %v3847_v15 }
 0x23d   : > { %2617 = vmatpush2.bf16.msra.mxu1 %v3845_v20 }
 0x23e   : > { %2618 = vmatprep.subr.bf16.mxu1 %v3850_v21 }
 0x241   : > { %2619 = vmatpush2.bf16.msra.mxu1 %v3848_v11 }
 0x242   : > { %2620 = vmatprep.subr.bf16.mxu1 %v3853_v24 }
 0x245   : > { %2621 = vmatpush2.bf16.msra.mxu1 %v3851_v57 }
 0x246   : > { %2622 = vmatprep.subr.bf16.mxu1 %v3856_v9 }
 0x249   : > { %2623 = vmatpush2.bf16.msra.mxu1 %v3854_v8 }
 0x24a   : > { %2624 = vmatprep.subr.bf16.mxu1 %v3859_v28 }
 0x24d   : > { %2625 = vmatpush2.bf16.msra.mxu1 %v3857_v29 }
 0x250   : > { %2627 = vmatmul.mubr.bf16.vlgmr.msra.gmra.mxu1 %v4501_v27 }
 0x290   : > { %v2499_v6 = vpop.f32.mrf.mxu0 }
 0x291   : > { %v2500_v39 = vadd.f32 %v2499_v6, %v1808_v10 }
 0x292   : > { %v2501_v17 = vpop.f32.mrf.mxu0 }
 0x293   : > { %v2502_v31 = vadd.f32 %v2501_v17, %v1812_v33 }
 0x294   : > { %v2503_v35 = vpop.f32.mrf.mxu0 }
 0x295   : > { %v2504_v16 = vadd.f32 %v2503_v35, %v1808_v10 }
 0x296   : > { %v2505_v37 = vpop.f32.mrf.mxu0 }
 0x297   : > { %v2506_v46 = vadd.f32 %v2505_v37, %v1812_v33 }
 0x2d0   : > { %v2542_v19 = vpop.f32.mrf.mxu1  ;;  %v2585_v52 = vpop.f32.mrf.mxu0 }
 0x2d1   : > { %v2543_v36 = vadd.f32 %v2542_v19, %v2500_v39  ;;  %v2586_v40 = vadd.f32 %v2585_v52, %v1816_v34 }
 0x2d2   : > { %v2544_v38 = vpop.f32.mrf.mxu1  ;;  %v2587_v53 = vpop.f32.mrf.mxu0 }
 0x2d3   : > { %v2637_v41 = vadd.f32 %v3896_v18, %v2543_v36  ;;  %v2545_v42 = vadd.f32 %v2544_v38, %v2502_v31  ;;  %v2588_v54 = vadd.f32 %v2587_v53, %v1820_v25 }
 0x2d4   : > { %v2546_v45 = vpop.f32.mrf.mxu1  ;;  %v2589_v27 = vpop.f32.mrf.mxu0 }
 0x2d5   : > { %2645 = vst [vmem:[#allocation2 + $0x30] sm:$0xff] %v2637_v41  ;;  %v2638_v47 = vadd.f32 %v3897_v43, %v2545_v42  ;;  %v2547_v48 = vadd.f32 %v2546_v45, %v2504_v16  ;;  %v2590_v59 = vadd.f32 %v2589_v27, %v1816_v34 }
 0x2d6   : > { %v2548_v1 = vpop.f32.mrf.mxu1  ;;  %v2591_v56 = vpop.f32.mrf.mxu0 }
 0x2d7   : > { %2646 = vst [vmem:[#allocation2] sm:$0xff] %v2638_v47  ;;  %v2641_v13 = vadd.f32 %v3898_v62, %v2547_v48  ;;  %v2549_v23 = vadd.f32 %v2548_v1, %v2506_v46  ;;  %v2592_v51 = vadd.f32 %v2591_v56, %v1820_v25 }
 0x2d9   : > { %2649 = vst [vmem:[#allocation2 + $0x8] sm:$0xff] %v2641_v13  ;;  %v2642_v49 = vadd.f32 %v3899_v44, %v2549_v23 }
 0x2db   : > { %2650 = vst [vmem:[#allocation2 + $0x20] sm:$0xff] %v2642_v49 }
 0x310   : > { %v2628_v22 = vpop.f32.mrf.mxu1 }
 0x311   : > { %v2629_v55 = vadd.f32 %v2628_v22, %v2586_v40 }
 0x312   : > { %v2630_v58 = vpop.f32.mrf.mxu1 }
 0x313   : > { %v2639_v60 = vadd.f32 %v3900_v12, %v2629_v55  ;;  %v2631_v61 = vadd.f32 %v2630_v58, %v2588_v54 }
 0x314   : > { %v2632_v50 = vpop.f32.mrf.mxu1 }
 0x315   : > { %2647 = vst [vmem:[#allocation2 + $0x18] sm:$0xff] %v2639_v60  ;;  %v2640_v3 = vadd.f32 %v3901_v0, %v2631_v61  ;;  %v2633_v4 = vadd.f32 %v2632_v50, %v2590_v59 }
 0x316   : > { %v2634_v2 = vpop.f32.mrf.mxu1 }
 0x317   : > { %2648 = vst [vmem:[#allocation2 + $0x10] sm:$0xff] %v2640_v3  ;;  %v2643_v5 = vadd.f32 %v3902_v63, %v2633_v4  ;;  %v2635_v7 = vadd.f32 %v2634_v2, %v2592_v51  ;;  %2656 = sbr.rel (%p3358_p5) target bundleno = 1036 (0x40c), region = 64 }
 0x319   : > { %2651 = vst [vmem:[#allocation2 + $0x28] sm:$0xff] %v2643_v5  ;;  %v2644_v26 = vadd.f32 %v3903_v14, %v2635_v7 }
 0x31b   : > { %2652 = vst [vmem:[#allocation2 + $0x38] sm:$0xff] %v2644_v26 }
 0x31c   : > { %v3904_v30 = vld [vmem:[%s4677_s7 + $0x78] sm:$0xff]   ;;  %v3908_v11 = vld [vmem:[%s4677_s7 + $0x70] sm:$0xff]   ;;  %v3912_v8 = vld [vmem:[%s4677_s7 + $0x68] sm:$0xff]  }
 0x31d   : > { %v3905_v15 = vld [vmem:[%s4677_s7 + $0xf8] sm:$0xff]   ;;  %3398 = vmatprep.subr.bf16.mxu0 %v3904_v30  ;;  %v3909_v24 = vld [vmem:[%s4677_s7 + $0xf0] sm:$0xff]   ;;  %v3913_v28 = vld [vmem:[%s4677_s7 + $0xe8] sm:$0xff]  }
 0x31e   : > { %v3906_v20 = vld [vmem:[%s4677_s7 + $0x38] sm:$0xff]   ;;  %3420 = vmatprep.subr.bf16.mxu1 %v3905_v15  ;;  %v3910_v57 = vld [vmem:[%s4677_s7 + $0x30] sm:$0xff]   ;;  %v3914_v29 = vld [vmem:[%s4677_s7 + $0x28] sm:$0xff]  }
 0x31f   : > { %v3907_v21 = vld [vmem:[%s4677_s7 + $0xb8] sm:$0xff]   ;;  %3399 = vmatpush3.bf16.msra.mxu0 %v3906_v20  ;;  %v3911_v9 = vld [vmem:[%s4677_s7 + $0xb0] sm:$0xff]   ;;  %v3915_v6 = vld [vmem:[%s4677_s7 + $0xa8] sm:$0xff]  }
 0x320   : > { %3421 = vmatpush3.bf16.msra.mxu1 %v3907_v21  ;;  %3400 = vmatprep.subr.bf16.mxu0 %v3908_v11  ;;  %v3916_v32 = vld [vmem:[%s4677_s7 + $0x60] sm:$0xff]   ;;  %v3920_v35 = vld [vmem:[%s4677_s7 + $0x58] sm:$0xff]   ;;  %v3924_v36 = vld [vmem:[%s4677_s7 + $0x50] sm:$0xff]  }
 0x321   : > { %3422 = vmatprep.subr.bf16.mxu1 %v3909_v24  ;;  %v3917_v17 = vld [vmem:[%s4677_s7 + $0xe0] sm:$0xff]   ;;  %v3921_v39 = vld [vmem:[%s4677_s7 + $0xd8] sm:$0xff]   ;;  %v3925_v37 = vld [vmem:[%s4677_s7 + $0xd0] sm:$0xff]  }
 0x322   : > { %v3918_v10 = vld [vmem:[%s4677_s7 + $0x20] sm:$0xff]   ;;  %v3922_v19 = vld [vmem:[%s4677_s7 + $0x18] sm:$0xff]   ;;  %v3926_v38 = vld [vmem:[%s4677_s7 + $0x10] sm:$0xff]  }
 0x323   : > { %3401 = vmatpush3.bf16.msra.mxu0 %v3910_v57  ;;  %v3919_v33 = vld [vmem:[%s4677_s7 + $0xa0] sm:$0xff]   ;;  %v3923_v31 = vld [vmem:[%s4677_s7 + $0x98] sm:$0xff]   ;;  %v3927_v16 = vld [vmem:[%s4677_s7 + $0x90] sm:$0xff]  }
 0x324   : > { %3423 = vmatpush3.bf16.msra.mxu1 %v3911_v9  ;;  %3402 = vmatprep.subr.bf16.mxu0 %v3912_v8  ;;  %v3928_v18 = vld [vmem:[%s4677_s7 + $0x48] sm:$0xff]   ;;  %v3932_v46 = vld [vmem:[%s4677_s7 + $0x40] sm:$0xff]   ;;  %v2660_v13 = vld [vmem:[#allocation2 + $0x10] sm:$0xff] }
 0x325   : > { %3424 = vmatprep.subr.bf16.mxu1 %v3913_v28  ;;  %v3929_v41 = vld [vmem:[%s4677_s7 + $0xc8] sm:$0xff]   ;;  %v3933_v43 = vld [vmem:[%s4677_s7 + $0xc0] sm:$0xff]   ;;  %v2664_v44 = vld [vmem:[#allocation2 + $0x38] sm:$0xff] }
 0x326   : > { %v3930_v42 = vld [vmem:[%s4677_s7 + $0x8] sm:$0xff]   ;;  %v3934_v47 = vld [vmem:[%s4677_s7] sm:$0xff]   ;;  %v2657_v49 = vld [vmem:[#allocation2 + $0x30] sm:$0xff]  ;;  %v2668_v53 = vpack.c.bf16 %v2664_v44, %v2660_v13 }
 0x327   : > { %3403 = vmatpush3.bf16.msra.mxu0 %v3914_v29  ;;  %v3931_v45 = vld [vmem:[%s4677_s7 + $0x88] sm:$0xff]   ;;  %v3935_v48 = vld [vmem:[%s4677_s7 + $0x80] sm:$0xff]   ;;  %v2659_v25 = vld [vmem:[#allocation2 + $0x18] sm:$0xff] }
 0x328   : > { %3425 = vmatpush3.bf16.msra.mxu1 %v3915_v6  ;;  %3404 = vmatprep.subr.bf16.mxu0 %v3916_v32  ;;  %v2658_v1 = vld [vmem:[#allocation2] sm:$0xff]  ;;  %v2661_v52 = vld [vmem:[#allocation2 + $0x8] sm:$0xff] }
 0x329   : > { %3426 = vmatprep.subr.bf16.mxu1 %v3917_v17  ;;  %v2662_v62 = vld [vmem:[#allocation2 + $0x20] sm:$0xff]  ;;  %v2665_v34 = vpack.c.bf16 %v2661_v52, %v2657_v49  ;;  %v2663_v27 = vld [vmem:[#allocation2 + $0x28] sm:$0xff]  ;;  %3005 = vmatprep.mubr.bf16.mxu1 %v2668_v53 }
 0x32a   : > { %v2666_v23 = vpack.c.bf16 %v2662_v62, %v2658_v1  ;;  %v2667_v40 = vpack.c.bf16 %v2663_v27, %v2659_v25  ;;  %v3359_v55 = vld [vmem:[%s4678_s8] ss:$0 sm:$0xff] }
 0x32b   : > { %3405 = vmatpush3.bf16.msra.mxu0 %v3918_v10 }
 0x32c   : > { %3427 = vmatpush3.bf16.msra.mxu1 %v3919_v33  ;;  %3406 = vmatprep.subr.bf16.mxu0 %v3920_v35 }
 0x32d   : > { %3428 = vmatprep.subr.bf16.mxu1 %v3921_v39  ;;  %2964 = vmatprep.mubr.bf16.mxu0 %v2666_v23 }
 0x32f   : > { %3407 = vmatpush3.bf16.msra.mxu0 %v3922_v19 }
 0x330   : > { %3429 = vmatpush3.bf16.msra.mxu1 %v3923_v31  ;;  %3408 = vmatprep.subr.bf16.mxu0 %v3924_v36 }
 0x331   : > { %3430 = vmatprep.subr.bf16.mxu1 %v3925_v37 }
 0x333   : > { %3409 = vmatpush3.bf16.msra.mxu0 %v3926_v38 }
 0x334   : > { %3431 = vmatpush3.bf16.msra.mxu1 %v3927_v16  ;;  %3410 = vmatprep.subr.bf16.mxu0 %v3928_v18 }
 0x335   : > { %3432 = vmatprep.subr.bf16.mxu1 %v3929_v41 }
 0x337   : > { %3411 = vmatpush3.bf16.msra.mxu0 %v3930_v42 }
 0x338   : > { %3433 = vmatpush3.bf16.msra.mxu1 %v3931_v45  ;;  %3412 = vmatprep.subr.bf16.mxu0 %v3932_v46 }
 0x339   : > { %3434 = vmatprep.subr.bf16.mxu1 %v3933_v43 }
 0x33b   : > { %3413 = vmatpush3.bf16.msra.mxu0 %v3934_v47 }
 0x33c   : > { %3435 = vmatpush3.bf16.msra.mxu1 %v3935_v48 }
 0x33e   : > { %2965 = vmatmul.mubr.bf16.vlgmr.msra.gmra.mxu0 %v2665_v34 }
 0x33f   : > { %3006 = vmatmul.mubr.bf16.vlgmr.msra.gmra.mxu1 %v2667_v40 }
 0x3fe   : > { %v3414_v22 = vpop.f32.mrf.mxu0 }
 0x3ff   : > { %v3436_v54 = vpop.f32.mrf.mxu1 }
 0x400   : > { %v3415_v56 = vpop.f32.mrf.mxu0 }
 0x401   : > { %v3416_v58 = vadd.f32 %v3415_v56, %v3414_v22  ;;  %v3437_v59 = vpop.f32.mrf.mxu1 }
 0x402   : > { %v3417_v12 = vpop.f32.mrf.mxu0  ;;  %v3438_v61 = vadd.f32 %v3437_v59, %v3436_v54 }
 0x403   : > { %v2967_v60 = vadd.f32 %v3416_v58, %v3359_v55  ;;  %v3439_v50 = vpop.f32.mrf.mxu1 }
 0x404   : > { %v3418_v51 = vpop.f32.mrf.mxu0 }
 0x405   : > { %v3008_v0 = vadd.f32 %v3438_v61, %v2967_v60  ;;  %v3419_v3 = vadd.f32 %v3418_v51, %v3417_v12  ;;  %v3440_v4 = vpop.f32.mrf.mxu1 }
 0x406   : > { %v3441_v63 = vadd.f32 %v3440_v4, %v3439_v50 }
 0x407   : > { %3014 = vst [vmem:[#allocation3] sm:$0xff] %v3008_v0  ;;  %v2970_v2 = vadd.f32 %v3419_v3, %v3359_v55 }
 0x409   : > { %v3011_v5 = vadd.f32 %v3441_v63, %v2970_v2 }
 0x40b   : > { %3015 = vst [vmem:[#allocation3 + $0x8] sm:$0xff] %v3011_v5 }
 0x40c PF: > { %p4646_p6 = scmp.eq.s32.totalorder %s3093_s12, 1  ;;  %s3989_s17 = smov [#allocation3]  }
 0x40d   : > { %s3025_s18 = sshll.u32 %s3989_s17, 4  ;;  %s3026_s18 = int_to_ptr.vmem [resolvable:$true] %s3025_s18 }
 0x40e   : > { %s3936_s19 = scalar_lea.vmem %s3026_s18, 256  ;;  %p3943_p10 = scmp.lt.s32.totalorder %s3026_s18, %s3026_s18 }
 0x40f   : > { %p3937_p7 = scmp.ne.s32.totalorder %s3026_s18, %s3936_s19  ;;  %p3944_p11 = scmp.lt.s32.totalorder %s3936_s19, %s3936_s19 }
 0x411   : > { %p3938_p8 = pnand %p3937_p7, %p4646_p6  ;;  %p3945_p12 = por %p3944_p11, %p3943_p10 }
 0x413   : > { %p3939_p9 = pneg %p3938_p8 }
 0x415   : > { %p3946_p13 = pnand %p3945_p12, %p3939_p9 }
 0x417   : > { %3949 = shalt.err (!%p3946_p13)
}
 0x418   : > { %s3990_s20 = smov 128   ;;  %s3991_s12 = smov 8  }
 0x419   : > { %3443 = dma.vmem_to_hbm [thread:$0]  (%p4646_p6), %s3026_s18, 256, %s4679_s9, [#allocation4], %s3990_s20, %s3990_s20, %s3991_s12  }
 0x41a   : > { %3973 = dma.done.wait (%p4646_p6), [#allocation4], 256  }
 0x41b   : > { %3975 = vsyncadd (%p4646_p6), [#allocation4], 4294967040 }
 0x41c PF: > { %s20_s11 = sadd.s32 1, %s3986_s11   ;;  %s4681_s30 = smov %s3982_s10 }
 0x41d   : > { %p17_p0 = scmp.ge.s32.totalorder %s20_s11, 4   ;;  %s4682_s10 = smov %s4684_s13 }
 0x41f   :  { %19 = sbr.rel (!%p17_p0) target bundleno = 2 (0x2), region = 98 }
 0x424   :  { %3041 = vsyncpa [#allocation4], 1 }
 0x425   :  { %3043 = vsyncpa [#allocation4 + $0x1], 1 }

</bundles_post_ra>
